<compile_context>
chip_gen: v7x
topology: tpu7x:2x2x1
jax: 0.10.0
libtpu: 0.0.40
codegen_flags: <defaults>
</compile_context>

<pallas_src>
import functools
import math

import jax
import jax.numpy as jnp
from jax.experimental import pallas as pl
from jax.experimental.pallas import tpu as pltpu

# KNRM kernel bank parameters (from CedrKnrmRanker.__init__)
MUS = [-0.9, -0.7, -0.5, -0.3, -0.1, 0.1, 0.3, 0.5, 0.7, 0.9, 1.0]
SIGMAS = [0.1, 0.1, 0.1, 0.1, 0.1, 0.1, 0.1, 0.1, 0.1, 0.1, 0.001]
K = len(MUS)
PAD = -1  # SimmatModule padding token id

# The factored-exp code below assumes exactly this bank structure.
assert [round(m * 10) for m in MUS[:10]] == [-9, -7, -5, -3, -1, 1, 3, 5, 7, 9]
assert all(abs(s - 0.1) < 1e-12 for s in SIGMAS[:10])
assert MUS[10] == 1.0 and SIGMAS[10] == 0.001


def _make_kernel(V, Q, H, TD, D_orig, D_padded):
  """Builds the kernel body for static shapes."""
  KV = K * V
  need_valid = D_padded != D_orig  # tile padding beyond the true DLEN

  def kernel(q_ref, d_ref, qtok_ref, dtok_ref, cls_ref,
             w1k_ref, w1c_ref, b1_ref, w2_ref, b2_ref, w3_ref, b3_ref,
             out_ref, ksum_ref, simsum_ref):
    dt = pl.program_id(1)

    # ---- reset per-batch-element accumulators on the first D tile ----
    @pl.when(dt == 0)
    def _():
      ksum_ref[...] = jnp.zeros_like(ksum_ref)
      simsum_ref[...] = jnp.zeros_like(simsum_ref)

    qpad = qtok_ref[0] == PAD                                   # [Q, 1]
    dpad = dtok_ref[0] == PAD                                   # [1, TD]
    pad_mask = jnp.logical_or(jnp.broadcast_to(qpad, (Q, TD)),
                              jnp.broadcast_to(dpad, (Q, TD)))  # [Q, TD]

    if need_valid:
      col = dt * TD + jax.lax.broadcasted_iota(jnp.int32, (1, TD), 1)
      validb = jnp.broadcast_to(col < D_orig, (Q, TD))          # [Q, TD]

    for v in range(V):
      qv = q_ref[0, v]                                          # [Q, H]  bf16
      dv = d_ref[0, v]                                          # [H, TD] bf16

      # --- SimmatModule: masked cosine similarity (f32 accumulation) ---
      raw = jnp.dot(qv, dv, preferred_element_type=jnp.float32)  # [Q, TD]
      qv32 = qv.astype(jnp.float32)
      dv32 = dv.astype(jnp.float32)
      inv_qn = jax.lax.rsqrt(
          jnp.sum(qv32 * qv32, axis=-1, keepdims=True) + 1e-9)   # [Q, 1]
      inv_dn = jax.lax.rsqrt(
          jnp.sum(dv32 * dv32, axis=0, keepdims=True) + 1e-9)    # [1, TD]
      sim = raw * inv_qn * inv_dn
      sim = jnp.where(pad_mask, 0.0, sim)

      # row-sum of the (masked) simmat -> the `sum(sim,-1) != 0` mask later
      simsum_ref[:, v:v + 1] = (simsum_ref[:, v:v + 1]
                                + jnp.sum(sim, axis=-1, keepdims=True))

      # --- KNRM RBF bank, factored to 4 EUP exp passes per view ---
      t = jnp.exp(10.0 * sim)           # exp(+10 s)
      ti = jnp.exp(-10.0 * sim)         # exp(-10 s)
      e0 = jnp.exp(-50.0 * sim * sim)   # exp(-50 s^2)
      if need_valid:
        # doc positions added only to reach a tile multiple must contribute 0,
        # not kernel(0); zeroing e0 kills all ten sigma=0.1 kernels there.
        e0 = jnp.where(validb, e0, 0.0)
      t2 = t * t
      ti2 = ti * ti

      pos = e0 * t    # exp(-50 s^2 + 10 s) -> mu = +0.1
      neg = e0 * ti   # exp(-50 s^2 - 10 s) -> mu = -0.1
      for step in range(5):
        m = 2 * step + 1                       # 10*|mu| in {1,3,5,7,9}
        c = math.exp(-0.5 * m * m)             # exp(-50 mu^2)
        fp = (5 + step) * V + v                # feature index of mu = +m/10
        fn = (4 - step) * V + v                # feature index of mu = -m/10
        ksum_ref[:, fp:fp + 1] = (ksum_ref[:, fp:fp + 1]
                                  + c * jnp.sum(pos, axis=-1, keepdims=True))
        ksum_ref[:, fn:fn + 1] = (ksum_ref[:, fn:fn + 1]
                                  + c * jnp.sum(neg, axis=-1, keepdims=True))
        if step < 4:
          pos = pos * t2
          neg = neg * ti2

      # sigma=0.001, mu=1.0 kernel: direct exp (exactly 0 wherever sim != ~1,
      # including padded / tile-padded columns where sim == 0).
      d1 = sim - 1.0
      klast = jnp.exp((-0.5 / (0.001 * 0.001)) * d1 * d1)
      fl = 10 * V + v
      ksum_ref[:, fl:fl + 1] = (ksum_ref[:, fl:fl + 1]
                                + jnp.sum(klast, axis=-1, keepdims=True))

    # ---- last D tile: masked log pooling over Q + fc1/fc2/out MLP ----
    @pl.when(dt == pl.num_programs(1) - 1)
    def _():
      maskf = (simsum_ref[...] != 0.0).astype(jnp.float32)       # [Q, V]
      # feature order is kernel-major / view-minor (f = k*V + v), matching
      # kernels.reshape(B, KERNELS*VIEWS, ...) in the PyTorch reference.
      maskf = jnp.concatenate([maskf] * K, axis=-1)              # [Q, K*V]
      r = maskf * jnp.log(ksum_ref[...] + 1e-6)                  # [Q, K*V]
      feat = jnp.sum(r, axis=0, keepdims=True)                   # [1, K*V]

      cls_row = cls_ref[0].astype(jnp.float32)                   # [1, H]
      h1 = (jnp.dot(feat, w1k_ref[...], preferred_element_type=jnp.float32)
            + jnp.dot(cls_row, w1c_ref[...], preferred_element_type=jnp.float32)
            + b1_ref[...])
      h1 = jnp.maximum(h1, 0.0)
      h2 = jnp.maximum(
          jnp.dot(h1, w2_ref[...], preferred_element_type=jnp.float32)
          + b2_ref[...], 0.0)
      out_ref[0] = (jnp.dot(h2, w3_ref[...], preferred_element_type=jnp.float32)
                    + b3_ref[...])

  return kernel


def cedr_knrm_forward(q_reps, d_reps, q_tok, d_tok, cls_rep, params,
                      *, d_tile=512, reps_dtype=jnp.bfloat16):
  """Post-BERT CedrKnrmRanker head.

  q_reps [B,V,Q,H], d_reps [B,V,D,H], q_tok [B,Q] int32, d_tok [B,D] int32,
  cls_rep [B,H] (last-layer CLS), params = (w1 [K*V+H,100], b1, w2 [100,10],
  b2, w3 [10,1], b3).  Returns scores [B, 1] f32.
  """
  B, V, Q, H = q_reps.shape
  D = d_reps.shape[2]
  KV = K * V
  w1, b1, w2, b2, w3, b3 = params
  assert w1.shape == (KV + H, 100)
  assert d_tile % 128 == 0

  # Doc-length tiling (trailing "arbitrary" reduction grid axis).
  TD = d_tile if D >= d_tile else D
  num_dt = pl.cdiv(D, TD)
  Dp = num_dt * TD

  f32 = jnp.float32
  q_c = q_reps.astype(reps_dtype)
  d_c = d_reps.astype(reps_dtype)
  if Dp != D:
    d_c = jnp.pad(d_c, ((0, 0), (0, 0), (0, Dp - D), (0, 0)))
    d_tok = jnp.pad(d_tok, ((0, 0), (0, Dp - D)), constant_values=PAD)
  # [B, V, H, Dp]: H on sublanes / D on lanes -> natural [Q,H] x [H,TD] matmul
  # (wrapper-side layout plumbing; avoids per-view XLU transposes in the kernel).
  d_t = jnp.transpose(d_c, (0, 1, 3, 2))

  qtok3 = q_tok.astype(jnp.int32).reshape(B, Q, 1)
  dtok3 = d_tok.astype(jnp.int32).reshape(B, 1, Dp)
  cls3 = cls_rep.astype(f32).reshape(B, 1, H)
  w1k = w1[:KV].astype(f32)             # fc1 rows for the 33 KNRM features
  w1c = w1[KV:].astype(f32)             # fc1 rows for the CLS vector
  b1 = b1.reshape(1, 100).astype(f32)
  w2 = w2.astype(f32)
  b2 = b2.reshape(1, 10).astype(f32)
  w3 = w3.astype(f32)
  b3 = b3.reshape(1, 1).astype(f32)

  kernel = _make_kernel(V, Q, H, TD, D, Dp)

  grid_spec = pltpu.PrefetchScalarGridSpec(
      num_scalar_prefetch=0,
      grid=(B, num_dt),
      in_specs=[
          pl.BlockSpec((1, V, Q, H), lambda b, t: (b, 0, 0, 0)),   # q_reps
          pl.BlockSpec((1, V, H, TD), lambda b, t: (b, 0, 0, t)),  # d_reps^T
          pl.BlockSpec((1, Q, 1), lambda b, t: (b, 0, 0)),         # q_tok
          pl.BlockSpec((1, 1, TD), lambda b, t: (b, 0, t)),        # d_tok
          pl.BlockSpec((1, 1, H), lambda b, t: (b, 0, 0)),         # cls
          pl.BlockSpec((KV, 100), lambda b, t: (0, 0)),            # w1 (knrm)
          pl.BlockSpec((H, 100), lambda b, t: (0, 0)),             # w1 (cls)
          pl.BlockSpec((1, 100), lambda b, t: (0, 0)),             # b1
          pl.BlockSpec((100, 10), lambda b, t: (0, 0)),            # w2
          pl.BlockSpec((1, 10), lambda b, t: (0, 0)),              # b2
          pl.BlockSpec((10, 1), lambda b, t: (0, 0)),              # w3
          pl.BlockSpec((1, 1), lambda b, t: (0, 0)),               # b3
      ],
      out_specs=pl.BlockSpec((1, 1, 1), lambda b, t: (b, 0, 0)),
      scratch_shapes=[
          pltpu.VMEM((Q, KV), jnp.float32),  # per-(kernel,view) D-sums
          pltpu.VMEM((Q, V), jnp.float32),   # per-view sum(sim) for the mask
      ],
  )

  nbytes = lambda x: int(x.size) * x.dtype.itemsize
  cost = pl.CostEstimate(
      flops=2 * B * V * Q * Dp * H + 2 * B * (KV + H) * 100,
      transcendentals=5 * B * V * Q * Dp,
      bytes_accessed=int(sum(nbytes(x) for x in
                             (q_c, d_t, qtok3, dtok3, cls3, w1k, w1c, w2, w3))
                         + B * 4),
  )

  out3 = pl.pallas_call(
      kernel,
      out_shape=jax.ShapeDtypeStruct((B, 1, 1), jnp.float32),
      grid_spec=grid_spec,
      compiler_params=pltpu.CompilerParams(
          dimension_semantics=("parallel", "arbitrary")),
      cost_estimate=cost,
  )(q_c, d_t, qtok3, dtok3, cls3, w1k, w1c, b1, w2, b2, w3, b3)
  return out3.reshape(B, 1)


def cedr_knrm_reference(q_reps, d_reps, q_tok, d_tok, cls_rep, params):
  """Pure-JAX reference mirroring the PyTorch CedrKnrmRanker post-BERT math."""
  w1, b1, w2, b2, w3, b3 = params
  q32 = q_reps.astype(jnp.float32)
  d32 = d_reps.astype(jnp.float32)
  qpad = (q_tok == PAD)[:, None, :, None]
  dpad = (d_tok == PAD)[:, None, None, :]
  raw = jnp.einsum('bvqh,bvdh->bvqd', q32, d32)
  inv_qn = jax.lax.rsqrt(jnp.sum(q32 * q32, -1, keepdims=True) + 1e-9)
  inv_dn = jax.lax.rsqrt(jnp.sum(d32 * d32, -1) + 1e-9)
  sim = raw * inv_qn * inv_dn[:, :, None, :]
  sim = jnp.where(qpad | dpad, 0.0, sim)
  feats = []
  for k in range(K):
    for v in range(V_GLOBAL := sim.shape[1]):
      kval = jnp.exp(-((sim[:, v] - MUS[k]) ** 2) * (0.5 / SIGMAS[k] ** 2))
      s = jnp.sum(kval, -1)
      mask = jnp.sum(sim[:, v], -1) != 0.0
      r = jnp.where(mask, jnp.log(s + 1e-6), 0.0)
      feats.append(jnp.sum(r, -1, keepdims=True))
  x = jnp.concatenate(feats + [cls_rep.astype(jnp.float32)], axis=-1)
  h1 = jax.nn.relu(x @ w1 + b1.reshape(1, -1))
  h2 = jax.nn.relu(h1 @ w2 + b2.reshape(1, -1))
  return h2 @ w3 + b3.reshape(1, -1)


if __name__ == "__main__":
  # Small stand-ins for the real shapes (prod: V=3 views, Q=20, H=768).
  B, V, Q, D, H = 2, 3, 16, 200, 128

  key = jax.random.PRNGKey(0)
  ks = jax.random.split(key, 8)

  q_reps = jax.random.normal(ks[0], (B, V, Q, H), jnp.float32)
  d_reps = jax.random.normal(ks[1], (B, V, D, H), jnp.float32)
  cls_rep = jax.random.normal(ks[2], (B, H), jnp.float32)

  # Token ids with -1 padding in the tail (SimmatModule padding convention).
  q_tok = jnp.where(jnp.arange(Q)[None, :] < 12,
                    jax.random.randint(ks[3], (B, Q), 5, 1000), PAD).astype(jnp.int32)
  d_tok = jnp.where(jnp.arange(D)[None, :] < 160,
                    jax.random.randint(ks[4], (B, D), 5, 1000), PAD).astype(jnp.int32)

  # Head params: fc1 Linear(K*V + H, 100), fc2 Linear(100, 10), out Linear(10, 1).
  scale = 0.02
  w1 = scale * jax.random.normal(ks[5], (K * V + H, 100), jnp.float32)
  b1 = jnp.zeros((1, 100), jnp.float32)
  w2 = scale * jax.random.normal(ks[6], (100, 10), jnp.float32)
  b2 = jnp.zeros((1, 10), jnp.float32)
  w3 = scale * jax.random.normal(ks[7], (10, 1), jnp.float32)
  b3 = jnp.zeros((1, 1), jnp.float32)
  params = (w1, b1, w2, b2, w3, b3)

  # bf16 reps (what the kernel consumes); the reference gets the same values so
  # the check isolates kernel math from input quantization.
  q_bf = q_reps.astype(jnp.bfloat16)
  d_bf = d_reps.astype(jnp.bfloat16)

  fwd = jax.jit(functools.partial(cedr_knrm_forward, d_tile=128))
  score = fwd(q_bf, d_bf, q_tok, d_tok, cls_rep, params)
  jax.block_until_ready(score)

  ref = cedr_knrm_reference(q_bf, d_bf, q_tok, d_tok, cls_rep, params)
  err = float(jnp.max(jnp.abs(score - ref)))
  assert score.shape == (B, 1)
  assert bool(jnp.all(jnp.isfinite(score)))
  assert err < 1e-2, f"max abs err vs reference: {err}"
  print("KERNEL_OK")
</pallas_src>

<mosaic_0001>
module attributes {stable_mosaic.version = 11 : i64} {
  func.func @kernel(%arg0: i32, %arg1: i32, %arg2: memref<1x3x16x128xbf16, #tpu.memory_space<vmem>>, %arg3: memref<1x3x128x128xbf16, #tpu.memory_space<vmem>>, %arg4: memref<1x16x1xi32, #tpu.memory_space<vmem>>, %arg5: memref<1x1x128xi32, #tpu.memory_space<vmem>>, %arg6: memref<1x1x128xf32, #tpu.memory_space<vmem>>, %arg7: memref<33x100xf32, #tpu.memory_space<vmem>>, %arg8: memref<128x100xf32, #tpu.memory_space<vmem>>, %arg9: memref<1x100xf32, #tpu.memory_space<vmem>>, %arg10: memref<100x10xf32, #tpu.memory_space<vmem>>, %arg11: memref<1x10xf32, #tpu.memory_space<vmem>>, %arg12: memref<10x1xf32, #tpu.memory_space<vmem>>, %arg13: memref<1x1xf32, #tpu.memory_space<vmem>>, %arg14: memref<1x1x1xf32, #tpu.memory_space<vmem>>, %arg15: memref<16x33xf32, #tpu.memory_space<vmem>>, %arg16: memref<16x3xf32, #tpu.memory_space<vmem>>) attributes {dimension_semantics = [#tpu.dimension_semantics<parallel>, #tpu.dimension_semantics<arbitrary>], iteration_bounds = array<i64: 2, 2>, scalar_prefetch = 0 : i64, scratch_operands = 2 : i64, tpu.core_type = #tpu.core_type<tc>, window_params = [{transform_indices = @transform_0, window_bounds = array<i64: 1, 3, 16, 128>}, {transform_indices = @transform_1, window_bounds = array<i64: 1, 3, 128, 128>}, {transform_indices = @transform_2, window_bounds = array<i64: 1, 16, 1>}, {transform_indices = @transform_3, window_bounds = array<i64: 1, 1, 128>}, {transform_indices = @transform_4, window_bounds = array<i64: 1, 1, 128>}, {pipeline_mode = #tpu.pipeline_mode<synchronous>, transform_indices = @transform_5, window_bounds = array<i64: 33, 100>}, {pipeline_mode = #tpu.pipeline_mode<synchronous>, transform_indices = @transform_6, window_bounds = array<i64: 128, 100>}, {pipeline_mode = #tpu.pipeline_mode<synchronous>, transform_indices = @transform_7, window_bounds = array<i64: 1, 100>}, {pipeline_mode = #tpu.pipeline_mode<synchronous>, transform_indices = @transform_8, window_bounds = array<i64: 100, 10>}, {pipeline_mode = #tpu.pipeline_mode<synchronous>, transform_indices = @transform_9, window_bounds = array<i64: 1, 10>}, {pipeline_mode = #tpu.pipeline_mode<synchronous>, transform_indices = @transform_10, window_bounds = array<i64: 10, 1>}, {pipeline_mode = #tpu.pipeline_mode<synchronous>, transform_indices = @transform_11, window_bounds = array<i64: 1, 1>}, {transform_indices = @transform_12, window_bounds = array<i64: 1, 1, 1>}]} {
    %c0_i32 = arith.constant 0 : i32
    %0 = arith.cmpi eq, %arg1, %c0_i32 : i32
    %1 = arith.extui %0 : i1 to i32
    %c0_i32_0 = arith.constant 0 : i32
    %2 = arith.cmpi ne, %1, %c0_i32_0 : i32
    scf.if %2 {
      %cst_245 = arith.constant 0.000000e+00 : f32
      %432 = vector.broadcast %cst_245 : f32 to vector<16x33xf32>
      %c0_246 = arith.constant 0 : index
      %c0_247 = arith.constant 0 : index
      %433 = vector.load %arg15[%c0_246, %c0_247] : memref<16x33xf32, #tpu.memory_space<vmem>>, vector<16x33xf32>
      tpu.vector_store %arg15[%c0_246, %c0_247], %432 {strides = array<i32>} : memref<16x33xf32, #tpu.memory_space<vmem>>, vector<16x33xf32>,
      %cst_248 = arith.constant 0.000000e+00 : f32
      %434 = vector.broadcast %cst_248 : f32 to vector<16x3xf32>
      %c0_249 = arith.constant 0 : index
      %c0_250 = arith.constant 0 : index
      %435 = vector.load %arg16[%c0_249, %c0_250] : memref<16x3xf32, #tpu.memory_space<vmem>>, vector<16x3xf32>
      tpu.vector_store %arg16[%c0_249, %c0_250], %434 {strides = array<i32>} : memref<16x3xf32, #tpu.memory_space<vmem>>, vector<16x3xf32>,
    } else {
    }
    %c0 = arith.constant 0 : index
    %c0_1 = arith.constant 0 : index
    %c0_2 = arith.constant 0 : index
    %3 = vector.load %arg4[%c0, %c0_1, %c0_2] : memref<1x16x1xi32, #tpu.memory_space<vmem>>, vector<1x16x1xi32>
    %4 = vector.shape_cast %3 : vector<1x16x1xi32> to vector<16x1xi32>
    %c-1_i32 = arith.constant -1 : i32
    %5 = vector.broadcast %c-1_i32 : i32 to vector<16x1xi32>
    %6 = arith.cmpi eq, %4, %5 : vector<16x1xi32>
    %c0_3 = arith.constant 0 : index
    %c0_4 = arith.constant 0 : index
    %c0_5 = arith.constant 0 : index
    %7 = vector.load %arg5[%c0_3, %c0_4, %c0_5] : memref<1x1x128xi32, #tpu.memory_space<vmem>>, vector<1x1x128xi32>
    %8 = vector.shape_cast %7 : vector<1x1x128xi32> to vector<1x128xi32>
    %c-1_i32_6 = arith.constant -1 : i32
    %9 = vector.broadcast %c-1_i32_6 : i32 to vector<1x128xi32>
    %10 = arith.cmpi eq, %8, %9 : vector<1x128xi32>
    %11 = vector.shape_cast %6 : vector<16x1xi1> to vector<16x1xi1>
    %12 = vector.broadcast %11 : vector<16x1xi1> to vector<16x128xi1>
    %13 = vector.shape_cast %10 : vector<1x128xi1> to vector<1x128xi1>
    %14 = vector.broadcast %13 : vector<1x128xi1> to vector<16x128xi1>
    %15 = arith.ori %12, %14 : vector<16x128xi1>
    %c128_i32 = arith.constant 128 : i32
    %16 = arith.muli %arg1, %c128_i32 : i32
    %17 = tpu.iota {dimensions = array<i32: 1>} : vector<1x128xi32>
    %18 = vector.broadcast %16 : i32 to vector<1x128xi32>
    %19 = arith.addi %18, %17 : vector<1x128xi32>
    %c200_i32 = arith.constant 200 : i32
    %20 = vector.broadcast %c200_i32 : i32 to vector<1x128xi32>
    %21 = arith.cmpi slt, %19, %20 : vector<1x128xi32>
    %22 = vector.shape_cast %21 : vector<1x128xi1> to vector<1x128xi1>
    %23 = vector.broadcast %22 : vector<1x128xi1> to vector<16x128xi1>
    %c0_7 = arith.constant 0 : index
    %c0_8 = arith.constant 0 : index
    %c0_9 = arith.constant 0 : index
    %c0_10 = arith.constant 0 : index
    %24 = vector.load %arg2[%c0_7, %c0_8, %c0_9, %c0_10] : memref<1x3x16x128xbf16, #tpu.memory_space<vmem>>, vector<1x1x16x128xbf16>
    %25 = vector.shape_cast %24 : vector<1x1x16x128xbf16> to vector<16x128xbf16>
    %c0_11 = arith.constant 0 : index
    %c0_12 = arith.constant 0 : index
    %c0_13 = arith.constant 0 : index
    %c0_14 = arith.constant 0 : index
    %26 = vector.load %arg3[%c0_11, %c0_12, %c0_13, %c0_14] : memref<1x3x128x128xbf16, #tpu.memory_space<vmem>>, vector<1x1x128x128xbf16>
    %27 = vector.shape_cast %26 : vector<1x1x128x128xbf16> to vector<128x128xbf16>
    %cst = arith.constant dense<0.000000e+00> : vector<16x128xf32>
    %28 = tpu.matmul %25, %27, %cst {dimension_numbers = #tpu.dot_dimension_numbers<[1], [0], [0], [1], [0, 0, 1, 1], [], []>} : vector<16x128xbf16>, vector<128x128xbf16>, vector<16x128xf32> -> vector<16x128xf32>
    %29 = arith.extf %25 : vector<16x128xbf16> to vector<16x128xf32>
    %30 = arith.extf %27 : vector<128x128xbf16> to vector<128x128xf32>
    %31 = arith.mulf %29, %29 : vector<16x128xf32>
    %cst_15 = arith.constant dense<0.000000e+00> : vector<16xf32>
    %32 = vector.multi_reduction <add>, %31, %cst_15 [1] : vector<16x128xf32> to vector<16xf32>
    %33 = vector.shape_cast %32 : vector<16xf32> to vector<16x1xf32>
    %cst_16 = arith.constant 9.99999971E-10 : f32
    %34 = vector.broadcast %cst_16 : f32 to vector<16x1xf32>
    %35 = arith.addf %33, %34 : vector<16x1xf32>
    %36 = math.rsqrt %35 : vector<16x1xf32>
    %37 = arith.mulf %30, %30 : vector<128x128xf32>
    %cst_17 = arith.constant dense<0.000000e+00> : vector<128xf32>
    %38 = vector.multi_reduction <add>, %37, %cst_17 [0] : vector<128x128xf32> to vector<128xf32>
    %39 = vector.shape_cast %38 : vector<128xf32> to vector<1x128xf32>
    %cst_18 = arith.constant 9.99999971E-10 : f32
    %40 = vector.broadcast %cst_18 : f32 to vector<1x128xf32>
    %41 = arith.addf %39, %40 : vector<1x128xf32>
    %42 = math.rsqrt %41 : vector<1x128xf32>
    %43 = vector.broadcast %36 : vector<16x1xf32> to vector<16x128xf32>
    %44 = arith.mulf %28, %43 : vector<16x128xf32>
    %45 = vector.broadcast %42 : vector<1x128xf32> to vector<16x128xf32>
    %46 = arith.mulf %44, %45 : vector<16x128xf32>
    %cst_19 = arith.constant 0.000000e+00 : f32
    %47 = vector.broadcast %cst_19 : f32 to vector<16x128xf32>
    %48 = arith.select %15, %47, %46 : vector<16x128xi1>, vector<16x128xf32>
    %c0_20 = arith.constant 0 : index
    %c0_21 = arith.constant 0 : index
    %49 = vector.load %arg16[%c0_20, %c0_21] : memref<16x3xf32, #tpu.memory_space<vmem>>, vector<16x1xf32>
    %cst_22 = arith.constant dense<0.000000e+00> : vector<16xf32>
    %50 = vector.multi_reduction <add>, %48, %cst_22 [1] : vector<16x128xf32> to vector<16xf32>
    %51 = vector.shape_cast %50 : vector<16xf32> to vector<16x1xf32>
    %52 = arith.addf %49, %51 : vector<16x1xf32>
    %c0_23 = arith.constant 0 : index
    %c0_24 = arith.constant 0 : index
    %53 = vector.load %arg16[%c0_23, %c0_24] : memref<16x3xf32, #tpu.memory_space<vmem>>, vector<16x1xf32>
    tpu.vector_store %arg16[%c0_23, %c0_24], %52 {strides = array<i32>} : memref<16x3xf32, #tpu.memory_space<vmem>>, vector<16x1xf32>,
    %cst_25 = arith.constant 1.000000e+01 : f32
    %54 = vector.broadcast %cst_25 : f32 to vector<16x128xf32>
    %55 = arith.mulf %54, %48 : vector<16x128xf32>
    %56 = math.exp %55 : vector<16x128xf32>
    %cst_26 = arith.constant -1.000000e+01 : f32
    %57 = vector.broadcast %cst_26 : f32 to vector<16x128xf32>
    %58 = arith.mulf %57, %48 : vector<16x128xf32>
    %59 = math.exp %58 : vector<16x128xf32>
    %cst_27 = arith.constant -5.000000e+01 : f32
    %60 = vector.broadcast %cst_27 : f32 to vector<16x128xf32>
    %61 = arith.mulf %60, %48 : vector<16x128xf32>
    %62 = arith.mulf %61, %48 : vector<16x128xf32>
    %63 = math.exp %62 : vector<16x128xf32>
    %cst_28 = arith.constant 0.000000e+00 : f32
    %64 = vector.broadcast %cst_28 : f32 to vector<16x128xf32>
    %65 = arith.select %23, %63, %64 : vector<16x128xi1>, vector<16x128xf32>
    %66 = arith.mulf %56, %56 : vector<16x128xf32>
    %67 = arith.mulf %59, %59 : vector<16x128xf32>
    %68 = arith.mulf %65, %56 : vector<16x128xf32>
    %69 = arith.mulf %65, %59 : vector<16x128xf32>
    %c0_29 = arith.constant 0 : index
    %c15 = arith.constant 15 : index
    %70 = vector.load %arg15[%c0_29, %c15] : memref<16x33xf32, #tpu.memory_space<vmem>>, vector<16x1xf32>
    %cst_30 = arith.constant dense<0.000000e+00> : vector<16xf32>
    %71 = vector.multi_reduction <add>, %68, %cst_30 [1] : vector<16x128xf32> to vector<16xf32>
    %72 = vector.shape_cast %71 : vector<16xf32> to vector<16x1xf32>
    %cst_31 = arith.constant 0.606530666 : f32
    %73 = vector.broadcast %cst_31 : f32 to vector<16x1xf32>
    %74 = arith.mulf %73, %72 : vector<16x1xf32>
    %75 = arith.addf %70, %74 : vector<16x1xf32>
    %c0_32 = arith.constant 0 : index
    %c15_33 = arith.constant 15 : index
    %76 = vector.load %arg15[%c0_32, %c15_33] : memref<16x33xf32, #tpu.memory_space<vmem>>, vector<16x1xf32>
    tpu.vector_store %arg15[%c0_32, %c15_33], %75 {strides = array<i32>} : memref<16x33xf32, #tpu.memory_space<vmem>>, vector<16x1xf32>,
    %c0_34 = arith.constant 0 : index
    %c12 = arith.constant 12 : index
    %77 = vector.load %arg15[%c0_34, %c12] : memref<16x33xf32, #tpu.memory_space<vmem>>, vector<16x1xf32>
    %cst_35 = arith.constant dense<0.000000e+00> : vector<16xf32>
    %78 = vector.multi_reduction <add>, %69, %cst_35 [1] : vector<16x128xf32> to vector<16xf32>
    %79 = vector.shape_cast %78 : vector<16xf32> to vector<16x1xf32>
    %cst_36 = arith.constant 0.606530666 : f32
    %80 = vector.broadcast %cst_36 : f32 to vector<16x1xf32>
    %81 = arith.mulf %80, %79 : vector<16x1xf32>
    %82 = arith.addf %77, %81 : vector<16x1xf32>
    %c0_37 = arith.constant 0 : index
    %c12_38 = arith.constant 12 : index
    %83 = vector.load %arg15[%c0_37, %c12_38] : memref<16x33xf32, #tpu.memory_space<vmem>>, vector<16x1xf32>
    tpu.vector_store %arg15[%c0_37, %c12_38], %82 {strides = array<i32>} : memref<16x33xf32, #tpu.memory_space<vmem>>, vector<16x1xf32>,
    %84 = arith.mulf %68, %66 : vector<16x128xf32>
    %85 = arith.mulf %69, %67 : vector<16x128xf32>
    %c0_39 = arith.constant 0 : index
    %c18 = arith.constant 18 : index
    %86 = vector.load %arg15[%c0_39, %c18] : memref<16x33xf32, #tpu.memory_space<vmem>>, vector<16x1xf32>
    %cst_40 = arith.constant dense<0.000000e+00> : vector<16xf32>
    %87 = vector.multi_reduction <add>, %84, %cst_40 [1] : vector<16x128xf32> to vector<16xf32>
    %88 = vector.shape_cast %87 : vector<16xf32> to vector<16x1xf32>
    %cst_41 = arith.constant 0.0111089963 : f32
    %89 = vector.broadcast %cst_41 : f32 to vector<16x1xf32>
    %90 = arith.mulf %89, %88 : vector<16x1xf32>
    %91 = arith.addf %86, %90 : vector<16x1xf32>
    %c0_42 = arith.constant 0 : index
    %c18_43 = arith.constant 18 : index
    %92 = vector.load %arg15[%c0_42, %c18_43] : memref<16x33xf32, #tpu.memory_space<vmem>>, vector<16x1xf32>
    tpu.vector_store %arg15[%c0_42, %c18_43], %91 {strides = array<i32>} : memref<16x33xf32, #tpu.memory_space<vmem>>, vector<16x1xf32>,
    %c0_44 = arith.constant 0 : index
    %c9 = arith.constant 9 : index
    %93 = vector.load %arg15[%c0_44, %c9] : memref<16x33xf32, #tpu.memory_space<vmem>>, vector<16x1xf32>
    %cst_45 = arith.constant dense<0.000000e+00> : vector<16xf32>
    %94 = vector.multi_reduction <add>, %85, %cst_45 [1] : vector<16x128xf32> to vector<16xf32>
    %95 = vector.shape_cast %94 : vector<16xf32> to vector<16x1xf32>
    %cst_46 = arith.constant 0.0111089963 : f32
    %96 = vector.broadcast %cst_46 : f32 to vector<16x1xf32>
    %97 = arith.mulf %96, %95 : vector<16x1xf32>
    %98 = arith.addf %93, %97 : vector<16x1xf32>
    %c0_47 = arith.constant 0 : index
    %c9_48 = arith.constant 9 : index
    %99 = vector.load %arg15[%c0_47, %c9_48] : memref<16x33xf32, #tpu.memory_space<vmem>>, vector<16x1xf32>
    tpu.vector_store %arg15[%c0_47, %c9_48], %98 {strides = array<i32>} : memref<16x33xf32, #tpu.memory_space<vmem>>, vector<16x1xf32>,
    %100 = arith.mulf %84, %66 : vector<16x128xf32>
    %101 = arith.mulf %85, %67 : vector<16x128xf32>
    %c0_49 = arith.constant 0 : index
    %c21 = arith.constant 21 : index
    %102 = vector.load %arg15[%c0_49, %c21] : memref<16x33xf32, #tpu.memory_space<vmem>>, vector<16x1xf32>
    %cst_50 = arith.constant dense<0.000000e+00> : vector<16xf32>
    %103 = vector.multi_reduction <add>, %100, %cst_50 [1] : vector<16x128xf32> to vector<16xf32>
    %104 = vector.shape_cast %103 : vector<16xf32> to vector<16x1xf32>
    %cst_51 = arith.constant 3.72665318E-6 : f32
    %105 = vector.broadcast %cst_51 : f32 to vector<16x1xf32>
    %106 = arith.mulf %105, %104 : vector<16x1xf32>
    %107 = arith.addf %102, %106 : vector<16x1xf32>
    %c0_52 = arith.constant 0 : index
    %c21_53 = arith.constant 21 : index
    %108 = vector.load %arg15[%c0_52, %c21_53] : memref<16x33xf32, #tpu.memory_space<vmem>>, vector<16x1xf32>
    tpu.vector_store %arg15[%c0_52, %c21_53], %107 {strides = array<i32>} : memref<16x33xf32, #tpu.memory_space<vmem>>, vector<16x1xf32>,
    %c0_54 = arith.constant 0 : index
    %c6 = arith.constant 6 : index
    %109 = vector.load %arg15[%c0_54, %c6] : memref<16x33xf32, #tpu.memory_space<vmem>>, vector<16x1xf32>
    %cst_55 = arith.constant dense<0.000000e+00> : vector<16xf32>
    %110 = vector.multi_reduction <add>, %101, %cst_55 [1] : vector<16x128xf32> to vector<16xf32>
    %111 = vector.shape_cast %110 : vector<16xf32> to vector<16x1xf32>
    %cst_56 = arith.constant 3.72665318E-6 : f32
    %112 = vector.broadcast %cst_56 : f32 to vector<16x1xf32>
    %113 = arith.mulf %112, %111 : vector<16x1xf32>
    %114 = arith.addf %109, %113 : vector<16x1xf32>
    %c0_57 = arith.constant 0 : index
    %c6_58 = arith.constant 6 : index
    %115 = vector.load %arg15[%c0_57, %c6_58] : memref<16x33xf32, #tpu.memory_space<vmem>>, vector<16x1xf32>
    tpu.vector_store %arg15[%c0_57, %c6_58], %114 {strides = array<i32>} : memref<16x33xf32, #tpu.memory_space<vmem>>, vector<16x1xf32>,
    %116 = arith.mulf %100, %66 : vector<16x128xf32>
    %117 = arith.mulf %101, %67 : vector<16x128xf32>
    %c0_59 = arith.constant 0 : index
    %c24 = arith.constant 24 : index
    %118 = vector.load %arg15[%c0_59, %c24] : memref<16x33xf32, #tpu.memory_space<vmem>>, vector<16x1xf32>
    %cst_60 = arith.constant dense<0.000000e+00> : vector<16xf32>
    %119 = vector.multi_reduction <add>, %116, %cst_60 [1] : vector<16x128xf32> to vector<16xf32>
    %120 = vector.shape_cast %119 : vector<16xf32> to vector<16x1xf32>
    %cst_61 = arith.constant 2.28973489E-11 : f32
    %121 = vector.broadcast %cst_61 : f32 to vector<16x1xf32>
    %122 = arith.mulf %121, %120 : vector<16x1xf32>
    %123 = arith.addf %118, %122 : vector<16x1xf32>
    %c0_62 = arith.constant 0 : index
    %c24_63 = arith.constant 24 : index
    %124 = vector.load %arg15[%c0_62, %c24_63] : memref<16x33xf32, #tpu.memory_space<vmem>>, vector<16x1xf32>
    tpu.vector_store %arg15[%c0_62, %c24_63], %123 {strides = array<i32>} : memref<16x33xf32, #tpu.memory_space<vmem>>, vector<16x1xf32>,
    %c0_64 = arith.constant 0 : index
    %c3 = arith.constant 3 : index
    %125 = vector.load %arg15[%c0_64, %c3] : memref<16x33xf32, #tpu.memory_space<vmem>>, vector<16x1xf32>
    %cst_65 = arith.constant dense<0.000000e+00> : vector<16xf32>
    %126 = vector.multi_reduction <add>, %117, %cst_65 [1] : vector<16x128xf32> to vector<16xf32>
    %127 = vector.shape_cast %126 : vector<16xf32> to vector<16x1xf32>
    %cst_66 = arith.constant 2.28973489E-11 : f32
    %128 = vector.broadcast %cst_66 : f32 to vector<16x1xf32>
    %129 = arith.mulf %128, %127 : vector<16x1xf32>
    %130 = arith.addf %125, %129 : vector<16x1xf32>
    %c0_67 = arith.constant 0 : index
    %c3_68 = arith.constant 3 : index
    %131 = vector.load %arg15[%c0_67, %c3_68] : memref<16x33xf32, #tpu.memory_space<vmem>>, vector<16x1xf32>
    tpu.vector_store %arg15[%c0_67, %c3_68], %130 {strides = array<i32>} : memref<16x33xf32, #tpu.memory_space<vmem>>, vector<16x1xf32>,
    %132 = arith.mulf %116, %66 : vector<16x128xf32>
    %133 = arith.mulf %117, %67 : vector<16x128xf32>
    %c0_69 = arith.constant 0 : index
    %c27 = arith.constant 27 : index
    %134 = vector.load %arg15[%c0_69, %c27] : memref<16x33xf32, #tpu.memory_space<vmem>>, vector<16x1xf32>
    %cst_70 = arith.constant dense<0.000000e+00> : vector<16xf32>
    %135 = vector.multi_reduction <add>, %132, %cst_70 [1] : vector<16x128xf32> to vector<16xf32>
    %136 = vector.shape_cast %135 : vector<16xf32> to vector<16x1xf32>
    %cst_71 = arith.constant 2.57675715E-18 : f32
    %137 = vector.broadcast %cst_71 : f32 to vector<16x1xf32>
    %138 = arith.mulf %137, %136 : vector<16x1xf32>
    %139 = arith.addf %134, %138 : vector<16x1xf32>
    %c0_72 = arith.constant 0 : index
    %c27_73 = arith.constant 27 : index
    %140 = vector.load %arg15[%c0_72, %c27_73] : memref<16x33xf32, #tpu.memory_space<vmem>>, vector<16x1xf32>
    tpu.vector_store %arg15[%c0_72, %c27_73], %139 {strides = array<i32>} : memref<16x33xf32, #tpu.memory_space<vmem>>, vector<16x1xf32>,
    %c0_74 = arith.constant 0 : index
    %c0_75 = arith.constant 0 : index
    %141 = vector.load %arg15[%c0_74, %c0_75] : memref<16x33xf32, #tpu.memory_space<vmem>>, vector<16x1xf32>
    %cst_76 = arith.constant dense<0.000000e+00> : vector<16xf32>
    %142 = vector.multi_reduction <add>, %133, %cst_76 [1] : vector<16x128xf32> to vector<16xf32>
    %143 = vector.shape_cast %142 : vector<16xf32> to vector<16x1xf32>
    %cst_77 = arith.constant 2.57675715E-18 : f32
    %144 = vector.broadcast %cst_77 : f32 to vector<16x1xf32>
    %145 = arith.mulf %144, %143 : vector<16x1xf32>
    %146 = arith.addf %141, %145 : vector<16x1xf32>
    %c0_78 = arith.constant 0 : index
    %c0_79 = arith.constant 0 : index
    %147 = vector.load %arg15[%c0_78, %c0_79] : memref<16x33xf32, #tpu.memory_space<vmem>>, vector<16x1xf32>
    tpu.vector_store %arg15[%c0_78, %c0_79], %146 {strides = array<i32>} : memref<16x33xf32, #tpu.memory_space<vmem>>, vector<16x1xf32>,
    %cst_80 = arith.constant 1.000000e+00 : f32
    %148 = vector.broadcast %cst_80 : f32 to vector<16x128xf32>
    %149 = arith.subf %48, %148 : vector<16x128xf32>
    %cst_81 = arith.constant -5.000000e+05 : f32
    %150 = vector.broadcast %cst_81 : f32 to vector<16x128xf32>
    %151 = arith.mulf %150, %149 : vector<16x128xf32>
    %152 = arith.mulf %151, %149 : vector<16x128xf32>
    %153 = math.exp %152 : vector<16x128xf32>
    %c0_82 = arith.constant 0 : index
    %c30 = arith.constant 30 : index
    %154 = vector.load %arg15[%c0_82, %c30] : memref<16x33xf32, #tpu.memory_space<vmem>>, vector<16x1xf32>
    %cst_83 = arith.constant dense<0.000000e+00> : vector<16xf32>
    %155 = vector.multi_reduction <add>, %153, %cst_83 [1] : vector<16x128xf32> to vector<16xf32>
    %156 = vector.shape_cast %155 : vector<16xf32> to vector<16x1xf32>
    %157 = arith.addf %154, %156 : vector<16x1xf32>
    %c0_84 = arith.constant 0 : index
    %c30_85 = arith.constant 30 : index
    %158 = vector.load %arg15[%c0_84, %c30_85] : memref<16x33xf32, #tpu.memory_space<vmem>>, vector<16x1xf32>
    tpu.vector_store %arg15[%c0_84, %c30_85], %157 {strides = array<i32>} : memref<16x33xf32, #tpu.memory_space<vmem>>, vector<16x1xf32>,
    %c0_86 = arith.constant 0 : index
    %c1 = arith.constant 1 : index
    %c0_87 = arith.constant 0 : index
    %c0_88 = arith.constant 0 : index
    %159 = vector.load %arg2[%c0_86, %c1, %c0_87, %c0_88] : memref<1x3x16x128xbf16, #tpu.memory_space<vmem>>, vector<1x1x16x128xbf16>
    %160 = vector.shape_cast %159 : vector<1x1x16x128xbf16> to vector<16x128xbf16>
    %c0_89 = arith.constant 0 : index
    %c1_90 = arith.constant 1 : index
    %c0_91 = arith.constant 0 : index
    %c0_92 = arith.constant 0 : index
    %161 = vector.load %arg3[%c0_89, %c1_90, %c0_91, %c0_92] : memref<1x3x128x128xbf16, #tpu.memory_space<vmem>>, vector<1x1x128x128xbf16>
    %162 = vector.shape_cast %161 : vector<1x1x128x128xbf16> to vector<128x128xbf16>
    %cst_93 = arith.constant dense<0.000000e+00> : vector<16x128xf32>
    %163 = tpu.matmul %160, %162, %cst_93 {dimension_numbers = #tpu.dot_dimension_numbers<[1], [0], [0], [1], [0, 0, 1, 1], [], []>} : vector<16x128xbf16>, vector<128x128xbf16>, vector<16x128xf32> -> vector<16x128xf32>
    %164 = arith.extf %160 : vector<16x128xbf16> to vector<16x128xf32>
    %165 = arith.extf %162 : vector<128x128xbf16> to vector<128x128xf32>
    %166 = arith.mulf %164, %164 : vector<16x128xf32>
    %cst_94 = arith.constant dense<0.000000e+00> : vector<16xf32>
    %167 = vector.multi_reduction <add>, %166, %cst_94 [1] : vector<16x128xf32> to vector<16xf32>
    %168 = vector.shape_cast %167 : vector<16xf32> to vector<16x1xf32>
    %cst_95 = arith.constant 9.99999971E-10 : f32
    %169 = vector.broadcast %cst_95 : f32 to vector<16x1xf32>
    %170 = arith.addf %168, %169 : vector<16x1xf32>
    %171 = math.rsqrt %170 : vector<16x1xf32>
    %172 = arith.mulf %165, %165 : vector<128x128xf32>
    %cst_96 = arith.constant dense<0.000000e+00> : vector<128xf32>
    %173 = vector.multi_reduction <add>, %172, %cst_96 [0] : vector<128x128xf32> to vector<128xf32>
    %174 = vector.shape_cast %173 : vector<128xf32> to vector<1x128xf32>
    %cst_97 = arith.constant 9.99999971E-10 : f32
    %175 = vector.broadcast %cst_97 : f32 to vector<1x128xf32>
    %176 = arith.addf %174, %175 : vector<1x128xf32>
    %177 = math.rsqrt %176 : vector<1x128xf32>
    %178 = vector.broadcast %171 : vector<16x1xf32> to vector<16x128xf32>
    %179 = arith.mulf %163, %178 : vector<16x128xf32>
    %180 = vector.broadcast %177 : vector<1x128xf32> to vector<16x128xf32>
    %181 = arith.mulf %179, %180 : vector<16x128xf32>
    %cst_98 = arith.constant 0.000000e+00 : f32
    %182 = vector.broadcast %cst_98 : f32 to vector<16x128xf32>
    %183 = arith.select %15, %182, %181 : vector<16x128xi1>, vector<16x128xf32>
    %c0_99 = arith.constant 0 : index
    %c1_100 = arith.constant 1 : index
    %184 = vector.load %arg16[%c0_99, %c1_100] : memref<16x3xf32, #tpu.memory_space<vmem>>, vector<16x1xf32>
    %cst_101 = arith.constant dense<0.000000e+00> : vector<16xf32>
    %185 = vector.multi_reduction <add>, %183, %cst_101 [1] : vector<16x128xf32> to vector<16xf32>
    %186 = vector.shape_cast %185 : vector<16xf32> to vector<16x1xf32>
    %187 = arith.addf %184, %186 : vector<16x1xf32>
    %c0_102 = arith.constant 0 : index
    %c1_103 = arith.constant 1 : index
    %188 = vector.load %arg16[%c0_102, %c1_103] : memref<16x3xf32, #tpu.memory_space<vmem>>, vector<16x1xf32>
    tpu.vector_store %arg16[%c0_102, %c1_103], %187 {strides = array<i32>} : memref<16x3xf32, #tpu.memory_space<vmem>>, vector<16x1xf32>,
    %cst_104 = arith.constant 1.000000e+01 : f32
    %189 = vector.broadcast %cst_104 : f32 to vector<16x128xf32>
    %190 = arith.mulf %189, %183 : vector<16x128xf32>
    %191 = math.exp %190 : vector<16x128xf32>
    %cst_105 = arith.constant -1.000000e+01 : f32
    %192 = vector.broadcast %cst_105 : f32 to vector<16x128xf32>
    %193 = arith.mulf %192, %183 : vector<16x128xf32>
    %194 = math.exp %193 : vector<16x128xf32>
    %cst_106 = arith.constant -5.000000e+01 : f32
    %195 = vector.broadcast %cst_106 : f32 to vector<16x128xf32>
    %196 = arith.mulf %195, %183 : vector<16x128xf32>
    %197 = arith.mulf %196, %183 : vector<16x128xf32>
    %198 = math.exp %197 : vector<16x128xf32>
    %cst_107 = arith.constant 0.000000e+00 : f32
    %199 = vector.broadcast %cst_107 : f32 to vector<16x128xf32>
    %200 = arith.select %23, %198, %199 : vector<16x128xi1>, vector<16x128xf32>
    %201 = arith.mulf %191, %191 : vector<16x128xf32>
    %202 = arith.mulf %194, %194 : vector<16x128xf32>
    %203 = arith.mulf %200, %191 : vector<16x128xf32>
    %204 = arith.mulf %200, %194 : vector<16x128xf32>
    %c0_108 = arith.constant 0 : index
    %c16 = arith.constant 16 : index
    %205 = vector.load %arg15[%c0_108, %c16] : memref<16x33xf32, #tpu.memory_space<vmem>>, vector<16x1xf32>
    %cst_109 = arith.constant dense<0.000000e+00> : vector<16xf32>
    %206 = vector.multi_reduction <add>, %203, %cst_109 [1] : vector<16x128xf32> to vector<16xf32>
    %207 = vector.shape_cast %206 : vector<16xf32> to vector<16x1xf32>
    %cst_110 = arith.constant 0.606530666 : f32
    %208 = vector.broadcast %cst_110 : f32 to vector<16x1xf32>
    %209 = arith.mulf %208, %207 : vector<16x1xf32>
    %210 = arith.addf %205, %209 : vector<16x1xf32>
    %c0_111 = arith.constant 0 : index
    %c16_112 = arith.constant 16 : index
    %211 = vector.load %arg15[%c0_111, %c16_112] : memref<16x33xf32, #tpu.memory_space<vmem>>, vector<16x1xf32>
    tpu.vector_store %arg15[%c0_111, %c16_112], %210 {strides = array<i32>} : memref<16x33xf32, #tpu.memory_space<vmem>>, vector<16x1xf32>,
    %c0_113 = arith.constant 0 : index
    %c13 = arith.constant 13 : index
    %212 = vector.load %arg15[%c0_113, %c13] : memref<16x33xf32, #tpu.memory_space<vmem>>, vector<16x1xf32>
    %cst_114 = arith.constant dense<0.000000e+00> : vector<16xf32>
    %213 = vector.multi_reduction <add>, %204, %cst_114 [1] : vector<16x128xf32> to vector<16xf32>
    %214 = vector.shape_cast %213 : vector<16xf32> to vector<16x1xf32>
    %cst_115 = arith.constant 0.606530666 : f32
    %215 = vector.broadcast %cst_115 : f32 to vector<16x1xf32>
    %216 = arith.mulf %215, %214 : vector<16x1xf32>
    %217 = arith.addf %212, %216 : vector<16x1xf32>
    %c0_116 = arith.constant 0 : index
    %c13_117 = arith.constant 13 : index
    %218 = vector.load %arg15[%c0_116, %c13_117] : memref<16x33xf32, #tpu.memory_space<vmem>>, vector<16x1xf32>
    tpu.vector_store %arg15[%c0_116, %c13_117], %217 {strides = array<i32>} : memref<16x33xf32, #tpu.memory_space<vmem>>, vector<16x1xf32>,
    %219 = arith.mulf %203, %201 : vector<16x128xf32>
    %220 = arith.mulf %204, %202 : vector<16x128xf32>
    %c0_118 = arith.constant 0 : index
    %c19 = arith.constant 19 : index
    %221 = vector.load %arg15[%c0_118, %c19] : memref<16x33xf32, #tpu.memory_space<vmem>>, vector<16x1xf32>
    %cst_119 = arith.constant dense<0.000000e+00> : vector<16xf32>
    %222 = vector.multi_reduction <add>, %219, %cst_119 [1] : vector<16x128xf32> to vector<16xf32>
    %223 = vector.shape_cast %222 : vector<16xf32> to vector<16x1xf32>
    %cst_120 = arith.constant 0.0111089963 : f32
    %224 = vector.broadcast %cst_120 : f32 to vector<16x1xf32>
    %225 = arith.mulf %224, %223 : vector<16x1xf32>
    %226 = arith.addf %221, %225 : vector<16x1xf32>
    %c0_121 = arith.constant 0 : index
    %c19_122 = arith.constant 19 : index
    %227 = vector.load %arg15[%c0_121, %c19_122] : memref<16x33xf32, #tpu.memory_space<vmem>>, vector<16x1xf32>
    tpu.vector_store %arg15[%c0_121, %c19_122], %226 {strides = array<i32>} : memref<16x33xf32, #tpu.memory_space<vmem>>, vector<16x1xf32>,
    %c0_123 = arith.constant 0 : index
    %c10 = arith.constant 10 : index
    %228 = vector.load %arg15[%c0_123, %c10] : memref<16x33xf32, #tpu.memory_space<vmem>>, vector<16x1xf32>
    %cst_124 = arith.constant dense<0.000000e+00> : vector<16xf32>
    %229 = vector.multi_reduction <add>, %220, %cst_124 [1] : vector<16x128xf32> to vector<16xf32>
    %230 = vector.shape_cast %229 : vector<16xf32> to vector<16x1xf32>
    %cst_125 = arith.constant 0.0111089963 : f32
    %231 = vector.broadcast %cst_125 : f32 to vector<16x1xf32>
    %232 = arith.mulf %231, %230 : vector<16x1xf32>
    %233 = arith.addf %228, %232 : vector<16x1xf32>
    %c0_126 = arith.constant 0 : index
    %c10_127 = arith.constant 10 : index
    %234 = vector.load %arg15[%c0_126, %c10_127] : memref<16x33xf32, #tpu.memory_space<vmem>>, vector<16x1xf32>
    tpu.vector_store %arg15[%c0_126, %c10_127], %233 {strides = array<i32>} : memref<16x33xf32, #tpu.memory_space<vmem>>, vector<16x1xf32>,
    %235 = arith.mulf %219, %201 : vector<16x128xf32>
    %236 = arith.mulf %220, %202 : vector<16x128xf32>
    %c0_128 = arith.constant 0 : index
    %c22 = arith.constant 22 : index
    %237 = vector.load %arg15[%c0_128, %c22] : memref<16x33xf32, #tpu.memory_space<vmem>>, vector<16x1xf32>
    %cst_129 = arith.constant dense<0.000000e+00> : vector<16xf32>
    %238 = vector.multi_reduction <add>, %235, %cst_129 [1] : vector<16x128xf32> to vector<16xf32>
    %239 = vector.shape_cast %238 : vector<16xf32> to vector<16x1xf32>
    %cst_130 = arith.constant 3.72665318E-6 : f32
    %240 = vector.broadcast %cst_130 : f32 to vector<16x1xf32>
    %241 = arith.mulf %240, %239 : vector<16x1xf32>
    %242 = arith.addf %237, %241 : vector<16x1xf32>
    %c0_131 = arith.constant 0 : index
    %c22_132 = arith.constant 22 : index
    %243 = vector.load %arg15[%c0_131, %c22_132] : memref<16x33xf32, #tpu.memory_space<vmem>>, vector<16x1xf32>
    tpu.vector_store %arg15[%c0_131, %c22_132], %242 {strides = array<i32>} : memref<16x33xf32, #tpu.memory_space<vmem>>, vector<16x1xf32>,
    %c0_133 = arith.constant 0 : index
    %c7 = arith.constant 7 : index
    %244 = vector.load %arg15[%c0_133, %c7] : memref<16x33xf32, #tpu.memory_space<vmem>>, vector<16x1xf32>
    %cst_134 = arith.constant dense<0.000000e+00> : vector<16xf32>
    %245 = vector.multi_reduction <add>, %236, %cst_134 [1] : vector<16x128xf32> to vector<16xf32>
    %246 = vector.shape_cast %245 : vector<16xf32> to vector<16x1xf32>
    %cst_135 = arith.constant 3.72665318E-6 : f32
    %247 = vector.broadcast %cst_135 : f32 to vector<16x1xf32>
    %248 = arith.mulf %247, %246 : vector<16x1xf32>
    %249 = arith.addf %244, %248 : vector<16x1xf32>
    %c0_136 = arith.constant 0 : index
    %c7_137 = arith.constant 7 : index
    %250 = vector.load %arg15[%c0_136, %c7_137] : memref<16x33xf32, #tpu.memory_space<vmem>>, vector<16x1xf32>
    tpu.vector_store %arg15[%c0_136, %c7_137], %249 {strides = array<i32>} : memref<16x33xf32, #tpu.memory_space<vmem>>, vector<16x1xf32>,
    %251 = arith.mulf %235, %201 : vector<16x128xf32>
    %252 = arith.mulf %236, %202 : vector<16x128xf32>
    %c0_138 = arith.constant 0 : index
    %c25 = arith.constant 25 : index
    %253 = vector.load %arg15[%c0_138, %c25] : memref<16x33xf32, #tpu.memory_space<vmem>>, vector<16x1xf32>
    %cst_139 = arith.constant dense<0.000000e+00> : vector<16xf32>
    %254 = vector.multi_reduction <add>, %251, %cst_139 [1] : vector<16x128xf32> to vector<16xf32>
    %255 = vector.shape_cast %254 : vector<16xf32> to vector<16x1xf32>
    %cst_140 = arith.constant 2.28973489E-11 : f32
    %256 = vector.broadcast %cst_140 : f32 to vector<16x1xf32>
    %257 = arith.mulf %256, %255 : vector<16x1xf32>
    %258 = arith.addf %253, %257 : vector<16x1xf32>
    %c0_141 = arith.constant 0 : index
    %c25_142 = arith.constant 25 : index
    %259 = vector.load %arg15[%c0_141, %c25_142] : memref<16x33xf32, #tpu.memory_space<vmem>>, vector<16x1xf32>
    tpu.vector_store %arg15[%c0_141, %c25_142], %258 {strides = array<i32>} : memref<16x33xf32, #tpu.memory_space<vmem>>, vector<16x1xf32>,
    %c0_143 = arith.constant 0 : index
    %c4 = arith.constant 4 : index
    %260 = vector.load %arg15[%c0_143, %c4] : memref<16x33xf32, #tpu.memory_space<vmem>>, vector<16x1xf32>
    %cst_144 = arith.constant dense<0.000000e+00> : vector<16xf32>
    %261 = vector.multi_reduction <add>, %252, %cst_144 [1] : vector<16x128xf32> to vector<16xf32>
    %262 = vector.shape_cast %261 : vector<16xf32> to vector<16x1xf32>
    %cst_145 = arith.constant 2.28973489E-11 : f32
    %263 = vector.broadcast %cst_145 : f32 to vector<16x1xf32>
    %264 = arith.mulf %263, %262 : vector<16x1xf32>
    %265 = arith.addf %260, %264 : vector<16x1xf32>
    %c0_146 = arith.constant 0 : index
    %c4_147 = arith.constant 4 : index
    %266 = vector.load %arg15[%c0_146, %c4_147] : memref<16x33xf32, #tpu.memory_space<vmem>>, vector<16x1xf32>
    tpu.vector_store %arg15[%c0_146, %c4_147], %265 {strides = array<i32>} : memref<16x33xf32, #tpu.memory_space<vmem>>, vector<16x1xf32>,
    %267 = arith.mulf %251, %201 : vector<16x128xf32>
    %268 = arith.mulf %252, %202 : vector<16x128xf32>
    %c0_148 = arith.constant 0 : index
    %c28 = arith.constant 28 : index
    %269 = vector.load %arg15[%c0_148, %c28] : memref<16x33xf32, #tpu.memory_space<vmem>>, vector<16x1xf32>
    %cst_149 = arith.constant dense<0.000000e+00> : vector<16xf32>
    %270 = vector.multi_reduction <add>, %267, %cst_149 [1] : vector<16x128xf32> to vector<16xf32>
    %271 = vector.shape_cast %270 : vector<16xf32> to vector<16x1xf32>
    %cst_150 = arith.constant 2.57675715E-18 : f32
    %272 = vector.broadcast %cst_150 : f32 to vector<16x1xf32>
    %273 = arith.mulf %272, %271 : vector<16x1xf32>
    %274 = arith.addf %269, %273 : vector<16x1xf32>
    %c0_151 = arith.constant 0 : index
    %c28_152 = arith.constant 28 : index
    %275 = vector.load %arg15[%c0_151, %c28_152] : memref<16x33xf32, #tpu.memory_space<vmem>>, vector<16x1xf32>
    tpu.vector_store %arg15[%c0_151, %c28_152], %274 {strides = array<i32>} : memref<16x33xf32, #tpu.memory_space<vmem>>, vector<16x1xf32>,
    %c0_153 = arith.constant 0 : index
    %c1_154 = arith.constant 1 : index
    %276 = vector.load %arg15[%c0_153, %c1_154] : memref<16x33xf32, #tpu.memory_space<vmem>>, vector<16x1xf32>
    %cst_155 = arith.constant dense<0.000000e+00> : vector<16xf32>
    %277 = vector.multi_reduction <add>, %268, %cst_155 [1] : vector<16x128xf32> to vector<16xf32>
    %278 = vector.shape_cast %277 : vector<16xf32> to vector<16x1xf32>
    %cst_156 = arith.constant 2.57675715E-18 : f32
    %279 = vector.broadcast %cst_156 : f32 to vector<16x1xf32>
    %280 = arith.mulf %279, %278 : vector<16x1xf32>
    %281 = arith.addf %276, %280 : vector<16x1xf32>
    %c0_157 = arith.constant 0 : index
    %c1_158 = arith.constant 1 : index
    %282 = vector.load %arg15[%c0_157, %c1_158] : memref<16x33xf32, #tpu.memory_space<vmem>>, vector<16x1xf32>
    tpu.vector_store %arg15[%c0_157, %c1_158], %281 {strides = array<i32>} : memref<16x33xf32, #tpu.memory_space<vmem>>, vector<16x1xf32>,
    %cst_159 = arith.constant 1.000000e+00 : f32
    %283 = vector.broadcast %cst_159 : f32 to vector<16x128xf32>
    %284 = arith.subf %183, %283 : vector<16x128xf32>
    %cst_160 = arith.constant -5.000000e+05 : f32
    %285 = vector.broadcast %cst_160 : f32 to vector<16x128xf32>
    %286 = arith.mulf %285, %284 : vector<16x128xf32>
    %287 = arith.mulf %286, %284 : vector<16x128xf32>
    %288 = math.exp %287 : vector<16x128xf32>
    %c0_161 = arith.constant 0 : index
    %c31 = arith.constant 31 : index
    %289 = vector.load %arg15[%c0_161, %c31] : memref<16x33xf32, #tpu.memory_space<vmem>>, vector<16x1xf32>
    %cst_162 = arith.constant dense<0.000000e+00> : vector<16xf32>
    %290 = vector.multi_reduction <add>, %288, %cst_162 [1] : vector<16x128xf32> to vector<16xf32>
    %291 = vector.shape_cast %290 : vector<16xf32> to vector<16x1xf32>
    %292 = arith.addf %289, %291 : vector<16x1xf32>
    %c0_163 = arith.constant 0 : index
    %c31_164 = arith.constant 31 : index
    %293 = vector.load %arg15[%c0_163, %c31_164] : memref<16x33xf32, #tpu.memory_space<vmem>>, vector<16x1xf32>
    tpu.vector_store %arg15[%c0_163, %c31_164], %292 {strides = array<i32>} : memref<16x33xf32, #tpu.memory_space<vmem>>, vector<16x1xf32>,
    %c0_165 = arith.constant 0 : index
    %c2 = arith.constant 2 : index
    %c0_166 = arith.constant 0 : index
    %c0_167 = arith.constant 0 : index
    %294 = vector.load %arg2[%c0_165, %c2, %c0_166, %c0_167] : memref<1x3x16x128xbf16, #tpu.memory_space<vmem>>, vector<1x1x16x128xbf16>
    %295 = vector.shape_cast %294 : vector<1x1x16x128xbf16> to vector<16x128xbf16>
    %c0_168 = arith.constant 0 : index
    %c2_169 = arith.constant 2 : index
    %c0_170 = arith.constant 0 : index
    %c0_171 = arith.constant 0 : index
    %296 = vector.load %arg3[%c0_168, %c2_169, %c0_170, %c0_171] : memref<1x3x128x128xbf16, #tpu.memory_space<vmem>>, vector<1x1x128x128xbf16>
    %297 = vector.shape_cast %296 : vector<1x1x128x128xbf16> to vector<128x128xbf16>
    %cst_172 = arith.constant dense<0.000000e+00> : vector<16x128xf32>
    %298 = tpu.matmul %295, %297, %cst_172 {dimension_numbers = #tpu.dot_dimension_numbers<[1], [0], [0], [1], [0, 0, 1, 1], [], []>} : vector<16x128xbf16>, vector<128x128xbf16>, vector<16x128xf32> -> vector<16x128xf32>
    %299 = arith.extf %295 : vector<16x128xbf16> to vector<16x128xf32>
    %300 = arith.extf %297 : vector<128x128xbf16> to vector<128x128xf32>
    %301 = arith.mulf %299, %299 : vector<16x128xf32>
    %cst_173 = arith.constant dense<0.000000e+00> : vector<16xf32>
    %302 = vector.multi_reduction <add>, %301, %cst_173 [1] : vector<16x128xf32> to vector<16xf32>
    %303 = vector.shape_cast %302 : vector<16xf32> to vector<16x1xf32>
    %cst_174 = arith.constant 9.99999971E-10 : f32
    %304 = vector.broadcast %cst_174 : f32 to vector<16x1xf32>
    %305 = arith.addf %303, %304 : vector<16x1xf32>
    %306 = math.rsqrt %305 : vector<16x1xf32>
    %307 = arith.mulf %300, %300 : vector<128x128xf32>
    %cst_175 = arith.constant dense<0.000000e+00> : vector<128xf32>
    %308 = vector.multi_reduction <add>, %307, %cst_175 [0] : vector<128x128xf32> to vector<128xf32>
    %309 = vector.shape_cast %308 : vector<128xf32> to vector<1x128xf32>
    %cst_176 = arith.constant 9.99999971E-10 : f32
    %310 = vector.broadcast %cst_176 : f32 to vector<1x128xf32>
    %311 = arith.addf %309, %310 : vector<1x128xf32>
    %312 = math.rsqrt %311 : vector<1x128xf32>
    %313 = vector.broadcast %306 : vector<16x1xf32> to vector<16x128xf32>
    %314 = arith.mulf %298, %313 : vector<16x128xf32>
    %315 = vector.broadcast %312 : vector<1x128xf32> to vector<16x128xf32>
    %316 = arith.mulf %314, %315 : vector<16x128xf32>
    %cst_177 = arith.constant 0.000000e+00 : f32
    %317 = vector.broadcast %cst_177 : f32 to vector<16x128xf32>
    %318 = arith.select %15, %317, %316 : vector<16x128xi1>, vector<16x128xf32>
    %c0_178 = arith.constant 0 : index
    %c2_179 = arith.constant 2 : index
    %319 = vector.load %arg16[%c0_178, %c2_179] : memref<16x3xf32, #tpu.memory_space<vmem>>, vector<16x1xf32>
    %cst_180 = arith.constant dense<0.000000e+00> : vector<16xf32>
    %320 = vector.multi_reduction <add>, %318, %cst_180 [1] : vector<16x128xf32> to vector<16xf32>
    %321 = vector.shape_cast %320 : vector<16xf32> to vector<16x1xf32>
    %322 = arith.addf %319, %321 : vector<16x1xf32>
    %c0_181 = arith.constant 0 : index
    %c2_182 = arith.constant 2 : index
    %323 = vector.load %arg16[%c0_181, %c2_182] : memref<16x3xf32, #tpu.memory_space<vmem>>, vector<16x1xf32>
    tpu.vector_store %arg16[%c0_181, %c2_182], %322 {strides = array<i32>} : memref<16x3xf32, #tpu.memory_space<vmem>>, vector<16x1xf32>,
    %cst_183 = arith.constant 1.000000e+01 : f32
    %324 = vector.broadcast %cst_183 : f32 to vector<16x128xf32>
    %325 = arith.mulf %324, %318 : vector<16x128xf32>
    %326 = math.exp %325 : vector<16x128xf32>
    %cst_184 = arith.constant -1.000000e+01 : f32
    %327 = vector.broadcast %cst_184 : f32 to vector<16x128xf32>
    %328 = arith.mulf %327, %318 : vector<16x128xf32>
    %329 = math.exp %328 : vector<16x128xf32>
    %cst_185 = arith.constant -5.000000e+01 : f32
    %330 = vector.broadcast %cst_185 : f32 to vector<16x128xf32>
    %331 = arith.mulf %330, %318 : vector<16x128xf32>
    %332 = arith.mulf %331, %318 : vector<16x128xf32>
    %333 = math.exp %332 : vector<16x128xf32>
    %cst_186 = arith.constant 0.000000e+00 : f32
    %334 = vector.broadcast %cst_186 : f32 to vector<16x128xf32>
    %335 = arith.select %23, %333, %334 : vector<16x128xi1>, vector<16x128xf32>
    %336 = arith.mulf %326, %326 : vector<16x128xf32>
    %337 = arith.mulf %329, %329 : vector<16x128xf32>
    %338 = arith.mulf %335, %326 : vector<16x128xf32>
    %339 = arith.mulf %335, %329 : vector<16x128xf32>
    %c0_187 = arith.constant 0 : index
    %c17 = arith.constant 17 : index
    %340 = vector.load %arg15[%c0_187, %c17] : memref<16x33xf32, #tpu.memory_space<vmem>>, vector<16x1xf32>
    %cst_188 = arith.constant dense<0.000000e+00> : vector<16xf32>
    %341 = vector.multi_reduction <add>, %338, %cst_188 [1] : vector<16x128xf32> to vector<16xf32>
    %342 = vector.shape_cast %341 : vector<16xf32> to vector<16x1xf32>
    %cst_189 = arith.constant 0.606530666 : f32
    %343 = vector.broadcast %cst_189 : f32 to vector<16x1xf32>
    %344 = arith.mulf %343, %342 : vector<16x1xf32>
    %345 = arith.addf %340, %344 : vector<16x1xf32>
    %c0_190 = arith.constant 0 : index
    %c17_191 = arith.constant 17 : index
    %346 = vector.load %arg15[%c0_190, %c17_191] : memref<16x33xf32, #tpu.memory_space<vmem>>, vector<16x1xf32>
    tpu.vector_store %arg15[%c0_190, %c17_191], %345 {strides = array<i32>} : memref<16x33xf32, #tpu.memory_space<vmem>>, vector<16x1xf32>,
    %c0_192 = arith.constant 0 : index
    %c14 = arith.constant 14 : index
    %347 = vector.load %arg15[%c0_192, %c14] : memref<16x33xf32, #tpu.memory_space<vmem>>, vector<16x1xf32>
    %cst_193 = arith.constant dense<0.000000e+00> : vector<16xf32>
    %348 = vector.multi_reduction <add>, %339, %cst_193 [1] : vector<16x128xf32> to vector<16xf32>
    %349 = vector.shape_cast %348 : vector<16xf32> to vector<16x1xf32>
    %cst_194 = arith.constant 0.606530666 : f32
    %350 = vector.broadcast %cst_194 : f32 to vector<16x1xf32>
    %351 = arith.mulf %350, %349 : vector<16x1xf32>
    %352 = arith.addf %347, %351 : vector<16x1xf32>
    %c0_195 = arith.constant 0 : index
    %c14_196 = arith.constant 14 : index
    %353 = vector.load %arg15[%c0_195, %c14_196] : memref<16x33xf32, #tpu.memory_space<vmem>>, vector<16x1xf32>
    tpu.vector_store %arg15[%c0_195, %c14_196], %352 {strides = array<i32>} : memref<16x33xf32, #tpu.memory_space<vmem>>, vector<16x1xf32>,
    %354 = arith.mulf %338, %336 : vector<16x128xf32>
    %355 = arith.mulf %339, %337 : vector<16x128xf32>
    %c0_197 = arith.constant 0 : index
    %c20 = arith.constant 20 : index
    %356 = vector.load %arg15[%c0_197, %c20] : memref<16x33xf32, #tpu.memory_space<vmem>>, vector<16x1xf32>
    %cst_198 = arith.constant dense<0.000000e+00> : vector<16xf32>
    %357 = vector.multi_reduction <add>, %354, %cst_198 [1] : vector<16x128xf32> to vector<16xf32>
    %358 = vector.shape_cast %357 : vector<16xf32> to vector<16x1xf32>
    %cst_199 = arith.constant 0.0111089963 : f32
    %359 = vector.broadcast %cst_199 : f32 to vector<16x1xf32>
    %360 = arith.mulf %359, %358 : vector<16x1xf32>
    %361 = arith.addf %356, %360 : vector<16x1xf32>
    %c0_200 = arith.constant 0 : index
    %c20_201 = arith.constant 20 : index
    %362 = vector.load %arg15[%c0_200, %c20_201] : memref<16x33xf32, #tpu.memory_space<vmem>>, vector<16x1xf32>
    tpu.vector_store %arg15[%c0_200, %c20_201], %361 {strides = array<i32>} : memref<16x33xf32, #tpu.memory_space<vmem>>, vector<16x1xf32>,
    %c0_202 = arith.constant 0 : index
    %c11 = arith.constant 11 : index
    %363 = vector.load %arg15[%c0_202, %c11] : memref<16x33xf32, #tpu.memory_space<vmem>>, vector<16x1xf32>
    %cst_203 = arith.constant dense<0.000000e+00> : vector<16xf32>
    %364 = vector.multi_reduction <add>, %355, %cst_203 [1] : vector<16x128xf32> to vector<16xf32>
    %365 = vector.shape_cast %364 : vector<16xf32> to vector<16x1xf32>
    %cst_204 = arith.constant 0.0111089963 : f32
    %366 = vector.broadcast %cst_204 : f32 to vector<16x1xf32>
    %367 = arith.mulf %366, %365 : vector<16x1xf32>
    %368 = arith.addf %363, %367 : vector<16x1xf32>
    %c0_205 = arith.constant 0 : index
    %c11_206 = arith.constant 11 : index
    %369 = vector.load %arg15[%c0_205, %c11_206] : memref<16x33xf32, #tpu.memory_space<vmem>>, vector<16x1xf32>
    tpu.vector_store %arg15[%c0_205, %c11_206], %368 {strides = array<i32>} : memref<16x33xf32, #tpu.memory_space<vmem>>, vector<16x1xf32>,
    %370 = arith.mulf %354, %336 : vector<16x128xf32>
    %371 = arith.mulf %355, %337 : vector<16x128xf32>
    %c0_207 = arith.constant 0 : index
    %c23 = arith.constant 23 : index
    %372 = vector.load %arg15[%c0_207, %c23] : memref<16x33xf32, #tpu.memory_space<vmem>>, vector<16x1xf32>
    %cst_208 = arith.constant dense<0.000000e+00> : vector<16xf32>
    %373 = vector.multi_reduction <add>, %370, %cst_208 [1] : vector<16x128xf32> to vector<16xf32>
    %374 = vector.shape_cast %373 : vector<16xf32> to vector<16x1xf32>
    %cst_209 = arith.constant 3.72665318E-6 : f32
    %375 = vector.broadcast %cst_209 : f32 to vector<16x1xf32>
    %376 = arith.mulf %375, %374 : vector<16x1xf32>
    %377 = arith.addf %372, %376 : vector<16x1xf32>
    %c0_210 = arith.constant 0 : index
    %c23_211 = arith.constant 23 : index
    %378 = vector.load %arg15[%c0_210, %c23_211] : memref<16x33xf32, #tpu.memory_space<vmem>>, vector<16x1xf32>
    tpu.vector_store %arg15[%c0_210, %c23_211], %377 {strides = array<i32>} : memref<16x33xf32, #tpu.memory_space<vmem>>, vector<16x1xf32>,
    %c0_212 = arith.constant 0 : index
    %c8 = arith.constant 8 : index
    %379 = vector.load %arg15[%c0_212, %c8] : memref<16x33xf32, #tpu.memory_space<vmem>>, vector<16x1xf32>
    %cst_213 = arith.constant dense<0.000000e+00> : vector<16xf32>
    %380 = vector.multi_reduction <add>, %371, %cst_213 [1] : vector<16x128xf32> to vector<16xf32>
    %381 = vector.shape_cast %380 : vector<16xf32> to vector<16x1xf32>
    %cst_214 = arith.constant 3.72665318E-6 : f32
    %382 = vector.broadcast %cst_214 : f32 to vector<16x1xf32>
    %383 = arith.mulf %382, %381 : vector<16x1xf32>
    %384 = arith.addf %379, %383 : vector<16x1xf32>
    %c0_215 = arith.constant 0 : index
    %c8_216 = arith.constant 8 : index
    %385 = vector.load %arg15[%c0_215, %c8_216] : memref<16x33xf32, #tpu.memory_space<vmem>>, vector<16x1xf32>
    tpu.vector_store %arg15[%c0_215, %c8_216], %384 {strides = array<i32>} : memref<16x33xf32, #tpu.memory_space<vmem>>, vector<16x1xf32>,
    %386 = arith.mulf %370, %336 : vector<16x128xf32>
    %387 = arith.mulf %371, %337 : vector<16x128xf32>
    %c0_217 = arith.constant 0 : index
    %c26 = arith.constant 26 : index
    %388 = vector.load %arg15[%c0_217, %c26] : memref<16x33xf32, #tpu.memory_space<vmem>>, vector<16x1xf32>
    %cst_218 = arith.constant dense<0.000000e+00> : vector<16xf32>
    %389 = vector.multi_reduction <add>, %386, %cst_218 [1] : vector<16x128xf32> to vector<16xf32>
    %390 = vector.shape_cast %389 : vector<16xf32> to vector<16x1xf32>
    %cst_219 = arith.constant 2.28973489E-11 : f32
    %391 = vector.broadcast %cst_219 : f32 to vector<16x1xf32>
    %392 = arith.mulf %391, %390 : vector<16x1xf32>
    %393 = arith.addf %388, %392 : vector<16x1xf32>
    %c0_220 = arith.constant 0 : index
    %c26_221 = arith.constant 26 : index
    %394 = vector.load %arg15[%c0_220, %c26_221] : memref<16x33xf32, #tpu.memory_space<vmem>>, vector<16x1xf32>
    tpu.vector_store %arg15[%c0_220, %c26_221], %393 {strides = array<i32>} : memref<16x33xf32, #tpu.memory_space<vmem>>, vector<16x1xf32>,
    %c0_222 = arith.constant 0 : index
    %c5 = arith.constant 5 : index
    %395 = vector.load %arg15[%c0_222, %c5] : memref<16x33xf32, #tpu.memory_space<vmem>>, vector<16x1xf32>
    %cst_223 = arith.constant dense<0.000000e+00> : vector<16xf32>
    %396 = vector.multi_reduction <add>, %387, %cst_223 [1] : vector<16x128xf32> to vector<16xf32>
    %397 = vector.shape_cast %396 : vector<16xf32> to vector<16x1xf32>
    %cst_224 = arith.constant 2.28973489E-11 : f32
    %398 = vector.broadcast %cst_224 : f32 to vector<16x1xf32>
    %399 = arith.mulf %398, %397 : vector<16x1xf32>
    %400 = arith.addf %395, %399 : vector<16x1xf32>
    %c0_225 = arith.constant 0 : index
    %c5_226 = arith.constant 5 : index
    %401 = vector.load %arg15[%c0_225, %c5_226] : memref<16x33xf32, #tpu.memory_space<vmem>>, vector<16x1xf32>
    tpu.vector_store %arg15[%c0_225, %c5_226], %400 {strides = array<i32>} : memref<16x33xf32, #tpu.memory_space<vmem>>, vector<16x1xf32>,
    %402 = arith.mulf %386, %336 : vector<16x128xf32>
    %403 = arith.mulf %387, %337 : vector<16x128xf32>
    %c0_227 = arith.constant 0 : index
    %c29 = arith.constant 29 : index
    %404 = vector.load %arg15[%c0_227, %c29] : memref<16x33xf32, #tpu.memory_space<vmem>>, vector<16x1xf32>
    %cst_228 = arith.constant dense<0.000000e+00> : vector<16xf32>
    %405 = vector.multi_reduction <add>, %402, %cst_228 [1] : vector<16x128xf32> to vector<16xf32>
    %406 = vector.shape_cast %405 : vector<16xf32> to vector<16x1xf32>
    %cst_229 = arith.constant 2.57675715E-18 : f32
    %407 = vector.broadcast %cst_229 : f32 to vector<16x1xf32>
    %408 = arith.mulf %407, %406 : vector<16x1xf32>
    %409 = arith.addf %404, %408 : vector<16x1xf32>
    %c0_230 = arith.constant 0 : index
    %c29_231 = arith.constant 29 : index
    %410 = vector.load %arg15[%c0_230, %c29_231] : memref<16x33xf32, #tpu.memory_space<vmem>>, vector<16x1xf32>
    tpu.vector_store %arg15[%c0_230, %c29_231], %409 {strides = array<i32>} : memref<16x33xf32, #tpu.memory_space<vmem>>, vector<16x1xf32>,
    %c0_232 = arith.constant 0 : index
    %c2_233 = arith.constant 2 : index
    %411 = vector.load %arg15[%c0_232, %c2_233] : memref<16x33xf32, #tpu.memory_space<vmem>>, vector<16x1xf32>
    %cst_234 = arith.constant dense<0.000000e+00> : vector<16xf32>
    %412 = vector.multi_reduction <add>, %403, %cst_234 [1] : vector<16x128xf32> to vector<16xf32>
    %413 = vector.shape_cast %412 : vector<16xf32> to vector<16x1xf32>
    %cst_235 = arith.constant 2.57675715E-18 : f32
    %414 = vector.broadcast %cst_235 : f32 to vector<16x1xf32>
    %415 = arith.mulf %414, %413 : vector<16x1xf32>
    %416 = arith.addf %411, %415 : vector<16x1xf32>
    %c0_236 = arith.constant 0 : index
    %c2_237 = arith.constant 2 : index
    %417 = vector.load %arg15[%c0_236, %c2_237] : memref<16x33xf32, #tpu.memory_space<vmem>>, vector<16x1xf32>
    tpu.vector_store %arg15[%c0_236, %c2_237], %416 {strides = array<i32>} : memref<16x33xf32, #tpu.memory_space<vmem>>, vector<16x1xf32>,
    %cst_238 = arith.constant 1.000000e+00 : f32
    %418 = vector.broadcast %cst_238 : f32 to vector<16x128xf32>
    %419 = arith.subf %318, %418 : vector<16x128xf32>
    %cst_239 = arith.constant -5.000000e+05 : f32
    %420 = vector.broadcast %cst_239 : f32 to vector<16x128xf32>
    %421 = arith.mulf %420, %419 : vector<16x128xf32>
    %422 = arith.mulf %421, %419 : vector<16x128xf32>
    %423 = math.exp %422 : vector<16x128xf32>
    %c0_240 = arith.constant 0 : index
    %c32 = arith.constant 32 : index
    %424 = vector.load %arg15[%c0_240, %c32] : memref<16x33xf32, #tpu.memory_space<vmem>>, vector<16x1xf32>
    %cst_241 = arith.constant dense<0.000000e+00> : vector<16xf32>
    %425 = vector.multi_reduction <add>, %423, %cst_241 [1] : vector<16x128xf32> to vector<16xf32>
    %426 = vector.shape_cast %425 : vector<16xf32> to vector<16x1xf32>
    %427 = arith.addf %424, %426 : vector<16x1xf32>
    %c0_242 = arith.constant 0 : index
    %c32_243 = arith.constant 32 : index
    %428 = vector.load %arg15[%c0_242, %c32_243] : memref<16x33xf32, #tpu.memory_space<vmem>>, vector<16x1xf32>
    tpu.vector_store %arg15[%c0_242, %c32_243], %427 {strides = array<i32>} : memref<16x33xf32, #tpu.memory_space<vmem>>, vector<16x1xf32>,
    %c1_i32 = arith.constant 1 : i32
    %429 = arith.cmpi eq, %arg1, %c1_i32 : i32
    %430 = arith.extui %429 : i1 to i32
    %c0_i32_244 = arith.constant 0 : i32
    %431 = arith.cmpi ne, %430, %c0_i32_244 : i32
    scf.if %431 {
      %c0_245 = arith.constant 0 : index
      %c0_246 = arith.constant 0 : index
      %432 = vector.load %arg16[%c0_245, %c0_246] : memref<16x3xf32, #tpu.memory_space<vmem>>, vector<16x3xf32>
      %cst_247 = arith.constant 0.000000e+00 : f32
      %433 = vector.broadcast %cst_247 : f32 to vector<16x3xf32>
      %434 = arith.cmpf one, %432, %433 : vector<16x3xf32>
      %435 = arith.extui %434 : vector<16x3xi1> to vector<16x3xi32>
      %436 = arith.sitofp %435 : vector<16x3xi32> to vector<16x3xf32>
      %437 = tpu.concatenate %436, %436, %436, %436, %436, %436, %436, %436, %436, %436, %436 in 1 : vector<16x3xf32>, vector<16x3xf32>, vector<16x3xf32>, vector<16x3xf32>, vector<16x3xf32>, vector<16x3xf32>, vector<16x3xf32>, vector<16x3xf32>, vector<16x3xf32>, vector<16x3xf32>, vector<16x3xf32> -> vector<16x33xf32>
      %c0_248 = arith.constant 0 : index
      %c0_249 = arith.constant 0 : index
      %438 = vector.load %arg15[%c0_248, %c0_249] : memref<16x33xf32, #tpu.memory_space<vmem>>, vector<16x33xf32>
      %cst_250 = arith.constant 9.99999997E-7 : f32
      %439 = vector.broadcast %cst_250 : f32 to vector<16x33xf32>
      %440 = arith.addf %438, %439 : vector<16x33xf32>
      %441 = math.log %440 : vector<16x33xf32>
      %442 = arith.mulf %437, %441 : vector<16x33xf32>
      %cst_251 = arith.constant dense<0.000000e+00> : vector<33xf32>
      %443 = vector.multi_reduction <add>, %442, %cst_251 [0] : vector<16x33xf32> to vector<33xf32>
      %444 = vector.shape_cast %443 : vector<33xf32> to vector<1x33xf32>
      %c0_252 = arith.constant 0 : index
      %c0_253 = arith.constant 0 : index
      %c0_254 = arith.constant 0 : index
      %445 = vector.load %arg6[%c0_252, %c0_253, %c0_254] : memref<1x1x128xf32, #tpu.memory_space<vmem>>, vector<1x1x128xf32>
      %446 = vector.shape_cast %445 : vector<1x1x128xf32> to vector<1x128xf32>
      %c0_255 = arith.constant 0 : index
      %c0_256 = arith.constant 0 : index
      %447 = vector.load %arg7[%c0_255, %c0_256] : memref<33x100xf32, #tpu.memory_space<vmem>>, vector<33x100xf32>
      %cst_257 = arith.constant dense<0.000000e+00> : vector<1x100xf32>
      %448 = tpu.matmul %444, %447, %cst_257 {dimension_numbers = #tpu.dot_dimension_numbers<[1], [0], [0], [1], [0, 0, 1, 1], [], []>} : vector<1x33xf32>, vector<33x100xf32>, vector<1x100xf32> -> vector<1x100xf32>
      %c0_258 = arith.constant 0 : index
      %c0_259 = arith.constant 0 : index
      %449 = vector.load %arg8[%c0_258, %c0_259] : memref<128x100xf32, #tpu.memory_space<vmem>>, vector<128x100xf32>
      %cst_260 = arith.constant dense<0.000000e+00> : vector<1x100xf32>
      %450 = tpu.matmul %446, %449, %cst_260 {dimension_numbers = #tpu.dot_dimension_numbers<[1], [0], [0], [1], [0, 0, 1, 1], [], []>} : vector<1x128xf32>, vector<128x100xf32>, vector<1x100xf32> -> vector<1x100xf32>
      %451 = arith.addf %448, %450 : vector<1x100xf32>
      %c0_261 = arith.constant 0 : index
      %c0_262 = arith.constant 0 : index
      %452 = vector.load %arg9[%c0_261, %c0_262] : memref<1x100xf32, #tpu.memory_space<vmem>>, vector<1x100xf32>
      %453 = arith.addf %451, %452 : vector<1x100xf32>
      %cst_263 = arith.constant 0.000000e+00 : f32
      %454 = vector.broadcast %cst_263 : f32 to vector<1x100xf32>
      %455 = arith.maximumf %453, %454 : vector<1x100xf32>
      %c0_264 = arith.constant 0 : index
      %c0_265 = arith.constant 0 : index
      %456 = vector.load %arg10[%c0_264, %c0_265] : memref<100x10xf32, #tpu.memory_space<vmem>>, vector<100x10xf32>
      %cst_266 = arith.constant dense<0.000000e+00> : vector<1x10xf32>
      %457 = tpu.matmul %455, %456, %cst_266 {dimension_numbers = #tpu.dot_dimension_numbers<[1], [0], [0], [1], [0, 0, 1, 1], [], []>} : vector<1x100xf32>, vector<100x10xf32>, vector<1x10xf32> -> vector<1x10xf32>
      %c0_267 = arith.constant 0 : index
      %c0_268 = arith.constant 0 : index
      %458 = vector.load %arg11[%c0_267, %c0_268] : memref<1x10xf32, #tpu.memory_space<vmem>>, vector<1x10xf32>
      %459 = arith.addf %457, %458 : vector<1x10xf32>
      %cst_269 = arith.constant 0.000000e+00 : f32
      %460 = vector.broadcast %cst_269 : f32 to vector<1x10xf32>
      %461 = arith.maximumf %459, %460 : vector<1x10xf32>
      %c0_270 = arith.constant 0 : index
      %c0_271 = arith.constant 0 : index
      %462 = vector.load %arg12[%c0_270, %c0_271] : memref<10x1xf32, #tpu.memory_space<vmem>>, vector<10x1xf32>
      %cst_272 = arith.constant dense<0.000000e+00> : vector<1x1xf32>
      %463 = tpu.matmul %461, %462, %cst_272 {dimension_numbers = #tpu.dot_dimension_numbers<[1], [0], [0], [1], [0, 0, 1, 1], [], []>} : vector<1x10xf32>, vector<10x1xf32>, vector<1x1xf32> -> vector<1x1xf32>
      %c0_273 = arith.constant 0 : index
      %c0_274 = arith.constant 0 : index
      %464 = vector.load %arg13[%c0_273, %c0_274] : memref<1x1xf32, #tpu.memory_space<vmem>>, vector<1x1xf32>
      %465 = arith.addf %463, %464 : vector<1x1xf32>
      %c0_275 = arith.constant 0 : index
      %c0_276 = arith.constant 0 : index
      %c0_277 = arith.constant 0 : index
      %466 = vector.load %arg14[%c0_275, %c0_276, %c0_277] : memref<1x1x1xf32, #tpu.memory_space<vmem>>, vector<1x1x1xf32>
      %467 = vector.shape_cast %466 : vector<1x1x1xf32> to vector<1x1xf32>
      %468 = vector.shape_cast %465 : vector<1x1xf32> to vector<1x1x1xf32>
      tpu.vector_store %arg14[%c0_275, %c0_276, %c0_277], %468 {strides = array<i32>} : memref<1x1x1xf32, #tpu.memory_space<vmem>>, vector<1x1x1xf32>,
    } else {
    }
    return
  }
  func.func @transform_0(%arg0: i32, %arg1: i32) -> (i32, i32, i32, i32) {
    %c0_i32 = arith.constant 0 : i32
    %c0_i32_0 = arith.constant 0 : i32
    %c0_i32_1 = arith.constant 0 : i32
    %c0_i32_2 = arith.constant 0 : i32
    return %arg0, %c0_i32, %c0_i32_0, %c0_i32_1 : i32, i32, i32, i32
  }
  func.func @transform_1(%arg0: i32, %arg1: i32) -> (i32, i32, i32, i32) {
    %c0_i32 = arith.constant 0 : i32
    %c0_i32_0 = arith.constant 0 : i32
    %c0_i32_1 = arith.constant 0 : i32
    return %arg0, %c0_i32, %c0_i32_0, %arg1 : i32, i32, i32, i32
  }
  func.func @transform_2(%arg0: i32, %arg1: i32) -> (i32, i32, i32) {
    %c0_i32 = arith.constant 0 : i32
    %c0_i32_0 = arith.constant 0 : i32
    %c0_i32_1 = arith.constant 0 : i32
    return %arg0, %c0_i32, %c0_i32_0 : i32, i32, i32
  }
  func.func @transform_3(%arg0: i32, %arg1: i32) -> (i32, i32, i32) {
    %c0_i32 = arith.constant 0 : i32
    %c0_i32_0 = arith.constant 0 : i32
    return %arg0, %c0_i32, %arg1 : i32, i32, i32
  }
  func.func @transform_4(%arg0: i32, %arg1: i32) -> (i32, i32, i32) {
    %c0_i32 = arith.constant 0 : i32
    %c0_i32_0 = arith.constant 0 : i32
    %c0_i32_1 = arith.constant 0 : i32
    return %arg0, %c0_i32, %c0_i32_0 : i32, i32, i32
  }
  func.func @transform_5(%arg0: i32, %arg1: i32) -> (i32, i32) {
    %c0_i32 = arith.constant 0 : i32
    %c0_i32_0 = arith.constant 0 : i32
    %c0_i32_1 = arith.constant 0 : i32
    return %c0_i32, %c0_i32_0 : i32, i32
  }
  func.func @transform_6(%arg0: i32, %arg1: i32) -> (i32, i32) {
    %c0_i32 = arith.constant 0 : i32
    %c0_i32_0 = arith.constant 0 : i32
    %c0_i32_1 = arith.constant 0 : i32
    return %c0_i32, %c0_i32_0 : i32, i32
  }
  func.func @transform_7(%arg0: i32, %arg1: i32) -> (i32, i32) {
    %c0_i32 = arith.constant 0 : i32
    %c0_i32_0 = arith.constant 0 : i32
    %c0_i32_1 = arith.constant 0 : i32
    return %c0_i32, %c0_i32_0 : i32, i32
  }
  func.func @transform_8(%arg0: i32, %arg1: i32) -> (i32, i32) {
    %c0_i32 = arith.constant 0 : i32
    %c0_i32_0 = arith.constant 0 : i32
    %c0_i32_1 = arith.constant 0 : i32
    return %c0_i32, %c0_i32_0 : i32, i32
  }
  func.func @transform_9(%arg0: i32, %arg1: i32) -> (i32, i32) {
    %c0_i32 = arith.constant 0 : i32
    %c0_i32_0 = arith.constant 0 : i32
    %c0_i32_1 = arith.constant 0 : i32
    return %c0_i32, %c0_i32_0 : i32, i32
  }
  func.func @transform_10(%arg0: i32, %arg1: i32) -> (i32, i32) {
    %c0_i32 = arith.constant 0 : i32
    %c0_i32_0 = arith.constant 0 : i32
    %c0_i32_1 = arith.constant 0 : i32
    return %c0_i32, %c0_i32_0 : i32, i32
  }
  func.func @transform_11(%arg0: i32, %arg1: i32) -> (i32, i32) {
    %c0_i32 = arith.constant 0 : i32
    %c0_i32_0 = arith.constant 0 : i32
    %c0_i32_1 = arith.constant 0 : i32
    return %c0_i32, %c0_i32_0 : i32, i32
  }
  func.func @transform_12(%arg0: i32, %arg1: i32) -> (i32, i32, i32) {
    %c0_i32 = arith.constant 0 : i32
    %c0_i32_0 = arith.constant 0 : i32
    %c0_i32_1 = arith.constant 0 : i32
    return %arg0, %c0_i32, %c0_i32_0 : i32, i32, i32
  }
}

</mosaic_0001>

<bundles_post_ra>
// kernel: cedr_knrm_forward.1
= control target key start
LH: loop header
LB: loop body
LE: loop exit
PB: predicated region body
PF: predicated region fallthrough
CT: control target
= control target key end

     0   :  { %s3964_s0 = inlined_call_operand.vmem [shape: bf16[2,3,16,128], index: 0, kind: input, shape index: {}]   ;;  %s3965_s1 = inlined_call_operand.vmem [shape: bf16[2,3,128,256], index: 1, kind: input, shape index: {}]   ;;  %s3966_s2 = inlined_call_operand.vmem [shape: s32[2,16,1], index: 2, kind: input, shape index: {}]   ;;  %s3967_s3 = inlined_call_operand.vmem [shape: s32[2,1,256], index: 3, kind: input, shape index: {}]   ;;  %s3968_s4 = inlined_call_operand.vmem [shape: f32[2,1,128], index: 4, kind: input, shape index: {}]   ;;  %s3969_s5 = inlined_call_operand.vmem [shape: f32[33,100], index: 5, kind: input, shape index: {}]   ;;  %s3970_s6 = inlined_call_operand.vmem [shape: f32[128,100], index: 6, kind: input, shape index: {}]   ;;  %s3971_s7 = inlined_call_operand.vmem [shape: f32[1,100], index: 7, kind: input, shape index: {}]   ;;  %s3972_s8 = inlined_call_operand.vmem [shape: f32[100,10], index: 8, kind: input, shape index: {}]   ;;  %s3973_s9 = inlined_call_operand.vmem [shape: f32[1,10], index: 9, kind: input, shape index: {}]   ;;  %s3974_s10 = inlined_call_operand.vmem [shape: f32[10,1], index: 10, kind: input, shape index: {}]   ;;  %s3975_s11 = inlined_call_operand.<no memory space> [shape: f32[1,1], index: 11, kind: input, shape index: {}]   ;;  %s3976_s12 = inlined_call_operand.vmem [shape: f32[2,1,1], index: 12, kind: output, shape index: {}]  }
   0x1   :  { %3982 = sst [smem:[#allocation12_spill]] %s3965_s1  ;;  %v17_v0 = vstv %s3975_s11 }
   0x2   :  { %3983 = sst [smem:[#allocation13_spill]] %s3966_s2  ;;  %18 = vst [vmem:[#allocation4] sm:$0x1] %v17_v0 }
   0x3   :  { %3984 = sst [smem:[#allocation14_spill]] %s3973_s9 }
   0x4   :  { %s3303_s23 = smov 0   ;;  %s3305_s24 = smov 0  }
   0x5   :  { %s3307_s25 = smov 0   ;;  %s3309_s26 = smov 0  }
   0x6   :  { %s3311_s27 = smov 0   ;;  %s3313_s28 = smov 0  }
   0x7   :  { %s3315_s29 = smov 0  }
   0x8 LB: > { %3985 = sst [smem:[#allocation6_spill]] %s3195_s24  ;;  %s33_s11 = sadd.s32 1, %s3207_s27  ;;  %s3215_s29 = sphi %s3315_s29, %s24_s29   ;;  %s3211_s28 = sphi %s3313_s28, %s4003_s28   ;;  %s3207_s27 = sphi %s3311_s27, %s4002_s27   ;;  %s3203_s26 = sphi %s3309_s26, %s4001_s26   ;;  %s3199_s25 = sphi %s3307_s25, %s4000_s25   ;;  %s3195_s24 = sphi %s3305_s24, %s3999_s24   ;;  %s3191_s23 = sphi %s3303_s23, %s3998_s23  }
   0x9   : > { %3986 = sst [smem:[#allocation7_spill]] %s3207_s27  ;;  %p34_p0 = scmp.ge.s32.totalorder %s33_s11, 2 }
   0xa   : > { %3987 = sst [smem:[#allocation8_spill]] %s3211_s28  ;;  %s36_s30 = sadd.s32 1, %s3211_s28 }
   0xb   : > { %p78_p1 = scmp.ne.s32.totalorder %s3195_s24, %s3191_s23  ;;  %p79_p2 = scmp.eq.s32.totalorder %s3215_s29, 0 }
   0xc   : > { %s4005_s11 = smov (%p34_p0, %s33_s11), 0  ;;  %s4007_s30 = smov (!%p34_p0, %s36_s30), %s3211_s28 }
   0xd   : > { %3988 = sst [smem:[#allocation9_spill]] %s4005_s11  ;;  %p80_p3 = por %p79_p2, %p78_p1 }
   0xe   : > { %p38_p4 = scmp.ge.s32.totalorder %s4007_s30, 2  ;;  %s67_s13 = ssub.s32 %s3207_s27, %s4005_s11 }
   0xf   : > { %s71_s16 = sadd.s32 1, %s3195_s24  ;;  %p2554_p6 = scmp.ge.s32.totalorder %s3215_s29, 4 }
  0x10   : > { %s4009_s30 = smov (%p38_p4, %s4007_s30), 0 }
  0x11   : > { %3989 = sst [smem:[#allocation10_spill]] %s4009_s30  ;;  %s66_s14 = ssub.s32 %s3211_s28, %s4009_s30 }
  0x12   : > { %s68_s15 = sor.u32 %s67_s13, %s66_s14  ;;  %378 = sbr.rel (%p2554_p6) target bundleno = 66 (0x42), region = 44 }
  0x13   : > { %p69_p5 = scmp.eq.s32.totalorder %s68_s15, 0 }
  0x15   : > { %s3354_s17 = scalar_select %p69_p5, %s3195_s24, %s71_s16  }
  0x17   : > { %3990 = sst [smem:[#allocation11_spill]] %s3354_s17 }
  0x19   : > { %389 = sbr.rel (!%p80_p3) target bundleno = 66 (0x42), region = 52  ;;  %s391_s18 = sand.u32 (%p80_p3), 1, %s3195_s24  }
  0x1a   : > { %s2908_s19 = smul.u32 (%p80_p3), 96, %s3211_s28  ;;  %s3991_s1 = sld [smem:[#allocation12_spill]] (%p80_p3) }
  0x1b   : > { %s2907_s20 = smul.u32 (%p80_p3), 192, %s391_s18 }
  0x1c   : > { %s395_s21 = sadd.s32 (%p80_p3), %s3207_s27, %s2908_s19 }
  0x1d   : > { %s2555_s22 = sshll.u32 (%p80_p3), %s395_s21, 2  ;;  %s3368_s14 = scalar_lea.vmem (%p80_p3), [#allocation5], %s2907_s20 }
  0x20   : > { %s3363_s13 = scalar_lea.vmem %s3991_s1, %s2555_s22 }
  0x21   : > { %v413_v1 = vld [vmem:[%s3363_s13] sm:$0xf]  ;;  %v415_v2 = vld [vmem:[%s3363_s13 + $0x8] sm:$0xf]  ;;  %v417_v3 = vld [vmem:[%s3363_s13 + $0x10] sm:$0xf] }
  0x22   : > { %414 = vst [vmem:[%s3368_s14] sm:$0xf] %v413_v1  ;;  %416 = vst [vmem:[%s3368_s14 + $0x4] sm:$0xf] %v415_v2  ;;  %v419_v4 = vld [vmem:[%s3363_s13 + $0x18] sm:$0xf] }
  0x23   : > { %418 = vst [vmem:[%s3368_s14 + $0x8] sm:$0xf] %v417_v3  ;;  %v421_v5 = vld [vmem:[%s3363_s13 + $0x20] sm:$0xf]  ;;  %v423_v6 = vld [vmem:[%s3363_s13 + $0x28] sm:$0xf] }
  0x24   : > { %420 = vst [vmem:[%s3368_s14 + $0xc] sm:$0xf] %v419_v4  ;;  %422 = vst [vmem:[%s3368_s14 + $0x10] sm:$0xf] %v421_v5  ;;  %v425_v7 = vld [vmem:[%s3363_s13 + $0x30] sm:$0xf] }
  0x25   : > { %424 = vst [vmem:[%s3368_s14 + $0x14] sm:$0xf] %v423_v6  ;;  %v427_v8 = vld [vmem:[%s3363_s13 + $0x38] sm:$0xf]  ;;  %v429_v9 = vld [vmem:[%s3363_s13 + $0x40] sm:$0xf] }
  0x26   : > { %426 = vst [vmem:[%s3368_s14 + $0x18] sm:$0xf] %v425_v7  ;;  %428 = vst [vmem:[%s3368_s14 + $0x1c] sm:$0xf] %v427_v8  ;;  %v431_v10 = vld [vmem:[%s3363_s13 + $0x48] sm:$0xf] }
  0x27   : > { %430 = vst [vmem:[%s3368_s14 + $0x20] sm:$0xf] %v429_v9  ;;  %v433_v11 = vld [vmem:[%s3363_s13 + $0x50] sm:$0xf]  ;;  %v435_v12 = vld [vmem:[%s3363_s13 + $0x58] sm:$0xf] }
  0x28   : > { %432 = vst [vmem:[%s3368_s14 + $0x24] sm:$0xf] %v431_v10  ;;  %434 = vst [vmem:[%s3368_s14 + $0x28] sm:$0xf] %v433_v11  ;;  %v437_v13 = vld [vmem:[%s3363_s13 + $0x60] sm:$0xf] }
  0x29   : > { %436 = vst [vmem:[%s3368_s14 + $0x2c] sm:$0xf] %v435_v12  ;;  %v439_v14 = vld [vmem:[%s3363_s13 + $0x68] sm:$0xf]  ;;  %v441_v15 = vld [vmem:[%s3363_s13 + $0x70] sm:$0xf] }
  0x2a   : > { %438 = vst [vmem:[%s3368_s14 + $0x30] sm:$0xf] %v437_v13  ;;  %440 = vst [vmem:[%s3368_s14 + $0x34] sm:$0xf] %v439_v14  ;;  %v443_v16 = vld [vmem:[%s3363_s13 + $0x78] sm:$0xf] }
  0x2b   : > { %442 = vst [vmem:[%s3368_s14 + $0x38] sm:$0xf] %v441_v15  ;;  %v445_v17 = vld [vmem:[%s3363_s13 + $0x80] sm:$0xf]  ;;  %v447_v18 = vld [vmem:[%s3363_s13 + $0x88] sm:$0xf] }
  0x2c   : > { %444 = vst [vmem:[%s3368_s14 + $0x3c] sm:$0xf] %v443_v16  ;;  %446 = vst [vmem:[%s3368_s14 + $0x40] sm:$0xf] %v445_v17  ;;  %v449_v19 = vld [vmem:[%s3363_s13 + $0x90] sm:$0xf] }
  0x2d   : > { %448 = vst [vmem:[%s3368_s14 + $0x44] sm:$0xf] %v447_v18  ;;  %v451_v20 = vld [vmem:[%s3363_s13 + $0x98] sm:$0xf]  ;;  %v453_v21 = vld [vmem:[%s3363_s13 + $0xa0] sm:$0xf] }
  0x2e   : > { %450 = vst [vmem:[%s3368_s14 + $0x48] sm:$0xf] %v449_v19  ;;  %452 = vst [vmem:[%s3368_s14 + $0x4c] sm:$0xf] %v451_v20  ;;  %v455_v22 = vld [vmem:[%s3363_s13 + $0xa8] sm:$0xf] }
  0x2f   : > { %454 = vst [vmem:[%s3368_s14 + $0x50] sm:$0xf] %v453_v21  ;;  %v457_v23 = vld [vmem:[%s3363_s13 + $0xb0] sm:$0xf]  ;;  %v459_v24 = vld [vmem:[%s3363_s13 + $0xb8] sm:$0xf] }
  0x30   : > { %456 = vst [vmem:[%s3368_s14 + $0x54] sm:$0xf] %v455_v22  ;;  %458 = vst [vmem:[%s3368_s14 + $0x58] sm:$0xf] %v457_v23  ;;  %v461_v25 = vld [vmem:[%s3363_s13 + $0xc0] sm:$0xf] }
  0x31   : > { %460 = vst [vmem:[%s3368_s14 + $0x5c] sm:$0xf] %v459_v24  ;;  %v463_v26 = vld [vmem:[%s3363_s13 + $0xc8] sm:$0xf]  ;;  %v465_v27 = vld [vmem:[%s3363_s13 + $0xd0] sm:$0xf] }
  0x32   : > { %462 = vst [vmem:[%s3368_s14 + $0x60] sm:$0xf] %v461_v25  ;;  %464 = vst [vmem:[%s3368_s14 + $0x64] sm:$0xf] %v463_v26  ;;  %v467_v28 = vld [vmem:[%s3363_s13 + $0xd8] sm:$0xf] }
  0x33   : > { %466 = vst [vmem:[%s3368_s14 + $0x68] sm:$0xf] %v465_v27  ;;  %v469_v29 = vld [vmem:[%s3363_s13 + $0xe0] sm:$0xf]  ;;  %v471_v30 = vld [vmem:[%s3363_s13 + $0xe8] sm:$0xf] }
  0x34   : > { %468 = vst [vmem:[%s3368_s14 + $0x6c] sm:$0xf] %v467_v28  ;;  %470 = vst [vmem:[%s3368_s14 + $0x70] sm:$0xf] %v469_v29  ;;  %v473_v31 = vld [vmem:[%s3363_s13 + $0xf0] sm:$0xf] }
  0x35   : > { %472 = vst [vmem:[%s3368_s14 + $0x74] sm:$0xf] %v471_v30  ;;  %v475_v32 = vld [vmem:[%s3363_s13 + $0xf8] sm:$0xf]  ;;  %v477_v33 = vld [vmem:[%s3363_s13 + $0x100] sm:$0xf] }
  0x36   : > { %474 = vst [vmem:[%s3368_s14 + $0x78] sm:$0xf] %v473_v31  ;;  %476 = vst [vmem:[%s3368_s14 + $0x7c] sm:$0xf] %v475_v32  ;;  %v479_v34 = vld [vmem:[%s3363_s13 + $0x108] sm:$0xf] }
  0x37   : > { %478 = vst [vmem:[%s3368_s14 + $0x80] sm:$0xf] %v477_v33  ;;  %v481_v35 = vld [vmem:[%s3363_s13 + $0x110] sm:$0xf]  ;;  %v483_v36 = vld [vmem:[%s3363_s13 + $0x118] sm:$0xf] }
  0x38   : > { %480 = vst [vmem:[%s3368_s14 + $0x84] sm:$0xf] %v479_v34  ;;  %482 = vst [vmem:[%s3368_s14 + $0x88] sm:$0xf] %v481_v35  ;;  %v485_v37 = vld [vmem:[%s3363_s13 + $0x120] sm:$0xf] }
  0x39   : > { %484 = vst [vmem:[%s3368_s14 + $0x8c] sm:$0xf] %v483_v36  ;;  %v487_v38 = vld [vmem:[%s3363_s13 + $0x128] sm:$0xf]  ;;  %v489_v39 = vld [vmem:[%s3363_s13 + $0x130] sm:$0xf] }
  0x3a   : > { %486 = vst [vmem:[%s3368_s14 + $0x90] sm:$0xf] %v485_v37  ;;  %488 = vst [vmem:[%s3368_s14 + $0x94] sm:$0xf] %v487_v38  ;;  %v491_v40 = vld [vmem:[%s3363_s13 + $0x138] sm:$0xf] }
  0x3b   : > { %490 = vst [vmem:[%s3368_s14 + $0x98] sm:$0xf] %v489_v39  ;;  %v493_v41 = vld [vmem:[%s3363_s13 + $0x140] sm:$0xf]  ;;  %v495_v42 = vld [vmem:[%s3363_s13 + $0x148] sm:$0xf] }
  0x3c   : > { %492 = vst [vmem:[%s3368_s14 + $0x9c] sm:$0xf] %v491_v40  ;;  %494 = vst [vmem:[%s3368_s14 + $0xa0] sm:$0xf] %v493_v41  ;;  %v497_v43 = vld [vmem:[%s3363_s13 + $0x150] sm:$0xf] }
  0x3d   : > { %496 = vst [vmem:[%s3368_s14 + $0xa4] sm:$0xf] %v495_v42  ;;  %v499_v44 = vld [vmem:[%s3363_s13 + $0x158] sm:$0xf]  ;;  %v501_v45 = vld [vmem:[%s3363_s13 + $0x160] sm:$0xf] }
  0x3e   : > { %498 = vst [vmem:[%s3368_s14 + $0xa8] sm:$0xf] %v497_v43  ;;  %500 = vst [vmem:[%s3368_s14 + $0xac] sm:$0xf] %v499_v44  ;;  %v503_v46 = vld [vmem:[%s3363_s13 + $0x168] sm:$0xf] }
  0x3f   : > { %502 = vst [vmem:[%s3368_s14 + $0xb0] sm:$0xf] %v501_v45  ;;  %v505_v47 = vld [vmem:[%s3363_s13 + $0x170] sm:$0xf]  ;;  %v507_v48 = vld [vmem:[%s3363_s13 + $0x178] sm:$0xf] }
  0x40   : > { %504 = vst [vmem:[%s3368_s14 + $0xb4] sm:$0xf] %v503_v46  ;;  %506 = vst [vmem:[%s3368_s14 + $0xb8] sm:$0xf] %v505_v47 }
  0x41   : > { %508 = vst [vmem:[%s3368_s14 + $0xbc] sm:$0xf] %v507_v48 }
  0x42 PF: > { %p2556_p7 = scmp.ge.s32.totalorder %s3215_s29, 1  ;;  %p650_p8 = scmp.lt.s32.totalorder %s3215_s29, 5 }
  0x44   : > { %p651_p9 = pnand %p2556_p7, %p650_p8 }
  0x45   : > { %s657_s9 = sand.u32 (!%p651_p9), 1, %s3191_s23   ;;  %p716_p10 = scmp.lt.s32.totalorder (!%p651_p9), %s3203_s26, 1 }
  0x46   : > { %654 = sbr.rel (%p651_p9) target bundleno = 1746 (0x6d2), region = 105  ;;  %p728_p11 = scmp.lt.s32.totalorder (!%p651_p9), %s3199_s25, 1 }
  0x47   : > { %s2909_s11 = smul.u32 (!%p651_p9), 192, %s657_s9  ;;  %s3992_s2 = sld [smem:[#allocation13_spill]] (!%p651_p9) }
  0x48   : > { %p2561_p12 = scmp.ne.s32.totalorder (!%p651_p9), %s3199_s25, 0 }
  0x4d   : > { %s4011_s26 = smov (!%p716_p10, %s3203_s26), 1  ;;  %vm744_vm0 = vcmask (!%p2561_p12), 269312   ;;  %vm747_vm1 = vcmask (!%p2561_p12), 23552   ;;  %v3217_v49 = vmov (!%p2561_p12), 0.0  }
  0x4e   : > { %s2910_s15 = smul.u32 24, %s4011_s26  ;;  %s2643_s16 = sshll.u32 %s4011_s26, 4  ;;  %745 = vst.msk [vmem:[#allocation2] sm:$0xff] (!%p2561_p12), %vm744_vm0, %v3217_v49  ;;  %746 = vst.msk [vmem:[#allocation2 + $0x8] sm:$0xff] (!%p2561_p12), %vm744_vm0, %v3217_v49 }
  0x4f   : > { %s3476_s20 = scalar_lea.vmem %s3992_s2, %s2643_s16  ;;  %s2560_s21 = sshll.u32 %s4011_s26, 1  ;;  %748 = vst.msk [vmem:[#allocation3] sm:$0xff] (!%p2561_p12), %vm747_vm1, %v3217_v49  ;;  %749 = vst.msk [vmem:[#allocation3 + $0x8] sm:$0xff] (!%p2561_p12), %vm747_vm1, %v3217_v49 }
  0x50   : > { %s3482_s13 = scalar_lea.vmem %s3964_s0, %s2910_s15  ;;  %s735_s1 = scalar_lea.vmem %s3968_s4, %s4011_s26 }
  0x51   : > { %s729_s30 = scalar_select %p728_p11, %s3199_s25, 1 }
  0x52   : > { %s738_s17 = scalar_lea.vmem %s3976_s12, %s4011_s26  ;;  %s3499_s2 = scalar_lea.vmem [#allocation5], %s2909_s11 }
  0x53   : > { %s3493_s24 = sadd.s32 %s2560_s21, %s729_s30  ;;  %743 = sbr.rel (%p2561_p12) target bundleno = 90 (0x5a), region = 113 }
  0x54   : > { %s732_s19 = scalar_lea.vmem %s3967_s3, %s3493_s24 }
  0x5a PF: > { %v784_v50 = vld [vmem:[%s3499_s2] sm:$0xff]   ;;  %v786_v51 = vld [vmem:[%s3499_s2 + $0x8] sm:$0xff]   ;;  %v3218_v52 = vmov 0.0   ;;  %vm3219_vm2 = vmmov 0   ;;  %v788_v57 = vld [vmem:[%s3499_s2 + $0x10] sm:$0xff]   ;;  %v3220_v58 = vmov 0  }
  0x5b   : > { %2711 = vmatprep.subr.bf16.mxu0 %v3218_v52  ;;  %v897_v53 = vunpack.c.l.bf16 %v784_v50  ;;  %v898_v54 = vunpack.c.h.bf16 %v784_v50  ;;  %2727 = vmatprep.mubr.msk.bf16.mxu0 %vm3219_vm2, %v3218_v52  ;;  %v899_v55 = vunpack.c.l.bf16 %v786_v51  ;;  %v900_v56 = vunpack.c.h.bf16 %v786_v51  ;;  %v790_v2 = vld [vmem:[%s3499_s2 + $0x18] sm:$0xff]   ;;  %v792_v7 = vld [vmem:[%s3499_s2 + $0x20] sm:$0xff]   ;;  %v794_v18 = vld [vmem:[%s3499_s2 + $0x28] sm:$0xff]   ;;  %p2632_p13 = scmp.ne.s32.totalorder %s3199_s25, 1 }
  0x5c   : > { %2985 = vset.pattern.permute.xlu1 %v3220_v58  ;;  %2731 = vmatprep.subr.bf16.mxu1 %v3218_v52  ;;  %v901_v61 = vunpack.c.l.bf16 %v788_v57  ;;  %v902_v1 = vunpack.c.h.bf16 %v788_v57  ;;  %v903_v3 = vunpack.c.l.bf16 %v790_v2  ;;  %v904_v6 = vunpack.c.h.bf16 %v790_v2  ;;  %v750_v10 = vld [vmem:[%s3476_s20] sm:$0xff]  ;;  %v751_v14 = vld [vmem:[%s3476_s20 + $0x8] sm:$0xff]  ;;  %v2580_v38 = vld [vmem:[%s3499_s2 + $0x50] sm:$0xff]   ;;  %s3223_s23 = smov (!%p2632_p13), 3   ;;  %s3226_s27 = smov (!%p2632_p13), 12  }
  0x5d   : > { %2712 = vmatpush3.bf16.msra.mxu0 %v784_v50  ;;  %v923_v59 = vmul.f32 %v897_v53, %v897_v53  ;;  %v924_v60 = vmul.f32 %v898_v54, %v898_v54  ;;  %2747 = vmatprep.mubr.msk.bf16.mxu1 %vm3219_vm2, %v3218_v52  ;;  %v925_v62 = vmul.f32 %v899_v55, %v899_v55  ;;  %v905_v12 = vunpack.c.l.bf16 %v792_v7  ;;  %v3519_v13 = vld [vmem:[%s3482_s13] sm:$0xff]   ;;  %v2578_v27 = vld [vmem:[%s3499_s2 + $0x48] sm:$0xff]   ;;  %v796_v40 = vld [vmem:[%s3499_s2 + $0x30] sm:$0xff]   ;;  %s3227_s15 = smov (!%p2632_p13), 15   ;;  %s3228_s20 = smov (!%p2632_p13), 18  }
  0x5e   : > { %2713 = vmatprep.subr.bf16.mxu0 %v3218_v52  ;;  %2986 = vset.pattern.permute.xlu0 %v3220_v58  ;;  %v926_v0 = vmul.f32 %v900_v56, %v900_v56  ;;  %v927_v5 = vmul.f32 %v901_v61, %v901_v61  ;;  %v928_v9 = vmul.f32 %v902_v1, %v902_v1  ;;  %v906_v17 = vunpack.c.h.bf16 %v792_v7  ;;  %v2576_v20 = vld [vmem:[%s3499_s2 + $0x40] sm:$0xff]   ;;  %v2582_v53 = vld [vmem:[%s3499_s2 + $0x58] sm:$0xff]   ;;  %s3230_s28 = smov (!%p2632_p13), 21  }
  0x5f   : > { %v939_v63 = vadd.f32 %v924_v60, %v923_v59  ;;  %v929_v11 = vmul.f32 %v903_v3, %v903_v3  ;;  %v930_v16 = vmul.f32 %v904_v6, %v904_v6  ;;  %v895_v19 = vunpack.c.l.bf16 %v3519_v13  ;;  %2732 = vmatpush3.bf16.msra.mxu1 %v2576_v20  ;;  %v798_v55 = vld [vmem:[%s3499_s2 + $0x38] sm:$0xff]  }
  0x60   : > { %v907_v21 = vunpack.c.l.bf16 %v794_v18  ;;  %v908_v22 = vunpack.c.h.bf16 %v794_v18  ;;  %v896_v23 = vunpack.c.h.bf16 %v3519_v13  ;;  %vm752_vm3 = vcmp.eq.s32.totalorder %v750_v10, 4294967295  ;;  %2733 = vmatprep.subr.bf16.mxu1 %v3218_v52 }
  0x61   : > { %2714 = vmatpush3.bf16.msra.mxu0 %v786_v51  ;;  %v940_v4 = vadd.f32 %v939_v63, %v925_v62  ;;  %v913_v25 = vmul.f32 %v895_v19, %v895_v19  ;;  %v756_v26 = vsel %vm752_vm3, 1, %v3220_v58  ;;  %vm753_vm4 = vcmp.eq.s32.totalorder %v751_v14, 4294967295 }
  0x62   : > { %2715 = vmatprep.subr.bf16.mxu0 %v3218_v52  ;;  %v931_v28 = vmul.f32 %v905_v12, %v905_v12  ;;  %v914_v29 = vmul.f32 %v896_v23, %v896_v23  ;;  %759 = vperm.xlu1 %2985, %v756_v26   ;;  %v1292_v30 = vunpack.c.l.bf16 %v2576_v20  ;;  %v757_v32 = vsel %vm753_vm4, 1, %v3220_v58 }
  0x63   : > { %v941_v8 = vadd.f32 %v940_v4, %v926_v0  ;;  %915 = vadd.xlane.f32.xlu0 %v913_v25  ;;  %v1293_v33 = vunpack.c.h.bf16 %v2576_v20  ;;  %v1294_v34 = vunpack.c.l.bf16 %v2578_v27  ;;  %v932_v35 = vmul.f32 %v906_v17, %v906_v17  ;;  %2734 = vmatpush3.bf16.msra.mxu1 %v2578_v27  ;;  %v2584_v4 = vld [vmem:[%s3499_s2 + $0x60] sm:$0xff]   ;;  %v2588_v25 = vld [vmem:[%s3499_s2 + $0x70] sm:$0xff]  }
  0x64   : > { %v1318_v36 = vmul.f32 %v1292_v30, %v1292_v30  ;;  %v1295_v37 = vunpack.c.h.bf16 %v2578_v27  ;;  %v1296_v43 = vunpack.c.l.bf16 %v2580_v38  ;;  %v933_v44 = vmul.f32 %v907_v21, %v907_v21  ;;  %2735 = vmatprep.subr.bf16.mxu1 %v3218_v52 }
  0x65   : > { %2716 = vmatpush3.bf16.msra.mxu0 %v788_v57  ;;  %v942_v15 = vadd.f32 %v941_v8, %v927_v5  ;;  %v1319_v41 = vmul.f32 %v1293_v33, %v1293_v33  ;;  %v1320_v42 = vmul.f32 %v1294_v34, %v1294_v34  ;;  %v909_v45 = vunpack.c.l.bf16 %v796_v40  ;;  %v2590_v33 = vld [vmem:[%s3499_s2 + $0x78] sm:$0xff]  }
  0x66   : > { %2717 = vmatprep.subr.bf16.mxu0 %v3218_v52  ;;  %762 = vperm.xlu1 %2985, %v757_v32   ;;  %v1321_v48 = vmul.f32 %v1295_v37, %v1295_v37  ;;  %v1297_v49 = vunpack.c.h.bf16 %v2580_v38  ;;  %v934_v50 = vmul.f32 %v908_v22, %v908_v22  ;;  %v910_v51 = vunpack.c.h.bf16 %v796_v40 }
  0x67   : > { %v943_v24 = vadd.f32 %v942_v15, %v928_v9  ;;  %917 = vadd.xlane.f32.xlu0 %v914_v29  ;;  %v1334_v47 = vadd.f32 %v1319_v41, %v1318_v36  ;;  %v1322_v57 = vmul.f32 %v1296_v43, %v1296_v43  ;;  %v1298_v59 = vunpack.c.l.bf16 %v2582_v53  ;;  %2736 = vmatpush3.bf16.msra.mxu1 %v2580_v38 }
  0x68   : > { %v935_v60 = vmul.f32 %v909_v45, %v909_v45  ;;  %v911_v61 = vunpack.c.l.bf16 %v798_v55  ;;  %v1323_v0 = vmul.f32 %v1297_v49, %v1297_v49  ;;  %v1299_v1 = vunpack.c.h.bf16 %v2582_v53  ;;  %2737 = vmatprep.subr.bf16.mxu1 %v3218_v52 }
  0x69   : > { %2718 = vmatpush3.bf16.msra.mxu0 %v790_v2  ;;  %v944_v31 = vadd.f32 %v943_v24, %v929_v11  ;;  %v1335_v56 = vadd.f32 %v1334_v47, %v1320_v42  ;;  %v936_v2 = vmul.f32 %v910_v51, %v910_v51  ;;  %v912_v3 = vunpack.c.h.bf16 %v798_v55  ;;  %v2607_v47 = vld [vmem:[%s3499_s2 + $0x88] sm:$0xff]  }
  0x6a   : > { %2719 = vmatprep.subr.bf16.mxu0 %v3218_v52  ;;  %v1300_v8 = vunpack.c.l.bf16 %v2584_v4  ;;  %v937_v9 = vmul.f32 %v911_v61, %v911_v61  ;;  %v1325_v12 = vmul.f32 %v1299_v1, %v1299_v1  ;;  %v1301_v14 = vunpack.c.h.bf16 %v2584_v4 }
  0x6b   : > { %v945_v39 = vadd.f32 %v944_v31, %v930_v16  ;;  %v1336_v63 = vadd.f32 %v1335_v56, %v1321_v48  ;;  %v938_v15 = vmul.f32 %v912_v3, %v912_v3  ;;  %2738 = vmatpush3.bf16.msra.mxu1 %v2582_v53  ;;  %v2586_v16 = vld [vmem:[%s3499_s2 + $0x68] sm:$0xff]   ;;  %v1304_v29 = vunpack.c.l.bf16 %v2588_v25 }
  0x6c   : > { %2739 = vmatprep.subr.bf16.mxu1 %v3218_v52  ;;  %v1326_v19 = vmul.f32 %v1300_v8, %v1300_v8  ;;  %v1302_v20 = vunpack.c.l.bf16 %v2586_v16  ;;  %v1327_v23 = vmul.f32 %v1301_v14, %v1301_v14  ;;  %v1303_v24 = vunpack.c.h.bf16 %v2586_v16  ;;  %v2613_v8 = vld [vmem:[%s3499_s2 + $0xa0] sm:$0xff]  }
  0x6d   : > { %2720 = vmatpush3.bf16.msra.mxu0 %v792_v7  ;;  %v946_v46 = vadd.f32 %v945_v39, %v931_v28  ;;  %v1337_v6 = vadd.f32 %v1336_v63, %v1322_v57  ;;  %v1324_v7 = vmul.f32 %v1298_v59, %v1298_v59  ;;  %v1305_v32 = vunpack.c.h.bf16 %v2588_v25 }
  0x6e   : > { %2721 = vmatprep.subr.bf16.mxu0 %v3218_v52  ;;  %v1328_v28 = vmul.f32 %v1302_v20, %v1302_v20  ;;  %v1329_v31 = vmul.f32 %v1303_v24, %v1303_v24  ;;  %v1306_v36 = vunpack.c.l.bf16 %v2590_v33  ;;  %v1307_v39 = vunpack.c.h.bf16 %v2590_v33 }
  0x6f   : > { %v947_v54 = vadd.f32 %v946_v46, %v932_v35  ;;  %v1338_v11 = vadd.f32 %v1337_v6, %v1323_v0  ;;  %2740 = vmatpush3.bf16.msra.mxu1 %v2584_v4  ;;  %v1330_v35 = vmul.f32 %v1304_v29, %v1304_v29  ;;  %v1331_v38 = vmul.f32 %v1305_v32, %v1305_v32  ;;  %v2605_v46 = vld [vmem:[%s3499_s2 + $0x80] sm:$0xff]   ;;  %v2611_v0 = vld [vmem:[%s3499_s2 + $0x98] sm:$0xff]  }
  0x70   : > { %2741 = vmatprep.subr.bf16.mxu1 %v3218_v52  ;;  %v1332_v41 = vmul.f32 %v1306_v36, %v1306_v36  ;;  %v1333_v43 = vmul.f32 %v1307_v39, %v1307_v39  ;;  %v1687_v48 = vunpack.c.l.bf16 %v2605_v46  ;;  %v1688_v49 = vunpack.c.h.bf16 %v2605_v46 }
  0x71   : > { %2722 = vmatpush3.bf16.msra.mxu0 %v794_v18  ;;  %v948_v62 = vadd.f32 %v947_v54, %v933_v44  ;;  %v1339_v18 = vadd.f32 %v1338_v11, %v1324_v7  ;;  %v1689_v51 = vunpack.c.l.bf16 %v2607_v47  ;;  %v1690_v53 = vunpack.c.h.bf16 %v2607_v47  ;;  %v2609_v54 = vld [vmem:[%s3499_s2 + $0x90] sm:$0xff]  }
  0x72   : > { %2723 = vmatprep.subr.bf16.mxu0 %v3218_v52  ;;  %v1714_v56 = vmul.f32 %v1688_v49, %v1688_v49  ;;  %v1691_v57 = vunpack.c.l.bf16 %v2609_v54  ;;  %v1693_v3 = vunpack.c.l.bf16 %v2611_v0  ;;  %v1694_v6 = vunpack.c.h.bf16 %v2611_v0 }
  0x73   : > { %v949_v5 = vadd.f32 %v948_v62, %v934_v50  ;;  %v1340_v22 = vadd.f32 %v1339_v18, %v1325_v12  ;;  %2742 = vmatpush3.bf16.msra.mxu1 %v2586_v16  ;;  %v1715_v59 = vmul.f32 %v1689_v51, %v1689_v51  ;;  %v1716_v61 = vmul.f32 %v1690_v53, %v1690_v53 }
  0x74   : > { %2743 = vmatprep.subr.bf16.mxu1 %v3218_v52  ;;  %v1692_v62 = vunpack.c.h.bf16 %v2609_v54  ;;  %v1695_v11 = vunpack.c.l.bf16 %v2613_v8  ;;  %v1720_v14 = vmul.f32 %v1694_v6, %v1694_v6  ;;  %v767_v39 = vlaneseq }
  0x75   : > { %2724 = vmatpush3.bf16.msra.mxu0 %v796_v40  ;;  %v950_v10 = vadd.f32 %v949_v5, %v935_v60  ;;  %v1341_v27 = vadd.f32 %v1340_v22, %v1326_v19  ;;  %vm1019_vm12 = vcmask 130168   ;;  %vm1032_vm13 = vcmask 105568  }
  0x76   : > { %2725 = vmatprep.subr.bf16.mxu0 %v3218_v52  ;;  %v1718_v5 = vmul.f32 %v1692_v62, %v1692_v62  ;;  %v1721_v19 = vmul.f32 %v1695_v11, %v1695_v11  ;;  %v768_v51 = vshrl.u32 %v767_v39, 7  ;;  %vm1049_vm14 = vcmask 154768  }
  0x77   : > { %v951_v17 = vadd.f32 %v950_v10, %v936_v2  ;;  %v1342_v30 = vadd.f32 %v1341_v27, %v1327_v23  ;;  %2744 = vmatpush3.bf16.msra.mxu1 %v2588_v25  ;;  %v1717_v2 = vmul.f32 %v1691_v57, %v1691_v57  ;;  %v1719_v10 = vmul.f32 %v1693_v3, %v1693_v3 }
  0x78   : > { %2745 = vmatprep.subr.bf16.mxu1 %v3218_v52  ;;  %vm1062_vm15 = vcmask 80968   ;;  %vm1079_vm0 = vcmask 179368   ;;  %vm1092_vm1 = vcmask 56368   ;;  %vm1122_vm3 = vcmask 31768  }
  0x79   : > { %2726 = vmatpush3.bf16.msra.mxu0 %v798_v55  ;;  %v952_v21 = vadd.f32 %v951_v17, %v937_v9  ;;  %v1343_v34 = vadd.f32 %v1342_v30, %v1328_v28  ;;  %v1713_v55 = vmul.f32 %v1687_v48, %v1687_v48  ;;  %v2615_v17 = vld [vmem:[%s3499_s2 + $0xa8] sm:$0xff]   ;;  %vm1139_vm4 = vcmask 228568  }
  0x7a   : > { %2751 = vmatprep.subr.bf16.mxu0 %v3218_v52  ;;  %v1697_v20 = vunpack.c.l.bf16 %v2615_v17  ;;  %v1698_v23 = vunpack.c.h.bf16 %v2615_v17 }
  0x7b   : > { %v953_v26 = vadd.f32 %v952_v21, %v938_v15  ;;  %v1344_v37 = vadd.f32 %v1343_v34, %v1329_v31  ;;  %2746 = vmatpush3.bf16.msra.mxu1 %v2590_v33  ;;  %v1729_v60 = vadd.f32 %v1714_v56, %v1713_v55  ;;  %v1696_v15 = vunpack.c.h.bf16 %v2613_v8  ;;  %v2619_v34 = vld [vmem:[%s3499_s2 + $0xb8] sm:$0xff]  }
  0x7c   : > { %2728 = vmatmul.mubr.bf16.vlgmr.msra.gmra.mrb[0].mxu0 %v3519_v13  ;;  %v3553_v13 = vld [vmem:[%s3482_s13 + $0x8] sm:$0xff]   ;;  %v1723_v28 = vmul.f32 %v1697_v20, %v1697_v20  ;;  %v1724_v31 = vmul.f32 %v1698_v23, %v1698_v23  ;;  %v769_v56 = vsub.s32 0, %v768_v51 }
  0x7d   : > { %2767 = vmatprep.mubr.msk.bf16.mxu0 %vm3219_vm2, %v3218_v52  ;;  %v1345_v40 = vadd.f32 %v1344_v37, %v1330_v35  ;;  %v954_v50 = vrot.slane %v953_v26, 4  ;;  %2752 = vmatpush3.bf16.msra.mxu0 %v2605_v46  ;;  %v1730_v1 = vadd.f32 %v1729_v60, %v1715_v59  ;;  %v1722_v22 = vmul.f32 %v1696_v15, %v1696_v15 }
  0x7e   : > { %2748 = vmatmul.mubr.bf16.vlgmr.msra.gmra.mrb[0].mxu1 %v3553_v13  ;;  %2753 = vmatprep.subr.bf16.mxu0 %v3218_v52  ;;  %v1701_v37 = vunpack.c.l.bf16 %v2619_v34  ;;  %vm1109_vm2 = vcmask 203968  }
  0x7f   : > { %v1346_v42 = vadd.f32 %v1345_v40, %v1331_v38  ;;  %v955_v63 = vadd.f32 %v954_v50, %v953_v26  ;;  %v1731_v4 = vadd.f32 %v1730_v1, %v1716_v61  ;;  %v2617_v26 = vld [vmem:[%s3499_s2 + $0xb0] sm:$0xff]   ;;  %s2562_s2 = sshll.u32 %s3199_s25, 7 }
  0x80   : > { %v1699_v29 = vunpack.c.l.bf16 %v2617_v26  ;;  %v1700_v32 = vunpack.c.h.bf16 %v2617_v26  ;;  %v1727_v49 = vmul.f32 %v1701_v37, %v1701_v37  ;;  %v3579_v50 = vld [vmem:[%s3482_s13 + $0x10] sm:$0xff]   ;;  %s3224_s13 = smov (!%p2632_p13), 9  }
  0x81   : > { %v1347_v44 = vadd.f32 %v1346_v42, %v1332_v41  ;;  %2754 = vmatpush3.bf16.msra.mxu0 %v2607_v47  ;;  %v956_v7 = vrot.slane %v955_v63, 2  ;;  %v1732_v9 = vadd.f32 %v1731_v4, %v1717_v2  ;;  %v754_v47 = vld [vmem:[%s732_s19] sm:$0x1]  ;;  %s3225_s19 = smov (!%p2632_p13), 6  }
  0x82   : > { %2755 = vmatprep.subr.bf16.mxu0 %v3218_v52  ;;  %v1725_v36 = vmul.f32 %v1699_v29, %v1699_v29  ;;  %v1726_v42 = vmul.f32 %v1700_v32, %v1700_v32  ;;  %vm755_vm5 = vcmp.eq.s32.totalorder %v754_v47, 4294967295 }
  0x83   : > { %v3556_v45 = vadd.f32 %v1347_v44, %v1333_v43  ;;  %v1733_v12 = vadd.f32 %v1732_v9, %v1718_v5  ;;  %v957_v16 = vadd.f32 %v956_v7, %v955_v63  ;;  %v1702_v43 = vunpack.c.h.bf16 %v2619_v34 }
  0x84   : > { %v766_v57 = vsel %vm755_vm5, 1, %v3220_v58  ;;  %vm976_vm5 = vcmask 7168  }
  0x85   : > { %2756 = vmatpush3.bf16.msra.mxu0 %v2609_v54  ;;  %v1734_v18 = vadd.f32 %v1733_v12, %v1719_v10  ;;  %v958_v24 = vrot.slane %v957_v16, 1  ;;  %v1728_v54 = vmul.f32 %v1702_v43, %v1702_v43  ;;  %v770_v61 = vrot.slane %v766_v57, %v769_v56 }
  0x86   : > { %2757 = vmatprep.subr.bf16.mxu0 %v3218_v52  ;;  %v1291_v43 = vunpack.c.h.bf16 %v3553_v13 }
  0x87   : > { %v1735_v21 = vadd.f32 %v1734_v18, %v1720_v14  ;;  %v959_v33 = vadd.f32 %v958_v24, %v957_v16  ;;  %vm771_vm6 = vcmp.eq.s32.totalorder %v770_v61, 1 }
  0x89   : > { %2758 = vmatpush3.bf16.msra.mxu0 %v2611_v0  ;;  %v1736_v27 = vadd.f32 %v1735_v21, %v1721_v19  ;;  %v960_v44 = vadd.f32 1e-09, %v959_v33 }
  0x8a   : > { %2759 = vmatprep.subr.bf16.mxu0 %v3218_v52 }
  0x8b   : > { %v1737_v30 = vadd.f32 %v1736_v27, %v1722_v22 }
  0x8d   : > { %2760 = vmatpush3.bf16.msra.mxu0 %v2613_v8  ;;  %v1738_v35 = vadd.f32 %v1737_v30, %v1723_v28  ;;  %v1290_v30 = vunpack.c.l.bf16 %v3553_v13 }
  0x8e   : > { %2761 = vmatprep.subr.bf16.mxu0 %v3218_v52 }
  0x8f   : > { %v1739_v41 = vadd.f32 %v1738_v35, %v1724_v31 }
  0x91   : > { %2762 = vmatpush3.bf16.msra.mxu0 %v2615_v17  ;;  %v1740_v48 = vadd.f32 %v1739_v41, %v1725_v36 }
  0x92   : > { %2763 = vmatprep.subr.bf16.mxu0 %v3218_v52 }
  0x93   : > { %v1741_v53 = vadd.f32 %v1740_v48, %v1726_v42 }
  0x95   : > { %2764 = vmatpush3.bf16.msra.mxu0 %v2617_v26  ;;  %v1742_v55 = vadd.f32 %v1741_v53, %v1727_v49  ;;  %v777_v26 = vstv %s2562_s2  ;;  %v1309_v49 = vmul.f32 %v1291_v43, %v1291_v43  ;;  %s3231_s2 = smov (!%p2632_p13), 24  }
  0x96   : > { %2765 = vmatprep.subr.bf16.mxu0 %v3218_v52 }
  0x97   : > { %v3583_v59 = vadd.f32 %v1742_v55, %v1728_v54 }
  0x99   : > { %2766 = vmatpush3.bf16.msra.mxu0 %v2619_v34 }
  0x9c   : > { %2768 = vmatmul.mubr.bf16.vlgmr.msra.gmra.mrb[4].mxu0 %v3579_v50 }
  0xe1   : > { %v760_v60 = vpop.permute.xlu1 %759 }
  0xe2   : > { %vm764_vm7 = vcmp.eq.s32.totalorder %v760_v60, 1 }
  0xe3   : > { %vm3587_vm8 = vmor %vm764_vm7, %vm771_vm6  ;;  %vm1414_vm7 = vcmask 138368  }
  0xe5   : > { %v763_v1 = vpop.permute.xlu1 %762 }
  0xe6   : > { %vm765_vm9 = vcmp.eq.s32.totalorder %v763_v1, 1 }
  0xe7   : > { %vm3597_vm10 = vmor %vm765_vm9, %vm771_vm6  ;;  %vm1172_vm6 = vcmask 253168   ;;  %vm1427_vm9 = vcmask 113768  }
  0xf0   : > { %v916_v25 = vpop.xlane.xlu0 %915 }
  0xf1   : > { %v919_v40 = vadd.f32 1e-09, %v916_v25  ;;  %v776_v25 = vand.u32 127, %v767_v39  ;;  %v1308_v39 = vmul.f32 %v1290_v30, %v1290_v30  ;;  %v1009_v30 = vld [vmem:[#allocation2] sm:$0xff] }
  0xf3   : > { %3041 = vrsqrt.f32 %v919_v40  ;;  %v3612_v27 = vadd.s32 %v777_v26, %v776_v25 }
  0xf4   : > { %v918_v38 = vpop.xlane.xlu0 %917  ;;  %3043 = vrsqrt.f32 %v960_v44 }
  0xf5   : > { %v920_v46 = vadd.f32 1e-09, %v918_v38  ;;  %vm779_vm11 = vcmp.lt.s32.totalorder %v3612_v27, 200 }
  0xf7   : > { %3045 = vrsqrt.f32 %v920_v46 }
  0xfd   : > { %v3042_v62 = vpop.eup %3041 }
  0xfe   : > { %v3044_v63 = vpop.eup %3043 }
 0x101   : > { %v3046_v52 = vpop.eup %3045 }
 0x14f   : > { %v888_v0 = vpop.f32.mrb[0].mxu0 }
 0x150   : > { %v962_v2 = vmul.f32 %v3042_v62, %v888_v0  ;;  %v2729_v3 = vpop.f32.mrb[1].mxu0 }
 0x151   : > { %v891_v58 = vpop.f32.mrb[2].mxu0 }
 0x152   : > { %v964_v5 = vmul.f32 %v3044_v63, %v962_v2  ;;  %v963_v6 = vmul.f32 %v3046_v52, %v891_v58  ;;  %v2730_v7 = vpop.f32.mrb[3].mxu0  ;;  %v1283_v58 = vpop.f32.mrb[0].mxu1 }
 0x154   : > { %v3593_v8 = vsel %vm3587_vm8, 0.0, %v964_v5  ;;  %v965_v9 = vmul.f32 %v3044_v63, %v963_v6  ;;  %v2749_v5 = vpop.f32.mrb[1].mxu1 }
 0x155   : > { %v991_v10 = vmul.f32 -50.0, %v3593_v8  ;;  %v979_v12 = vmul.f32 10.0, %v3593_v8  ;;  %v985_v28 = vmul.f32 -10.0, %v3593_v8  ;;  %v2572_v6 = vadd.f32 -1.0, %v3593_v8 }
 0x156   : > { %v3604_v14 = vsel %vm3597_vm10, 0.0, %v965_v9 }
 0x157   : > { %v993_v15 = vmul.f32 %v991_v10, %v3593_v8  ;;  %v980_v16 = vmul.f32 10.0, %v3604_v14  ;;  %v986_v17 = vmul.f32 -10.0, %v3604_v14  ;;  %v992_v18 = vmul.f32 -50.0, %v3604_v14  ;;  %v1286_v10 = vpop.f32.mrb[2].mxu1 }
 0x158   : > { %v981_v19 = vmul.f32 1.442695, %v979_v12  ;;  %v987_v31 = vmul.f32 1.442695, %v985_v28  ;;  %v2573_v47 = vadd.f32 -1.0, %v3604_v14 }
 0x159   : > { %v994_v20 = vmul.f32 %v992_v18, %v3604_v14  ;;  %v995_v21 = vmul.f32 1.442695, %v993_v15  ;;  %v983_v22 = vmul.f32 1.442695, %v980_v16  ;;  %v989_v23 = vmul.f32 1.442695, %v986_v17 }
 0x15a   : > { %3047 = vpow2.f32 %v981_v19  ;;  %v1157_v53 = vmul.f32 -500000.0, %v2573_v47  ;;  %v1156_v9 = vmul.f32 -500000.0, %v2572_v6  ;;  %v2750_v15 = vpop.f32.mrb[3].mxu1 }
 0x15b   : > { %v997_v24 = vmul.f32 1.442695, %v994_v20  ;;  %3049 = vpow2.f32 %v995_v21 }
 0x15c   : > { %3051 = vpow2.f32 %v983_v22  ;;  %v1159_v57 = vmul.f32 %v2573_v47, %v1157_v53  ;;  %v1158_v16 = vmul.f32 %v2572_v6, %v1156_v9 }
 0x15d   : > { %3053 = vpow2.f32 %v997_v24 }
 0x15e   : > { %3055 = vpow2.f32 %v989_v23  ;;  %v1162_v13 = vmul.f32 1.442695, %v1159_v57  ;;  %v1160_v18 = vmul.f32 1.442695, %v1158_v16  ;;  %v1349_v23 = vrot.slane %v3556_v45, 4 }
 0x15f   : > { %3057 = vpow2.f32 %v987_v31 }
 0x160   : > { %3059 = vpow2.f32 %v1162_v13  ;;  %v1350_v24 = vadd.f32 %v1349_v23, %v3556_v45 }
 0x161   : > { %3061 = vpow2.f32 %v1160_v18 }
 0x162   : > { %v1351_v25 = vrot.slane %v1350_v24, 2 }
 0x164   : > { %v3048_v29 = vpop.eup %3047  ;;  %v1352_v26 = vadd.f32 %v1351_v25, %v1350_v24 }
 0x165   : > { %v3050_v32 = vpop.eup %3049  ;;  %v1001_v62 = vmul.f32 %v3048_v29, %v3048_v29 }
 0x166   : > { %v3052_v33 = vpop.eup %3051  ;;  %v999_v34 = vsel %vm779_vm11, %v3050_v32, 0.0  ;;  %v1353_v28 = vrot.slane %v1352_v26, 1 }
 0x167   : > { %v3054_v35 = vpop.eup %3053  ;;  %v1005_v36 = vmul.f32 %v3048_v29, %v999_v34  ;;  %v1002_v42 = vmul.f32 %v3052_v33, %v3052_v33 }
 0x168   : > { %v3056_v37 = vpop.eup %3055  ;;  %v1000_v38 = vsel %vm779_vm11, %v3054_v35, 0.0  ;;  %v1354_v29 = vadd.f32 %v1353_v28, %v1352_v26 }
 0x169   : > { %1011 = vadd.xlane.f32.xlu0 %v1005_v36  ;;  %v1006_v40 = vmul.f32 %v3052_v33, %v1000_v38  ;;  %v1008_v41 = vmul.f32 %v3056_v37, %v1000_v38  ;;  %v1004_v46 = vmul.f32 %v3056_v37, %v3056_v37  ;;  %v3058_v55 = vpop.eup %3057  ;;  %v1035_v63 = vmul.f32 %v1005_v36, %v1001_v62  ;;  %v1010_v33 = vld [vmem:[#allocation2 + $0x8] sm:$0xff] }
 0x16a   : > { %v1007_v56 = vmul.f32 %v3058_v55, %v999_v34  ;;  %v1003_v1 = vmul.f32 %v3058_v55, %v3058_v55  ;;  %v3060_v3 = vpop.eup %3059  ;;  %v1355_v35 = vadd.f32 1e-09, %v1354_v29 }
 0x16b   : > { %1013 = vadd.xlane.f32.xlu1 %v1006_v40  ;;  %v1036_v44 = vmul.f32 %v1006_v40, %v1002_v42  ;;  %v1038_v51 = vmul.f32 %v1008_v41, %v1004_v46  ;;  %v1065_v7 = vmul.f32 %v1035_v63, %v1001_v62  ;;  %v3062_v22 = vpop.eup %3061 }
 0x16c   : > { %v1037_v2 = vmul.f32 %v1007_v56, %v1003_v1  ;;  %3063 = vrsqrt.f32 %v1355_v35 }
 0x16d   : > { %1310 = vadd.xlane.f32.xlu0 %v1308_v39  ;;  %v1066_v48 = vmul.f32 %v1036_v44, %v1002_v42  ;;  %v1068_v54 = vmul.f32 %v1038_v51, %v1004_v46  ;;  %v1095_v17 = vmul.f32 %v1065_v7, %v1001_v62 }
 0x16e   : > { %v1067_v12 = vmul.f32 %v1037_v2, %v1003_v1 }
 0x16f   : > { %1073 = vadd.xlane.f32.xlu1 %v1066_v48  ;;  %v1096_v60 = vmul.f32 %v1066_v48, %v1002_v42  ;;  %v1098_v61 = vmul.f32 %v1068_v54, %v1004_v46  ;;  %v1125_v20 = vmul.f32 %v1095_v17, %v1001_v62 }
 0x170   : > { %v1097_v19 = vmul.f32 %v1067_v12, %v1003_v1 }
 0x171   : > { %1312 = vadd.xlane.f32.xlu0 %v1309_v49  ;;  %v1126_v52 = vmul.f32 %v1096_v60, %v1002_v42  ;;  %v1128_v0 = vmul.f32 %v1098_v61, %v1004_v46 }
 0x172   : > { %v1127_v21 = vmul.f32 %v1097_v19, %v1003_v1 }
 0x173   : > { %1086 = vadd.xlane.f32.xlu1 %v1068_v54 }
 0x175   : > { %1024 = vadd.xlane.f32.xlu0 %v1007_v56 }
 0x176   : > { %v3064_v47 = vpop.eup %3063 }
 0x177   : > { %1103 = vadd.xlane.f32.xlu1 %v1096_v60 }
 0x179   : > { %1026 = vadd.xlane.f32.xlu0 %v1008_v41 }
 0x17b   : > { %1116 = vadd.xlane.f32.xlu1 %v1098_v61 }
 0x17d   : > { %1041 = vadd.xlane.f32.xlu0 %v1035_v63 }
 0x17f   : > { %1133 = vadd.xlane.f32.xlu1 %v1126_v52 }
 0x181   : > { %1043 = vadd.xlane.f32.xlu0 %v1036_v44 }
 0x183   : > { %1146 = vadd.xlane.f32.xlu1 %v1128_v0 }
 0x185   : > { %1054 = vadd.xlane.f32.xlu0 %v1037_v2 }
 0x187   : > { %1168 = vadd.xlane.f32.xlu1 %v3060_v3 }
 0x189   : > { %1056 = vadd.xlane.f32.xlu0 %v1038_v51 }
 0x18d   : > { %1071 = vadd.xlane.f32.xlu0 %v1065_v7 }
 0x191   : > { %1084 = vadd.xlane.f32.xlu0 %v1067_v12 }
 0x195   : > { %1101 = vadd.xlane.f32.xlu0 %v1095_v17 }
 0x199   : > { %1114 = vadd.xlane.f32.xlu0 %v1097_v19 }
 0x19d   : > { %1131 = vadd.xlane.f32.xlu0 %v1125_v20 }
 0x1a1   : > { %1144 = vadd.xlane.f32.xlu0 %v1127_v21 }
 0x1a5   : > { %1166 = vadd.xlane.f32.xlu0 %v3062_v22 }
 0x1f6   : > { %v1012_v31 = vpop.xlane.xlu0 %1011 }
 0x1f7   : > { %v1015_v32 = vmul.f32 0.60653067, %v1012_v31 }
 0x1f8   : > { %v1014_v34 = vpop.xlane.xlu1 %1013 }
 0x1f9   : > { %v1017_v36 = vadd.f32 %v1015_v32, %v1009_v30  ;;  %v1016_v37 = vmul.f32 0.60653067, %v1014_v34  ;;  %v1685_v34 = vunpack.c.l.bf16 %v3579_v50 }
 0x1fa   : > { %v1311_v38 = vpop.xlane.xlu0 %1310 }
 0x1fb   : > { %1020 = vst.msk [vmem:[#allocation2] sm:$0xff] %vm1019_vm12, %v1017_v36  ;;  %v1018_v39 = vadd.f32 %v1016_v37, %v1010_v33  ;;  %v1314_v40 = vadd.f32 1e-09, %v1311_v38 }
 0x1fd   : > { %1021 = vst.msk [vmem:[#allocation2 + $0x8] sm:$0xff] %vm1019_vm12, %v1018_v39  ;;  %3065 = vrsqrt.f32 %v1314_v40  ;;  %vm1444_vm12 = vcmask 162968  }
 0x1fe   : > { %v1313_v45 = vpop.xlane.xlu0 %1312 }
 0x1ff   : > { %v1315_v41 = vadd.f32 1e-09, %v1313_v45  ;;  %v1703_v45 = vmul.f32 %v1685_v34, %v1685_v34 }
 0x201   : > { %3067 = vrsqrt.f32 %v1315_v41  ;;  %v1686_v41 = vunpack.c.h.bf16 %v3579_v50 }
 0x202   : > { %v1025_v42 = vpop.xlane.xlu0 %1024  ;;  %v1022_v44 = vld [vmem:[#allocation2] sm:$0xff] }
 0x203   : > { %v1028_v43 = vmul.f32 0.60653067, %v1025_v42 }
 0x204   : > { %v1023_v54 = vld [vmem:[#allocation2 + $0x8] sm:$0xff] }
 0x205   : > { %v1030_v46 = vadd.f32 %v1028_v43, %v1022_v44  ;;  %v1074_v43 = vpop.xlane.xlu1 %1073 }
 0x206   : > { %v1027_v48 = vpop.xlane.xlu0 %1026 }
 0x207   : > { %v3066_v49 = vpop.eup %3065  ;;  %1033 = vst.msk [vmem:[#allocation2] sm:$0xff] %vm1032_vm13, %v1030_v46  ;;  %v1029_v51 = vmul.f32 0.60653067, %v1027_v48 }
 0x208   : > { %v1357_v53 = vmul.f32 %v3066_v49, %v1283_v58  ;;  %v1076_v49 = vmul.f32 3.7266532e-06, %v1074_v43 }
 0x209   : > { %v1031_v55 = vadd.f32 %v1029_v51, %v1023_v54  ;;  %v1704_v51 = vmul.f32 %v1686_v41, %v1686_v41 }
 0x20a   : > { %v1359_v56 = vmul.f32 %v3064_v47, %v1357_v53  ;;  %v1042_v57 = vpop.xlane.xlu0 %1041 }
 0x20b   : > { %v3068_v60 = vpop.eup %3067  ;;  %1034 = vst.msk [vmem:[#allocation2 + $0x8] sm:$0xff] %vm1032_vm13, %v1031_v55  ;;  %v1045_v63 = vmul.f32 0.011108996, %v1042_v57  ;;  %vm1504_vm13 = vcmask 212168  }
 0x20c   : > { %v3628_v13 = vsel %vm3587_vm8, 0.0, %v1359_v56  ;;  %v1358_v61 = vmul.f32 %v3068_v60, %v1286_v10 }
 0x20d   : > { %v1386_v62 = vmul.f32 -50.0, %v3628_v13  ;;  %v1374_v52 = vmul.f32 10.0, %v3628_v13  ;;  %v1380_v20 = vmul.f32 -10.0, %v3628_v13 }
 0x20e   : > { %v1360_v0 = vmul.f32 %v3064_v47, %v1358_v61  ;;  %v1039_v1 = vld [vmem:[#allocation2] sm:$0xff]  ;;  %v1044_v2 = vpop.xlane.xlu0 %1043 }
 0x20f   : > { %v1388_v3 = vmul.f32 %v1386_v62, %v3628_v13  ;;  %v1047_v58 = vadd.f32 %v1045_v63, %v1039_v1  ;;  %v1376_v6 = vmul.f32 1.442695, %v1374_v52  ;;  %v1046_v9 = vmul.f32 0.011108996, %v1044_v2  ;;  %v1087_v52 = vpop.xlane.xlu1 %1086 }
 0x210   : > { %v3635_v5 = vsel %vm3597_vm10, 0.0, %v1360_v0  ;;  %v1382_v25 = vmul.f32 1.442695, %v1380_v20 }
 0x211   : > { %v1387_v7 = vmul.f32 -50.0, %v3635_v5  ;;  %1050 = vst.msk [vmem:[#allocation2] sm:$0xff] %vm1049_vm14, %v1047_v58  ;;  %v1390_v10 = vmul.f32 1.442695, %v1388_v3  ;;  %v1375_v16 = vmul.f32 10.0, %v3635_v5  ;;  %v1381_v26 = vmul.f32 -10.0, %v3635_v5 }
 0x212   : > { %v1040_v12 = vld [vmem:[#allocation2 + $0x8] sm:$0xff]  ;;  %v1055_v15 = vpop.xlane.xlu0 %1054  ;;  %v1089_v58 = vmul.f32 3.7266532e-06, %v1087_v52 }
 0x213   : > { %v1389_v17 = vmul.f32 %v1387_v7, %v3635_v5  ;;  %v1048_v18 = vadd.f32 %v1046_v9, %v1040_v12  ;;  %3069 = vpow2.f32 %v1390_v10  ;;  %v1378_v19 = vmul.f32 1.442695, %v1375_v16  ;;  %v1104_v20 = vpop.xlane.xlu1 %1103 }
 0x214   : > { %3071 = vpow2.f32 %v1376_v6  ;;  %v1058_v22 = vmul.f32 0.011108996, %v1055_v15  ;;  %v1384_v31 = vmul.f32 1.442695, %v1381_v26  ;;  %v2601_v16 = vadd.f32 -1.0, %v3628_v13 }
 0x215   : > { %1051 = vst.msk [vmem:[#allocation2 + $0x8] sm:$0xff] %vm1049_vm14, %v1048_v18  ;;  %v1392_v21 = vmul.f32 1.442695, %v1389_v17  ;;  %vm1517_vm14 = vcmask 39968  }
 0x216   : > { %v1057_v24 = vpop.xlane.xlu0 %1056 }
 0x217   : > { %3073 = vpow2.f32 %v1392_v21  ;;  %v1059_v29 = vmul.f32 0.011108996, %v1057_v24 }
 0x218   : > { %v1052_v23 = vld [vmem:[#allocation2] sm:$0xff]  ;;  %3075 = vpow2.f32 %v1378_v19 }
 0x219   : > { %v1060_v28 = vadd.f32 %v1058_v22, %v1052_v23  ;;  %3077 = vpow2.f32 %v1382_v25  ;;  %v1551_v22 = vmul.f32 -500000.0, %v2601_v16  ;;  %v2602_v23 = vadd.f32 -1.0, %v3635_v5 }
 0x21a   : > { %v1072_v36 = vpop.xlane.xlu0 %1071  ;;  %3079 = vpow2.f32 %v1384_v31 }
 0x21b   : > { %1063 = vst.msk [vmem:[#allocation2] sm:$0xff] %vm1062_vm15, %v1060_v28  ;;  %v1075_v40 = vmul.f32 3.7266532e-06, %v1072_v36  ;;  %v1106_v28 = vmul.f32 2.2897349e-11, %v1104_v20 }
 0x21c   : > { %v1053_v30 = vld [vmem:[#allocation2 + $0x8] sm:$0xff]  ;;  %v1552_v31 = vmul.f32 -500000.0, %v2602_v23 }
 0x21d   : > { %v3070_v32 = vpop.eup %3069  ;;  %v1061_v33 = vadd.f32 %v1059_v29, %v1053_v30  ;;  %v1553_v30 = vmul.f32 %v2601_v16, %v1551_v22 }
 0x21e   : > { %v3072_v35 = vpop.eup %3071  ;;  %v1394_v37 = vsel %vm779_vm11, %v3070_v32, 0.0  ;;  %v1085_v57 = vpop.xlane.xlu0 %1084 }
 0x21f   : > { %1064 = vst.msk [vmem:[#allocation2 + $0x8] sm:$0xff] %vm1062_vm15, %v1061_v33  ;;  %v1400_v38 = vmul.f32 %v3072_v35, %v1394_v37  ;;  %v3652_v50 = vmul.f32 %v3072_v35, %v3072_v35  ;;  %v1088_v61 = vmul.f32 3.7266532e-06, %v1085_v57  ;;  %v1555_v36 = vmul.f32 1.442695, %v1553_v30 }
 0x220   : > { %vm1534_vm15 = vcmask 236768  }
 0x221   : > { %v3074_v39 = vpop.eup %3073  ;;  %1406 = vadd.xlane.f32.xlu0 %v1400_v38  ;;  %v1430_v62 = vmul.f32 %v1400_v38, %v3652_v50  ;;  %3081 = vpow2.f32 %v1555_v36 }
 0x222   : > { %v3076_v42 = vpop.eup %3075  ;;  %v1069_v44 = vld [vmem:[#allocation2] sm:$0xff]  ;;  %v1395_v46 = vsel %vm779_vm11, %v3074_v39, 0.0  ;;  %v1102_v15 = vpop.xlane.xlu0 %1101 }
 0x223   : > { %v1077_v47 = vadd.f32 %v1075_v40, %v1069_v44  ;;  %v1401_v48 = vmul.f32 %v3076_v42, %v1395_v46  ;;  %v3078_v53 = vpop.eup %3077  ;;  %v3657_v3 = vmul.f32 %v3076_v42, %v3076_v42  ;;  %v1460_v17 = vmul.f32 %v1430_v62, %v3652_v50 }
 0x224   : > { %v1402_v56 = vmul.f32 %v3078_v53, %v1394_v37  ;;  %v3080_v60 = vpop.eup %3079  ;;  %v3655_v2 = vmul.f32 %v3078_v53, %v3078_v53  ;;  %v1105_v19 = vmul.f32 2.2897349e-11, %v1102_v15  ;;  %v1554_v37 = vmul.f32 %v2602_v23, %v1552_v31 }
 0x225   : > { %1080 = vst.msk [vmem:[#allocation2] sm:$0xff] %vm1079_vm0, %v1077_v47  ;;  %1705 = vadd.xlane.f32.xlu0 %v1703_v45  ;;  %1408 = vadd.xlane.f32.xlu1 %v1401_v48  ;;  %v1403_v63 = vmul.f32 %v3080_v60, %v1395_v46  ;;  %v1431_v7 = vmul.f32 %v1401_v48, %v3657_v3  ;;  %v1117_v45 = vpop.xlane.xlu1 %1116 }
 0x226   : > { %v1070_v54 = vld [vmem:[#allocation2 + $0x8] sm:$0xff]  ;;  %v1432_v6 = vmul.f32 %v1402_v56, %v3655_v2  ;;  %v3662_v12 = vmul.f32 %v3080_v60, %v3080_v60  ;;  %v1490_v33 = vmul.f32 %v1460_v17, %v3652_v50  ;;  %v1115_v35 = vpop.xlane.xlu0 %1114  ;;  %v1557_v43 = vmul.f32 1.442695, %v1554_v37 }
 0x227   : > { %v1078_v55 = vadd.f32 %v1076_v49, %v1070_v54  ;;  %v1461_v26 = vmul.f32 %v1431_v7, %v3657_v3  ;;  %v1118_v38 = vmul.f32 2.2897349e-11, %v1115_v35  ;;  %v1119_v44 = vmul.f32 2.2897349e-11, %v1117_v45  ;;  %v3680_v49 = vpop.f32.mrb[4].mxu0 }
 0x228   : > { %v1433_v18 = vmul.f32 %v1403_v63, %v3662_v12  ;;  %v1462_v25 = vmul.f32 %v1432_v6, %v3655_v2  ;;  %v1520_v46 = vmul.f32 %v1490_v33, %v3652_v50  ;;  %v2769_v53 = vpop.f32.mrb[5].mxu0  ;;  %3083 = vpow2.f32 %v1557_v43 }
 0x229   : > { %1081 = vst.msk [vmem:[#allocation2 + $0x8] sm:$0xff] %vm1079_vm0, %v1078_v55  ;;  %1419 = vadd.xlane.f32.xlu0 %v1402_v56  ;;  %1707 = vadd.xlane.f32.xlu1 %v1704_v51  ;;  %v1491_v40 = vmul.f32 %v1461_v26, %v3657_v3  ;;  %v3682_v55 = vpop.f32.mrb[6].mxu0  ;;  %vm1371_vm0 = vcmask 15368  }
 0x22a   : > { %v1463_v34 = vmul.f32 %v1433_v18, %v3662_v12  ;;  %v1492_v39 = vmul.f32 %v1462_v25, %v3655_v2  ;;  %v1132_v54 = vpop.xlane.xlu0 %1131  ;;  %v2770_v50 = vpop.f32.mrb[7].mxu0 }
 0x22b   : > { %v1521_v57 = vmul.f32 %v1491_v40, %v3657_v3  ;;  %v1135_v60 = vmul.f32 2.5767572e-18, %v1132_v54 }
 0x22c   : > { %v1082_v0 = vld [vmem:[#allocation2] sm:$0xff]  ;;  %v1493_v47 = vmul.f32 %v1463_v34, %v3662_v12  ;;  %v1522_v56 = vmul.f32 %v1492_v39, %v3655_v2 }
 0x22d   : > { %v1090_v1 = vadd.f32 %v1088_v61, %v1082_v0  ;;  %1436 = vadd.xlane.f32.xlu0 %v1430_v62  ;;  %1421 = vadd.xlane.f32.xlu1 %v1403_v63  ;;  %v1134_v61 = vpop.xlane.xlu1 %1133  ;;  %v3082_v0 = vpop.eup %3081 }
 0x22e   : > { %v1523_v52 = vmul.f32 %v1493_v47, %v3662_v12 }
 0x22f   : > { %1093 = vst.msk [vmem:[#allocation2] sm:$0xff] %vm1092_vm1, %v1090_v1  ;;  %v1136_v1 = vmul.f32 2.5767572e-18, %v1134_v61 }
 0x230   : > { %v1083_v9 = vld [vmem:[#allocation2 + $0x8] sm:$0xff] }
 0x231   : > { %v1091_v10 = vadd.f32 %v1089_v58, %v1083_v9  ;;  %1449 = vadd.xlane.f32.xlu0 %v1432_v6  ;;  %1438 = vadd.xlane.f32.xlu1 %v1431_v7  ;;  %v1145_v7 = vpop.xlane.xlu0 %1144  ;;  %v1147_v9 = vpop.xlane.xlu1 %1146 }
 0x232   : > { %v3084_v2 = vpop.eup %3083  ;;  %v1148_v3 = vmul.f32 2.5767572e-18, %v1145_v7  ;;  %v1149_v16 = vmul.f32 2.5767572e-18, %v1147_v9 }
 0x233   : > { %1094 = vst.msk [vmem:[#allocation2 + $0x8] sm:$0xff] %vm1092_vm1, %v1091_v10  ;;  %vm1567_vm1 = vcmask 261368  }
 0x235   : > { %1466 = vadd.xlane.f32.xlu0 %v1460_v17  ;;  %1451 = vadd.xlane.f32.xlu1 %v1433_v18 }
 0x236   : > { %v1099_v21 = vld [vmem:[#allocation2] sm:$0xff] }
 0x237   : > { %v1107_v24 = vadd.f32 %v1105_v19, %v1099_v21  ;;  %v1167_v19 = vpop.xlane.xlu0 %1166  ;;  %v1169_v21 = vpop.xlane.xlu1 %1168 }
 0x239   : > { %1110 = vst.msk [vmem:[#allocation2] sm:$0xff] %vm1109_vm2, %v1107_v24  ;;  %1479 = vadd.xlane.f32.xlu0 %v1462_v25  ;;  %1468 = vadd.xlane.f32.xlu1 %v1461_v26  ;;  %v1744_v24 = vrot.slane %v3583_v59, 4 }
 0x23a   : > { %v1100_v29 = vld [vmem:[#allocation2 + $0x8] sm:$0xff] }
 0x23b   : > { %v1108_v32 = vadd.f32 %v1106_v28, %v1100_v29  ;;  %v1745_v25 = vadd.f32 %v1744_v24, %v3583_v59 }
 0x23d   : > { %1111 = vst.msk [vmem:[#allocation2 + $0x8] sm:$0xff] %vm1109_vm2, %v1108_v32  ;;  %1496 = vadd.xlane.f32.xlu0 %v1490_v33  ;;  %1481 = vadd.xlane.f32.xlu1 %v1463_v34  ;;  %v1746_v26 = vrot.slane %v1745_v25, 2  ;;  %vm1809_vm2 = vcmask 146568  }
 0x23f   : > { %v1747_v28 = vadd.f32 %v1746_v26, %v1745_v25 }
 0x240   : > { %v1112_v41 = vld [vmem:[#allocation2] sm:$0xff] }
 0x241   : > { %v1120_v42 = vadd.f32 %v1118_v38, %v1112_v41  ;;  %1509 = vadd.xlane.f32.xlu0 %v1492_v39  ;;  %1498 = vadd.xlane.f32.xlu1 %v1491_v40  ;;  %v1748_v29 = vrot.slane %v1747_v28, 1 }
 0x243   : > { %1123 = vst.msk [vmem:[#allocation2] sm:$0xff] %vm1122_vm3, %v1120_v42  ;;  %v1749_v30 = vadd.f32 %v1748_v29, %v1747_v28 }
 0x244   : > { %v1113_v48 = vld [vmem:[#allocation2 + $0x8] sm:$0xff] }
 0x245   : > { %v1121_v51 = vadd.f32 %v1119_v44, %v1113_v48  ;;  %1526 = vadd.xlane.f32.xlu0 %v1520_v46  ;;  %1511 = vadd.xlane.f32.xlu1 %v1493_v47  ;;  %v1750_v34 = vadd.f32 1e-09, %v1749_v30 }
 0x247   : > { %1124 = vst.msk [vmem:[#allocation2 + $0x8] sm:$0xff] %vm1122_vm3, %v1121_v51  ;;  %3085 = vrsqrt.f32 %v1750_v34  ;;  %vm1822_vm3 = vcmask 121968  }
 0x249   : > { %1539 = vadd.xlane.f32.xlu0 %v1522_v56  ;;  %1528 = vadd.xlane.f32.xlu1 %v1521_v57 }
 0x24a   : > { %v1129_v62 = vld [vmem:[#allocation2] sm:$0xff] }
 0x24b   : > { %v1137_v63 = vadd.f32 %v1135_v60, %v1129_v62 }
 0x24d   : > { %1140 = vst.msk [vmem:[#allocation2] sm:$0xff] %vm1139_vm4, %v1137_v63  ;;  %1561 = vadd.xlane.f32.xlu0 %v3082_v0  ;;  %1541 = vadd.xlane.f32.xlu1 %v1523_v52 }
 0x24e   : > { %v1130_v58 = vld [vmem:[#allocation2 + $0x8] sm:$0xff] }
 0x24f   : > { %v1138_v6 = vadd.f32 %v1136_v1, %v1130_v58 }
 0x251   : > { %1141 = vst.msk [vmem:[#allocation2 + $0x8] sm:$0xff] %vm1139_vm4, %v1138_v6  ;;  %1563 = vadd.xlane.f32.xlu1 %v3084_v2  ;;  %v3086_v51 = vpop.eup %3085  ;;  %vm1839_vm4 = vcmask 171168  }
 0x254   : > { %v1142_v10 = vld [vmem:[#allocation2] sm:$0xff] }
 0x255   : > { %v1150_v15 = vadd.f32 %v1148_v3, %v1142_v10 }
 0x257   : > { %1152 = vst.msk [vmem:[#allocation2] sm:$0xff] %vm976_vm5, %v1150_v15 }
 0x258   : > { %v1143_v12 = vld [vmem:[#allocation2 + $0x8] sm:$0xff] }
 0x259   : > { %v1151_v17 = vadd.f32 %v1149_v16, %v1143_v12 }
 0x25b   : > { %1153 = vst.msk [vmem:[#allocation2 + $0x8] sm:$0xff] %vm976_vm5, %v1151_v17 }
 0x25e   : > { %v1164_v18 = vld [vmem:[#allocation2] sm:$0xff] }
 0x25f   : > { %v1170_v20 = vadd.f32 %v1167_v19, %v1164_v18 }
 0x261   : > { %1173 = vst.msk [vmem:[#allocation2] sm:$0xff] %vm1172_vm6, %v1170_v20 }
 0x262   : > { %v1165_v22 = vld [vmem:[#allocation2 + $0x8] sm:$0xff] }
 0x263   : > { %v1171_v23 = vadd.f32 %v1169_v21, %v1165_v22 }
 0x265   : > { %1174 = vst.msk [vmem:[#allocation2 + $0x8] sm:$0xff] %vm1172_vm6, %v1171_v23  ;;  %vm1852_vm6 = vcmask 97368  }
 0x268   : > { %v1404_v33 = vld [vmem:[#allocation2] sm:$0xff] }
 0x26c   : > { %v1405_v40 = vld [vmem:[#allocation2 + $0x8] sm:$0xff] }
 0x2ae   : > { %v1407_v31 = vpop.xlane.xlu0 %1406 }
 0x2af   : > { %v1410_v32 = vmul.f32 0.60653067, %v1407_v31 }
 0x2b1   : > { %v1412_v35 = vadd.f32 %v1410_v32, %v1404_v33 }
 0x2b2   : > { %v1706_v36 = vpop.xlane.xlu0 %1705  ;;  %v1409_v37 = vpop.xlane.xlu1 %1408 }
 0x2b3   : > { %1415 = vst.msk [vmem:[#allocation2] sm:$0xff] %vm1414_vm7, %v1412_v35  ;;  %v1709_v38 = vadd.f32 1e-09, %v1706_v36  ;;  %v1411_v39 = vmul.f32 0.60653067, %v1409_v37 }
 0x2b5   : > { %3087 = vrsqrt.f32 %v1709_v38  ;;  %v1413_v45 = vadd.f32 %v1411_v39, %v1405_v40 }
 0x2b6   : > { %v1420_v59 = vpop.xlane.xlu0 %1419  ;;  %v1708_v41 = vpop.xlane.xlu1 %1707 }
 0x2b7   : > { %1416 = vst.msk [vmem:[#allocation2 + $0x8] sm:$0xff] %vm1414_vm7, %v1413_v45  ;;  %v1710_v42 = vadd.f32 1e-09, %v1708_v41  ;;  %v1423_v43 = vmul.f32 0.60653067, %v1420_v59  ;;  %vm1869_vm7 = vcmask 195768  }
 0x2b9   : > { %3089 = vrsqrt.f32 %v1710_v42 }
 0x2ba   : > { %v1417_v44 = vld [vmem:[#allocation2] sm:$0xff]  ;;  %v1422_v46 = vpop.xlane.xlu1 %1421  ;;  %v1437_v57 = vpop.xlane.xlu0 %1436 }
 0x2bb   : > { %v1425_v47 = vadd.f32 %v1423_v43, %v1417_v44  ;;  %v1424_v48 = vmul.f32 0.60653067, %v1422_v46  ;;  %v1440_v62 = vmul.f32 0.011108996, %v1437_v57 }
 0x2bd   : > { %1428 = vst.msk [vmem:[#allocation2] sm:$0xff] %vm1427_vm9, %v1425_v47 }
 0x2be   : > { %v1418_v53 = vld [vmem:[#allocation2 + $0x8] sm:$0xff]  ;;  %v1439_v0 = vpop.xlane.xlu1 %1438  ;;  %v1450_v17 = vpop.xlane.xlu0 %1449 }
 0x2bf   : > { %v3088_v54 = vpop.eup %3087  ;;  %v1426_v56 = vadd.f32 %v1424_v48, %v1418_v53  ;;  %v1441_v9 = vmul.f32 0.011108996, %v1439_v0  ;;  %v1453_v22 = vmul.f32 0.011108996, %v1450_v17 }
 0x2c0   : > { %v1752_v50 = vmul.f32 %v3088_v54, %v3680_v49 }
 0x2c1   : > { %1429 = vst.msk [vmem:[#allocation2 + $0x8] sm:$0xff] %vm1427_vm9, %v1426_v56  ;;  %vm1882_vm9 = vcmask 72768  }
 0x2c2   : > { %v1754_v60 = vmul.f32 %v3086_v51, %v1752_v50  ;;  %v1452_v25 = vpop.xlane.xlu1 %1451  ;;  %v1467_v32 = vpop.xlane.xlu0 %1466 }
 0x2c3   : > { %v3090_v61 = vpop.eup %3089  ;;  %v1454_v29 = vmul.f32 0.011108996, %v1452_v25  ;;  %v1470_v36 = vmul.f32 3.7266532e-06, %v1467_v32 }
 0x2c4   : > { %v1434_v63 = vld [vmem:[#allocation2] sm:$0xff]  ;;  %v3695_v52 = vsel %vm3587_vm8, 0.0, %v1754_v60  ;;  %v1753_v1 = vmul.f32 %v3090_v61, %v3682_v55  ;;  %vm1457_vm8 = vcmask 89168  }
 0x2c5   : > { %v1442_v58 = vadd.f32 %v1440_v62, %v1434_v63  ;;  %v1781_v6 = vmul.f32 -50.0, %v3695_v52  ;;  %v1769_v2 = vmul.f32 10.0, %v3695_v52  ;;  %v1775_v49 = vmul.f32 -10.0, %v3695_v52 }
 0x2c6   : > { %v1755_v7 = vmul.f32 %v3086_v51, %v1753_v1  ;;  %v1469_v40 = vpop.xlane.xlu1 %1468  ;;  %v1480_v54 = vpop.xlane.xlu0 %1479 }
 0x2c7   : > { %1445 = vst.msk [vmem:[#allocation2] sm:$0xff] %vm1444_vm12, %v1442_v58  ;;  %v1783_v3 = vmul.f32 %v1781_v6, %v3695_v52  ;;  %v1771_v15 = vmul.f32 1.442695, %v1769_v2  ;;  %v1777_v18 = vmul.f32 1.442695, %v1775_v49 }
 0x2c8   : > { %v1435_v10 = vld [vmem:[#allocation2 + $0x8] sm:$0xff]  ;;  %v3705_v4 = vsel %vm3597_vm10, 0.0, %v1755_v7  ;;  %vm1474_vm10 = vcmask 187568   ;;  %v1471_v43 = vmul.f32 3.7266532e-06, %v1469_v40 }
 0x2c9   : > { %v1443_v55 = vadd.f32 %v1441_v9, %v1435_v10  ;;  %v1782_v16 = vmul.f32 -50.0, %v3705_v4  ;;  %v1785_v12 = vmul.f32 1.442695, %v1783_v3  ;;  %v1770_v19 = vmul.f32 10.0, %v3705_v4 }
 0x2ca   : > { %v1776_v11 = vmul.f32 -10.0, %v3705_v4  ;;  %v1483_v50 = vmul.f32 3.7266532e-06, %v1480_v54  ;;  %v1482_v62 = vpop.xlane.xlu1 %1481  ;;  %v1497_v9 = vpop.xlane.xlu0 %1496 }
 0x2cb   : > { %1446 = vst.msk [vmem:[#allocation2 + $0x8] sm:$0xff] %vm1444_vm12, %v1443_v55  ;;  %v1784_v20 = vmul.f32 %v1782_v16, %v3705_v4  ;;  %3091 = vpow2.f32 %v1785_v12  ;;  %v1773_v21 = vmul.f32 1.442695, %v1770_v19  ;;  %v1484_v58 = vmul.f32 3.7266532e-06, %v1482_v62 }
 0x2cc   : > { %3093 = vpow2.f32 %v1771_v15  ;;  %v1779_v28 = vmul.f32 1.442695, %v1776_v11  ;;  %v1500_v10 = vmul.f32 2.2897349e-11, %v1497_v9  ;;  %vm1899_vm12 = vcmask 220368  }
 0x2cd   : > { %v1787_v23 = vmul.f32 1.442695, %v1784_v20  ;;  %3095 = vpow2.f32 %v1777_v18 }
 0x2ce   : > { %v1447_v24 = vld [vmem:[#allocation2] sm:$0xff]  ;;  %v1499_v12 = vpop.xlane.xlu1 %1498 }
 0x2cf   : > { %v1455_v26 = vadd.f32 %v1453_v22, %v1447_v24  ;;  %3097 = vpow2.f32 %v1787_v23  ;;  %v1501_v18 = vmul.f32 2.2897349e-11, %v1499_v12  ;;  %v1510_v22 = vpop.xlane.xlu0 %1509  ;;  %v2630_v23 = vadd.f32 -1.0, %v3695_v52 }
 0x2d0   : > { %3099 = vpow2.f32 %v1773_v21 }
 0x2d1   : > { %1458 = vst.msk [vmem:[#allocation2] sm:$0xff] %vm1457_vm8, %v1455_v26  ;;  %3101 = vpow2.f32 %v1779_v28  ;;  %v1513_v26 = vmul.f32 2.2897349e-11, %v1510_v22 }
 0x2d2   : > { %v1448_v30 = vld [vmem:[#allocation2 + $0x8] sm:$0xff] }
 0x2d3   : > { %v1456_v31 = vadd.f32 %v1454_v29, %v1448_v30  ;;  %v1512_v29 = vpop.xlane.xlu1 %1511  ;;  %v1946_v30 = vmul.f32 -500000.0, %v2630_v23 }
 0x2d5   : > { %v3092_v33 = vpop.eup %3091  ;;  %1459 = vst.msk [vmem:[#allocation2 + $0x8] sm:$0xff] %vm1457_vm8, %v1456_v31  ;;  %v2631_v31 = vadd.f32 -1.0, %v3705_v4  ;;  %vm1912_vm8 = vcmask 48168  }
 0x2d6   : > { %v3094_v34 = vpop.eup %3093  ;;  %v1789_v35 = vsel %vm779_vm11, %v3092_v33, 0.0 }
 0x2d7   : > { %v1795_v37 = vmul.f32 %v3094_v34, %v1789_v35  ;;  %v3096_v38 = vpop.eup %3095  ;;  %v1791_v51 = vmul.f32 %v3094_v34, %v3094_v34 }
 0x2d8   : > { %v1464_v39 = vld [vmem:[#allocation2] sm:$0xff]  ;;  %v1797_v44 = vmul.f32 %v3096_v38, %v1789_v35  ;;  %v3718_v27 = vmul.f32 %v3096_v38, %v3096_v38  ;;  %v1514_v35 = vmul.f32 2.2897349e-11, %v1512_v29  ;;  %v1947_v38 = vmul.f32 -500000.0, %v2631_v31 }
 0x2d9   : > { %v3098_v45 = vpop.eup %3097  ;;  %v1472_v59 = vadd.f32 %v1470_v36, %v1464_v39  ;;  %1801 = vadd.xlane.f32.xlu0 %v1795_v37  ;;  %v1825_v56 = vmul.f32 %v1795_v37, %v1791_v51  ;;  %v1948_v37 = vmul.f32 %v2630_v23, %v1946_v30 }
 0x2da   : > { %v3100_v41 = vpop.eup %3099  ;;  %v1790_v42 = vsel %vm779_vm11, %v3098_v45, 0.0  ;;  %vm1487_vm11 = vcmask 64568   ;;  %v1827_v0 = vmul.f32 %v1797_v44, %v3718_v27  ;;  %v1527_v45 = vpop.xlane.xlu0 %1526 }
 0x2db   : > { %1475 = vst.msk [vmem:[#allocation2] sm:$0xff] %vm1474_vm10, %v1472_v59  ;;  %v1796_v46 = vmul.f32 %v3100_v41, %v1790_v42  ;;  %v3102_v53 = vpop.eup %3101  ;;  %v1792_v60 = vmul.f32 %v3100_v41, %v3100_v41  ;;  %v1855_v49 = vmul.f32 %v1825_v56, %v1791_v51  ;;  %v1950_v59 = vmul.f32 1.442695, %v1948_v37 }
 0x2dc   : > { %v1465_v47 = vld [vmem:[#allocation2 + $0x8] sm:$0xff]  ;;  %v1798_v57 = vmul.f32 %v3102_v53, %v1790_v42  ;;  %v3721_v6 = vmul.f32 %v3102_v53, %v3102_v53  ;;  %v1857_v15 = vmul.f32 %v1827_v0, %v3718_v27  ;;  %v1949_v41 = vmul.f32 %v2631_v31, %v1947_v38 }
 0x2dd   : > { %v1473_v48 = vadd.f32 %v1471_v43, %v1465_v47  ;;  %1814 = vadd.xlane.f32.xlu0 %v1797_v44  ;;  %1803 = vadd.xlane.f32.xlu1 %v1796_v46  ;;  %v1826_v1 = vmul.f32 %v1796_v46, %v1792_v60  ;;  %v1885_v19 = vmul.f32 %v1855_v49, %v1791_v51  ;;  %v1530_v42 = vmul.f32 2.5767572e-18, %v1527_v45  ;;  %v1529_v46 = vpop.xlane.xlu1 %1528 }
 0x2de   : > { %v1828_v3 = vmul.f32 %v1798_v57, %v3721_v6  ;;  %v1887_v24 = vmul.f32 %v1857_v15, %v3718_v27  ;;  %3103 = vpow2.f32 %v1950_v59 }
 0x2df   : > { %1476 = vst.msk [vmem:[#allocation2 + $0x8] sm:$0xff] %vm1474_vm10, %v1473_v48  ;;  %v1856_v55 = vmul.f32 %v1826_v1, %v1792_v60  ;;  %v1915_v33 = vmul.f32 %v1885_v19, %v1791_v51  ;;  %v1952_v48 = vmul.f32 1.442695, %v1949_v41  ;;  %v1531_v51 = vmul.f32 2.5767572e-18, %v1529_v46 }
 0x2e0   : > { %v1858_v20 = vmul.f32 %v1828_v3, %v3721_v6  ;;  %v1917_v43 = vmul.f32 %v1887_v24, %v3718_v27  ;;  %vm1929_vm10 = vcmask 244968  }
 0x2e1   : > { %1831 = vadd.xlane.f32.xlu0 %v1825_v56  ;;  %1816 = vadd.xlane.f32.xlu1 %v1798_v57  ;;  %v1886_v25 = vmul.f32 %v1856_v55, %v1792_v60  ;;  %v1540_v56 = vpop.xlane.xlu0 %1539  ;;  %3105 = vpow2.f32 %v1952_v48 }
 0x2e2   : > { %v1477_v61 = vld [vmem:[#allocation2] sm:$0xff]  ;;  %v1888_v34 = vmul.f32 %v1858_v20, %v3721_v6  ;;  %v1543_v57 = vmul.f32 2.5767572e-18, %v1540_v56 }
 0x2e3   : > { %v1485_v63 = vadd.f32 %v1483_v50, %v1477_v61  ;;  %v1916_v40 = vmul.f32 %v1886_v25, %v1792_v60  ;;  %v1542_v50 = vpop.xlane.xlu1 %1541 }
 0x2e4   : > { %v1544_v61 = vmul.f32 2.5767572e-18, %v1542_v50 }
 0x2e5   : > { %1488 = vst.msk [vmem:[#allocation2] sm:$0xff] %vm1487_vm11, %v1485_v63  ;;  %1844 = vadd.xlane.f32.xlu0 %v1827_v0  ;;  %1833 = vadd.xlane.f32.xlu1 %v1826_v1 }
 0x2e6   : > { %v1478_v2 = vld [vmem:[#allocation2 + $0x8] sm:$0xff] }
 0x2e7   : > { %v1486_v7 = vadd.f32 %v1484_v58, %v1478_v2  ;;  %v1564_v58 = vpop.xlane.xlu1 %1563 }
 0x2e8   : > { %v3104_v60 = vpop.eup %3103 }
 0x2e9   : > { %1489 = vst.msk [vmem:[#allocation2 + $0x8] sm:$0xff] %vm1487_vm11, %v1486_v7  ;;  %1861 = vadd.xlane.f32.xlu0 %v1855_v49  ;;  %1846 = vadd.xlane.f32.xlu1 %v1828_v3  ;;  %vm1962_vm11 = vcmask 269568  }
 0x2eb   : > { %v3106_v63 = vpop.eup %3105 }
 0x2ec   : > { %v1494_v16 = vld [vmem:[#allocation2] sm:$0xff] }
 0x2ed   : > { %v1502_v17 = vadd.f32 %v1500_v10, %v1494_v16  ;;  %1874 = vadd.xlane.f32.xlu0 %v1857_v15  ;;  %1863 = vadd.xlane.f32.xlu1 %v1856_v55 }
 0x2ef   : > { %1505 = vst.msk [vmem:[#allocation2] sm:$0xff] %vm1504_vm13, %v1502_v17 }
 0x2f0   : > { %v1495_v21 = vld [vmem:[#allocation2 + $0x8] sm:$0xff] }
 0x2f1   : > { %v1503_v11 = vadd.f32 %v1501_v18, %v1495_v21  ;;  %1891 = vadd.xlane.f32.xlu0 %v1885_v19  ;;  %1876 = vadd.xlane.f32.xlu1 %v1858_v20 }
 0x2f3   : > { %1506 = vst.msk [vmem:[#allocation2 + $0x8] sm:$0xff] %vm1504_vm13, %v1503_v11 }
 0x2f5   : > { %1904 = vadd.xlane.f32.xlu0 %v1887_v24  ;;  %1893 = vadd.xlane.f32.xlu1 %v1886_v25 }
 0x2f6   : > { %v1507_v28 = vld [vmem:[#allocation2] sm:$0xff] }
 0x2f7   : > { %v1515_v32 = vadd.f32 %v1513_v26, %v1507_v28 }
 0x2f9   : > { %1518 = vst.msk [vmem:[#allocation2] sm:$0xff] %vm1517_vm14, %v1515_v32  ;;  %1921 = vadd.xlane.f32.xlu0 %v1915_v33  ;;  %1906 = vadd.xlane.f32.xlu1 %v1888_v34 }
 0x2fa   : > { %v1508_v36 = vld [vmem:[#allocation2 + $0x8] sm:$0xff] }
 0x2fb   : > { %v1516_v39 = vadd.f32 %v1514_v35, %v1508_v36 }
 0x2fd   : > { %1519 = vst.msk [vmem:[#allocation2 + $0x8] sm:$0xff] %vm1517_vm14, %v1516_v39  ;;  %970 = vadd.xlane.f32.xlu0 %v3593_v8  ;;  %1923 = vadd.xlane.f32.xlu1 %v1916_v40  ;;  %v1918_v8 = vmul.f32 %v1888_v34, %v3721_v6 }
 0x300   : > { %v1524_v44 = vld [vmem:[#allocation2] sm:$0xff] }
 0x301   : > { %v1532_v47 = vadd.f32 %v1530_v42, %v1524_v44  ;;  %1934 = vadd.xlane.f32.xlu0 %v1917_v43  ;;  %972 = vadd.xlane.f32.xlu1 %v3604_v14  ;;  %v968_v42 = vld [vmem:[#allocation3] sm:$0xff] }
 0x303   : > { %1535 = vst.msk [vmem:[#allocation2] sm:$0xff] %vm1534_vm15, %v1532_v47 }
 0x304   : > { %v1525_v53 = vld [vmem:[#allocation2 + $0x8] sm:$0xff] }
 0x305   : > { %v1533_v54 = vadd.f32 %v1531_v51, %v1525_v53  ;;  %1365 = vadd.xlane.f32.xlu0 %v3628_v13  ;;  %1936 = vadd.xlane.f32.xlu1 %v1918_v8  ;;  %v969_v8 = vld [vmem:[#allocation3 + $0x8] sm:$0xff] }
 0x307   : > { %1536 = vst.msk [vmem:[#allocation2 + $0x8] sm:$0xff] %vm1534_vm15, %v1533_v54  ;;  %vm3229_vm15 = vmmov (!%p2632_p13), 0  }
 0x309   : > { %1760 = vadd.xlane.f32.xlu0 %v3695_v52  ;;  %1367 = vadd.xlane.f32.xlu1 %v3635_v5  ;;  %v1562_v5 = vpop.xlane.xlu0 %1561 }
 0x30a   : > { %v1537_v14 = vld [vmem:[#allocation2] sm:$0xff] }
 0x30b   : > { %v1545_v27 = vadd.f32 %v1543_v57, %v1537_v14 }
 0x30d   : > { %1547 = vst.msk [vmem:[#allocation2] sm:$0xff] %vm1371_vm0, %v1545_v27  ;;  %1956 = vadd.xlane.f32.xlu0 %v3104_v60  ;;  %1762 = vadd.xlane.f32.xlu1 %v3705_v4 }
 0x30e   : > { %v1538_v13 = vld [vmem:[#allocation2 + $0x8] sm:$0xff] }
 0x30f   : > { %v1546_v62 = vadd.f32 %v1544_v61, %v1538_v13 }
 0x311   : > { %1548 = vst.msk [vmem:[#allocation2 + $0x8] sm:$0xff] %vm1371_vm0, %v1546_v62  ;;  %1958 = vadd.xlane.f32.xlu1 %v3106_v63 }
 0x314   : > { %v1559_v52 = vld [vmem:[#allocation2] sm:$0xff] }
 0x315   : > { %v1565_v0 = vadd.f32 %v1562_v5, %v1559_v52 }
 0x317   : > { %1568 = vst.msk [vmem:[#allocation2] sm:$0xff] %vm1567_vm1, %v1565_v0 }
 0x318   : > { %v1560_v1 = vld [vmem:[#allocation2 + $0x8] sm:$0xff] }
 0x319   : > { %v1566_v6 = vadd.f32 %v1564_v58, %v1560_v1 }
 0x31b   : > { %1569 = vst.msk [vmem:[#allocation2 + $0x8] sm:$0xff] %vm1567_vm1, %v1566_v6  ;;  %vm2039_vm1 = vcmask (!%p2632_p13), 23552  }
 0x31e   : > { %v1799_v49 = vld [vmem:[#allocation2] sm:$0xff] }
 0x322   : > { %v1800_v15 = vld [vmem:[#allocation2 + $0x8] sm:$0xff] }
 0x366   : > { %v1802_v2 = vpop.xlane.xlu0 %1801 }
 0x367   : > { %v1805_v7 = vmul.f32 0.60653067, %v1802_v2 }
 0x369   : > { %v1807_v4 = vadd.f32 %v1805_v7, %v1799_v49 }
 0x36a   : > { %v1815_v3 = vpop.xlane.xlu0 %1814  ;;  %v1804_v9 = vpop.xlane.xlu1 %1803 }
 0x36b   : > { %1810 = vst.msk [vmem:[#allocation2] sm:$0xff] %vm1809_vm2, %v1807_v4  ;;  %v1806_v10 = vmul.f32 0.60653067, %v1804_v9  ;;  %v1818_v17 = vmul.f32 0.60653067, %v1815_v3 }
 0x36d   : > { %v1808_v55 = vadd.f32 %v1806_v10, %v1800_v15 }
 0x36e   : > { %v1832_v16 = vpop.xlane.xlu0 %1831  ;;  %v1817_v12 = vpop.xlane.xlu1 %1816 }
 0x36f   : > { %1811 = vst.msk [vmem:[#allocation2 + $0x8] sm:$0xff] %vm1809_vm2, %v1808_v55  ;;  %v1819_v11 = vmul.f32 0.60653067, %v1817_v12  ;;  %v1835_v29 = vmul.f32 0.011108996, %v1832_v16  ;;  %vm2042_vm2 = vcmask (!%p2632_p13), 48128  }
 0x372   : > { %v1812_v18 = vld [vmem:[#allocation2] sm:$0xff]  ;;  %v1845_v19 = vpop.xlane.xlu0 %1844  ;;  %v1834_v20 = vpop.xlane.xlu1 %1833 }
 0x373   : > { %v1820_v21 = vadd.f32 %v1818_v17, %v1812_v18  ;;  %v1836_v34 = vmul.f32 0.011108996, %v1834_v20  ;;  %v1848_v39 = vmul.f32 0.011108996, %v1845_v19 }
 0x375   : > { %1823 = vst.msk [vmem:[#allocation2] sm:$0xff] %vm1822_vm3, %v1820_v21 }
 0x376   : > { %v1813_v22 = vld [vmem:[#allocation2 + $0x8] sm:$0xff]  ;;  %v1862_v23 = vpop.xlane.xlu0 %1861  ;;  %v1847_v24 = vpop.xlane.xlu1 %1846 }
 0x377   : > { %v1821_v25 = vadd.f32 %v1819_v11, %v1813_v22  ;;  %v1849_v43 = vmul.f32 0.011108996, %v1847_v24  ;;  %v1865_v56 = vmul.f32 3.7266532e-06, %v1862_v23 }
 0x379   : > { %1824 = vst.msk [vmem:[#allocation2 + $0x8] sm:$0xff] %vm1822_vm3, %v1821_v25  ;;  %vm2045_vm3 = vcmask (!%p2632_p13), 72704  }
 0x37a   : > { %v1875_v26 = vpop.xlane.xlu0 %1874  ;;  %v1864_v28 = vpop.xlane.xlu1 %1863 }
 0x37b   : > { %v1866_v60 = vmul.f32 3.7266532e-06, %v1864_v28  ;;  %v1878_v1 = vmul.f32 3.7266532e-06, %v1875_v26 }
 0x37c   : > { %v1829_v30 = vld [vmem:[#allocation2] sm:$0xff] }
 0x37d   : > { %v1837_v31 = vadd.f32 %v1835_v29, %v1829_v30 }
 0x37e   : > { %v3744_v32 = vpop.xlane.xlu0 %1891  ;;  %v1877_v33 = vpop.xlane.xlu1 %1876 }
 0x37f   : > { %1840 = vst.msk [vmem:[#allocation2] sm:$0xff] %vm1839_vm4, %v1837_v31  ;;  %v1879_v7 = vmul.f32 3.7266532e-06, %v1877_v33  ;;  %v1895_v16 = vmul.f32 2.2897349e-11, %v3744_v32 }
 0x380   : > { %v1830_v35 = vld [vmem:[#allocation2 + $0x8] sm:$0xff] }
 0x381   : > { %v1838_v36 = vadd.f32 %v1836_v34, %v1830_v35 }
 0x382   : > { %v3746_v37 = vpop.xlane.xlu0 %1904  ;;  %v3748_v38 = vpop.xlane.xlu1 %1893 }
 0x383   : > { %1841 = vst.msk [vmem:[#allocation2 + $0x8] sm:$0xff] %vm1839_vm4, %v1838_v36  ;;  %v1896_v19 = vmul.f32 2.2897349e-11, %v3748_v38  ;;  %v1908_v11 = vmul.f32 2.2897349e-11, %v3746_v37  ;;  %vm2048_vm4 = vcmask (!%p2632_p13), 97280  }
 0x386   : > { %v1842_v40 = vld [vmem:[#allocation2] sm:$0xff]  ;;  %v3750_v45 = vpop.xlane.xlu0 %1921  ;;  %v3752_v59 = vpop.xlane.xlu1 %1906 }
 0x387   : > { %v1850_v41 = vadd.f32 %v1848_v39, %v1842_v40  ;;  %v1909_v24 = vmul.f32 2.2897349e-11, %v3752_v59  ;;  %v1925_v28 = vmul.f32 2.5767572e-18, %v3750_v45 }
 0x389   : > { %1853 = vst.msk [vmem:[#allocation2] sm:$0xff] %vm1852_vm6, %v1850_v41 }
 0x38a   : > { %v1843_v44 = vld [vmem:[#allocation2 + $0x8] sm:$0xff]  ;;  %v971_v46 = vpop.xlane.xlu0 %970  ;;  %v3754_v47 = vpop.xlane.xlu1 %1923 }
 0x38b   : > { %v1851_v48 = vadd.f32 %v1849_v43, %v1843_v44  ;;  %v974_v51 = vadd.f32 %v971_v46, %v968_v42  ;;  %v1926_v31 = vmul.f32 2.5767572e-18, %v3754_v47  ;;  %v3221_v47 = vmov (!%p2632_p13), 0.0  }
 0x38c   : > { %2803 = vmatprep.mubr.msk.f32.mxu0 (!%p2632_p13), %vm3229_vm15, %v3221_v47  ;;  %2816 = vmatprep.mubr.msk.f32.mxu1 (!%p2632_p13), %vm3229_vm15, %v3221_v47 }
 0x38d   : > { %1854 = vst.msk [vmem:[#allocation2 + $0x8] sm:$0xff] %vm1852_vm6, %v1851_v48  ;;  %vm2051_vm6 = vcmask (!%p2632_p13), 121856  }
 0x38e   : > { %977 = vst.msk [vmem:[#allocation3] sm:$0xff] %vm976_vm5, %v974_v51  ;;  %v3757_v53 = vpop.xlane.xlu0 %1934  ;;  %v973_v54 = vpop.xlane.xlu1 %972 }
 0x38f   : > { %v975_v57 = vadd.f32 %v973_v54, %v969_v8  ;;  %v1938_v34 = vmul.f32 2.5767572e-18, %v3757_v53  ;;  %v3222_v8 = vmov (!%p2632_p13), 0.0|0.0   ;;  %v2095_v54 = vld [vmem:[%s3970_s6] sm:$0xff] (!%p2632_p13) }
 0x390   : > { %v1859_v14 = vld [vmem:[#allocation2] sm:$0xff]  ;;  %2855 = vmatprep.subr.bf16.mxu0 (!%p2632_p13), %v3222_v8  ;;  %2879 = vmatprep.subr.bf16.mxu1 (!%p2632_p13), %v3222_v8 }
 0x391   : > { %v1867_v50 = vadd.f32 %v1865_v56, %v1859_v14  ;;  %978 = vst.msk [vmem:[#allocation3 + $0x8] sm:$0xff] %vm976_vm5, %v975_v57  ;;  %vm1766_vm5 = vcmask 23568   ;;  %v2096_v56 = vld [vmem:[%s3970_s6 + $0x8] sm:$0xff] (!%p2632_p13)  ;;  %v2097_v57 = vld [vmem:[%s3970_s6 + $0x10] sm:$0xff] (!%p2632_p13)  ;;  %v2098_v14 = vld [vmem:[%s3970_s6 + $0x18] sm:$0xff] (!%p2632_p13) }
 0x392   : > { %v3760_v27 = vpop.xlane.xlu1 %1936  ;;  %v1366_v62 = vpop.xlane.xlu0 %1365 }
 0x393   : > { %1870 = vst.msk [vmem:[#allocation2] sm:$0xff] %vm1869_vm7, %v1867_v50  ;;  %v1939_v37 = vmul.f32 2.5767572e-18, %v3760_v27  ;;  %v2856_v50 = vpack.c.bf16 (!%p2632_p13), %v2096_v56, %v2095_v54  ;;  %v2859_v27 = vpack.c.bf16 (!%p2632_p13), %v2098_v14, %v2097_v57 }
 0x394   : > { %v1860_v61 = vld [vmem:[#allocation2 + $0x8] sm:$0xff] }
 0x395   : > { %v1363_v13 = vld [vmem:[#allocation3] sm:$0xff]  ;;  %v1868_v63 = vadd.f32 %v1866_v60, %v1860_v61  ;;  %2857 = vmatpush3.bf16.msra.mxu0 (!%p2632_p13), %v2856_v50  ;;  %v2099_v60 = vld [vmem:[%s3970_s6 + $0x20] sm:$0xff] (!%p2632_p13)  ;;  %v2100_v61 = vld [vmem:[%s3970_s6 + $0x28] sm:$0xff] (!%p2632_p13) }
 0x396   : > { %v1369_v52 = vadd.f32 %v1366_v62, %v1363_v13  ;;  %v1368_v0 = vpop.xlane.xlu1 %1367  ;;  %v1761_v3 = vpop.xlane.xlu0 %1760  ;;  %2858 = vmatprep.subr.bf16.mxu0 (!%p2632_p13), %v3222_v8  ;;  %v2862_v13 = vpack.c.bf16 (!%p2632_p13), %v2100_v61, %v2099_v60  ;;  %v2101_v62 = vld [vmem:[%s3970_s6 + $0x30] sm:$0xff] (!%p2632_p13) }
 0x397   : > { %1871 = vst.msk [vmem:[#allocation2 + $0x8] sm:$0xff] %vm1869_vm7, %v1868_v63  ;;  %v2102_v63 = vld [vmem:[%s3970_s6 + $0x38] sm:$0xff] (!%p2632_p13)  ;;  %vm2054_vm7 = vcmask (!%p2632_p13), 146432  }
 0x398   : > { %1372 = vst.msk [vmem:[#allocation3] sm:$0xff] %vm1371_vm0, %v1369_v52  ;;  %v1364_v5 = vld [vmem:[#allocation3 + $0x8] sm:$0xff]  ;;  %v2090_v52 = vld [vmem:[%s3969_s5] sm:$0xff] (!%p2632_p13) }
 0x399   : > { %v1370_v58 = vadd.f32 %v1368_v0, %v1364_v5  ;;  %2860 = vmatpush3.bf16.msra.mxu0 (!%p2632_p13), %v2859_v27  ;;  %v2091_v5 = vld [vmem:[%s3969_s5 + $0x8] sm:$0xff] (!%p2632_p13) }
 0x39a   : > { %v1872_v6 = vld [vmem:[#allocation2] sm:$0xff]  ;;  %v1763_v55 = vpop.xlane.xlu1 %1762  ;;  %v1957_v45 = vpop.xlane.xlu0 %1956  ;;  %2861 = vmatprep.subr.bf16.mxu0 (!%p2632_p13), %v3222_v8  ;;  %v2880_v0 = vpack.c.bf16 (!%p2632_p13), %v2091_v5, %v2090_v52 }
 0x39b   : > { %v1880_v2 = vadd.f32 %v1878_v1, %v1872_v6  ;;  %1373 = vst.msk [vmem:[#allocation3 + $0x8] sm:$0xff] %vm1371_vm0, %v1370_v58  ;;  %v2092_v1 = vld [vmem:[%s3969_s5 + $0x10] sm:$0xff] (!%p2632_p13)  ;;  %v2093_v58 = vld [vmem:[%s3969_s5 + $0x18] sm:$0xff] (!%p2632_p13)  ;;  %v2865_v6 = vpack.c.bf16 (!%p2632_p13), %v2102_v63, %v2101_v62  ;;  %vm2184_vm0 = vcmask (!%p2632_p13), 1040384  }
 0x39c   : > { %2881 = vmatpush3.bf16.msra.mxu1 (!%p2632_p13), %v2880_v0 }
 0x39d   : > { %1883 = vst.msk [vmem:[#allocation2] sm:$0xff] %vm1882_vm9, %v1880_v2  ;;  %2863 = vmatpush3.bf16.msra.mxu0 (!%p2632_p13), %v2862_v13  ;;  %v2103_v2 = vld [vmem:[%s3970_s6 + $0x40] sm:$0xff] (!%p2632_p13)  ;;  %2882 = vmatprep.subr.bf16.mxu1 (!%p2632_p13), %v3222_v8 }
 0x39e   : > { %v1873_v49 = vld [vmem:[#allocation2 + $0x8] sm:$0xff]  ;;  %v1959_v42 = vpop.xlane.xlu1 %1958  ;;  %2864 = vmatprep.subr.bf16.mxu0 (!%p2632_p13), %v3222_v8 }
 0x39f   : > { %v1758_v4 = vld [vmem:[#allocation3] sm:$0xff]  ;;  %v1881_v9 = vadd.f32 %v1879_v7, %v1873_v49  ;;  %v2104_v7 = vld [vmem:[%s3970_s6 + $0x48] sm:$0xff] (!%p2632_p13)  ;;  %v2883_v49 = vpack.c.bf16 (!%p2632_p13), %v2093_v58, %v2092_v1 }
 0x3a0   : > { %v1764_v10 = vadd.f32 %v1761_v3, %v1758_v4  ;;  %v2868_v4 = vpack.c.bf16 (!%p2632_p13), %v2104_v7, %v2103_v2  ;;  %v2105_v3 = vld [vmem:[%s3970_s6 + $0x50] sm:$0xff] (!%p2632_p13) }
 0x3a1   : > { %1884 = vst.msk [vmem:[#allocation2 + $0x8] sm:$0xff] %vm1882_vm9, %v1881_v9  ;;  %2866 = vmatpush3.bf16.msra.mxu0 (!%p2632_p13), %v2865_v6  ;;  %v2106_v9 = vld [vmem:[%s3970_s6 + $0x58] sm:$0xff] (!%p2632_p13)  ;;  %2884 = vmatpush3.bf16.msra.mxu1 (!%p2632_p13), %v2883_v49  ;;  %vm2057_vm9 = vcmask (!%p2632_p13), 171008  }
 0x3a2   : > { %1767 = vst.msk [vmem:[#allocation3] sm:$0xff] %vm1766_vm5, %v1764_v10  ;;  %v1759_v15 = vld [vmem:[#allocation3 + $0x8] sm:$0xff]  ;;  %2867 = vmatprep.subr.bf16.mxu0 (!%p2632_p13), %v3222_v8  ;;  %v2094_v10 = vld [vmem:[%s3969_s5 + $0x20] sm:$0x1] (!%p2632_p13)  ;;  %2814 = vmatprep.subr.mxu1 (!%p2632_p13), %v3221_v47 }
 0x3a3   : > { %v1765_v12 = vadd.f32 %v1763_v55, %v1759_v15  ;;  %v2871_v15 = vpack.c.bf16 (!%p2632_p13), %v2106_v9, %v2105_v3  ;;  %v2107_v55 = vld [vmem:[%s3970_s6 + $0x60] sm:$0xff] (!%p2632_p13) }
 0x3a4   : > { %v1889_v17 = vld [vmem:[#allocation2] sm:$0xff] }
 0x3a5   : > { %v1897_v18 = vadd.f32 %v1895_v16, %v1889_v17  ;;  %1768 = vst.msk [vmem:[#allocation3 + $0x8] sm:$0xff] %vm1766_vm5, %v1765_v12  ;;  %2869 = vmatpush3.bf16.msra.mxu0 (!%p2632_p13), %v2868_v4  ;;  %v2108_v16 = vld [vmem:[%s3970_s6 + $0x68] sm:$0xff] (!%p2632_p13)  ;;  %2815 = vmatpush3.msk.msra.mxu1 (!%p2632_p13), %vm2184_vm0, %v2094_v10  ;;  %v2109_v17 = vld [vmem:[%s3970_s6 + $0x70] sm:$0xff] (!%p2632_p13) }
 0x3a6   : > { %2870 = vmatprep.subr.bf16.mxu0 (!%p2632_p13), %v3222_v8  ;;  %2885 = vmatprep.subr.bf16.mxu1 (!%p2632_p13), %v3222_v8  ;;  %v2874_v12 = vpack.c.bf16 (!%p2632_p13), %v2108_v16, %v2107_v55 }
 0x3a7   : > { %1900 = vst.msk [vmem:[#allocation2] sm:$0xff] %vm1899_vm12, %v1897_v18  ;;  %v2110_v18 = vld [vmem:[%s3970_s6 + $0x78] sm:$0xff] (!%p2632_p13) }
 0x3a8   : > { %v1890_v20 = vld [vmem:[#allocation2 + $0x8] sm:$0xff] }
 0x3a9   : > { %v1898_v21 = vadd.f32 %v1896_v19, %v1890_v20  ;;  %v1969_v44 = vld [vmem:[#allocation3] sm:$0xff] (!%p2632_p13)  ;;  %2872 = vmatpush3.bf16.msra.mxu0 (!%p2632_p13), %v2871_v15  ;;  %v2877_v19 = vpack.c.bf16 (!%p2632_p13), %v2110_v18, %v2109_v17  ;;  %v2089_v20 = vld [vmem:[%s735_s1] sm:$0x1] (!%p2632_p13) }
 0x3aa   : > { %vm1971_vm13 = vcmp.ne.f32.partialorder (!%p2632_p13), %v1969_v44, 0.0  ;;  %2873 = vmatprep.subr.bf16.mxu0 (!%p2632_p13), %v3222_v8 }
 0x3ab   : > { %1901 = vst.msk [vmem:[#allocation2 + $0x8] sm:$0xff] %vm1899_vm12, %v1898_v21  ;;  %v3778_v48 = vsel (!%p2632_p13), %vm1971_vm13, 1.0, %v3221_v47  ;;  %vm2063_vm12 = vcmask (!%p2632_p13), 220160   ;;  %vm2275_vm13 = vcmask (!%p2632_p13), 818176  }
 0x3ac   : > { %v1970_v46 = vld [vmem:[#allocation3 + $0x8] sm:$0xff] (!%p2632_p13) }
 0x3ad   : > { %vm1972_vm14 = vcmp.ne.f32.partialorder (!%p2632_p13), %v1970_v46, 0.0  ;;  %2875 = vmatpush3.bf16.msra.mxu0 (!%p2632_p13), %v2874_v12 }
 0x3ae   : > { %v1902_v22 = vld [vmem:[#allocation2] sm:$0xff]  ;;  %v3781_v51 = vsel (!%p2632_p13), %vm1972_vm14, 1.0, %v3221_v47  ;;  %2876 = vmatprep.subr.bf16.mxu0 (!%p2632_p13), %v3222_v8  ;;  %vm2361_vm14 = vcmask (!%p2632_p13), 1041408  }
 0x3af   : > { %v1910_v23 = vadd.f32 %v1908_v11, %v1902_v22  ;;  %v3107_v53 = vpack.i.bf16 (!%p2632_p13), %v3781_v51, %v3778_v48 }
 0x3b1   : > { %1913 = vst.msk [vmem:[#allocation2] sm:$0xff] %vm1912_vm8, %v1910_v23  ;;  %3108 = vrot.lane.b32.xlu0 (!%p2632_p13), %v3107_v53, %s3223_s23  ;;  %3118 = vrot.lane.b32.xlu1 (!%p2632_p13), %v3107_v53, %s3224_s13 }
 0x3b2   : > { %v1903_v25 = vld [vmem:[#allocation2 + $0x8] sm:$0xff]  ;;  %2878 = vmatpush3.bf16.msra.mxu0 (!%p2632_p13), %v2877_v19 }
 0x3b3   : > { %v1911_v26 = vadd.f32 %v1909_v24, %v1903_v25  ;;  %2903 = vmatprep.subr.bf16.mxu0 (!%p2632_p13), %v3222_v8 }
 0x3b5   : > { %1914 = vst.msk [vmem:[#allocation2 + $0x8] sm:$0xff] %vm1912_vm8, %v1911_v26  ;;  %3113 = vrot.lane.b32.xlu0 (!%p2632_p13), %v3107_v53, %s3225_s19  ;;  %3123 = vrot.lane.b32.xlu1 (!%p2632_p13), %v3107_v53, %s3226_s27  ;;  %vm2066_vm8 = vcmask (!%p2632_p13), 244736   ;;  %s3997_s19 = sld [smem:[#allocation14_spill]] (!%p2632_p13) }
 0x3b6   : > { %2804 = vmatmul.mubr.f32.vlgmr.msra.gmra.mrb[0].mxu0 (!%p2632_p13), %v2089_v20 }
 0x3b7   : > { %2852 = vmatprep.mubr.msk.f32.mxu0 (!%p2632_p13), %vm3229_vm15, %v3221_v47 }
 0x3b8   : > { %v1919_v29 = vld [vmem:[#allocation2] sm:$0xff] }
 0x3b9   : > { %v1927_v30 = vadd.f32 %v1925_v28, %v1919_v29  ;;  %3128 = vrot.lane.b32.xlu0 (!%p2632_p13), %v3107_v53, %s3227_s15  ;;  %3133 = vrot.lane.b32.xlu1 (!%p2632_p13), %v3107_v53, %s3228_s20  ;;  %s3232_s15 = smov (!%p2632_p13), 27   ;;  %s3233_s20 = smov (!%p2632_p13), 30  }
 0x3bb   : > { %1930 = vst.msk [vmem:[#allocation2] sm:$0xff] %vm1929_vm10, %v1927_v30 }
 0x3bc   : > { %v1920_v32 = vld [vmem:[#allocation2 + $0x8] sm:$0xff] }
 0x3bd   : > { %v1928_v33 = vadd.f32 %v1926_v31, %v1920_v32  ;;  %3138 = vrot.lane.b32.xlu0 (!%p2632_p13), %v3107_v53, %s3230_s28  ;;  %3143 = vrot.lane.b32.xlu1 (!%p2632_p13), %v3107_v53, %s3231_s2 }
 0x3bf   : > { %1931 = vst.msk [vmem:[#allocation2 + $0x8] sm:$0xff] %vm1929_vm10, %v1928_v33  ;;  %vm2079_vm10 = vcmask (!%p2632_p13), 269312  }
 0x3c1   : > { %3148 = vrot.lane.b32.xlu0 (!%p2632_p13), %v3107_v53, %s3232_s15  ;;  %3153 = vrot.lane.b32.xlu1 (!%p2632_p13), %v3107_v53, %s3233_s20 }
 0x3c2   : > { %v1932_v35 = vld [vmem:[#allocation2] sm:$0xff] }
 0x3c3   : > { %v1940_v36 = vadd.f32 %v1938_v34, %v1932_v35 }
 0x3c5   : > { %1942 = vst.msk [vmem:[#allocation2] sm:$0xff] %vm1766_vm5, %v1940_v36 }
 0x3c6   : > { %v1933_v38 = vld [vmem:[#allocation2 + $0x8] sm:$0xff] }
 0x3c7   : > { %v1941_v39 = vadd.f32 %v1939_v37, %v1933_v38 }
 0x3c9   : > { %1943 = vst.msk [vmem:[#allocation2 + $0x8] sm:$0xff] %vm1766_vm5, %v1941_v39  ;;  %vm2060_vm5 = vcmask (!%p2632_p13), 195584  }
 0x3cc   : > { %v1954_v40 = vld [vmem:[#allocation2] sm:$0xff] }
 0x3cd   : > { %v1960_v59 = vadd.f32 %v1957_v45, %v1954_v40  ;;  %1968 = sbr.rel (%p2632_p13) target bundleno = 1746 (0x6d2), region = 117 }
 0x3cf   : > { %1963 = vst.msk [vmem:[#allocation2] sm:$0xff] %vm1962_vm11, %v1960_v59 }
 0x3d0   : > { %v1955_v41 = vld [vmem:[#allocation2 + $0x8] sm:$0xff] }
 0x3d1   : > { %v1961_v43 = vadd.f32 %v1959_v42, %v1955_v41 }
 0x3d3   : > { %1964 = vst.msk [vmem:[#allocation2 + $0x8] sm:$0xff] %vm1962_vm11, %v1961_v43  ;;  %vm2279_vm11 = vcmask (!%p2632_p13), 1043456  }
 0x3d6   : > { %v2069_v21 = vld [vmem:[#allocation2] sm:$0xff] }
 0x3d7   : > { %v2071_v22 = vadd.f32 1e-06, %v2069_v21 }
 0x3d9   : > { %3157 = vlog2.f32 %v2071_v22 }
 0x3da   : > { %v2070_v11 = vld [vmem:[#allocation2 + $0x8] sm:$0xff] }
 0x3db   : > { %v2072_v23 = vadd.f32 1e-06, %v2070_v11 }
 0x3dd   : > { %3159 = vlog2.f32 %v2072_v23 }
 0x423   : > { %v3109_v24 = vpop.permute.xlu0 %3108  ;;  %v3119_v25 = vpop.permute.xlu1 %3118 }
 0x424   : > { %v3111_v26 = vunpack.i.h.bf16 %v3109_v24  ;;  %v3110_v28 = vunpack.i.l.bf16 %v3109_v24  ;;  %v3121_v37 = vunpack.i.h.bf16 %v3119_v25  ;;  %v3120_v38 = vunpack.i.l.bf16 %v3119_v25  ;;  %v2261_v25 = vld [vmem:[%s3972_s8] sm:$0xff] }
 0x426   : > { %v2041_v35 = vsel %vm2039_vm1, %v3781_v51, %v3111_v26  ;;  %v2040_v36 = vsel %vm2039_vm1, %v3778_v48, %v3110_v28  ;;  %v3158_v48 = vpop.eup %3157  ;;  %v2262_v26 = vld [vmem:[%s3972_s8 + $0x8] sm:$0xff]  ;;  %vm2357_vm1 = vcmask 80896  }
 0x427   : > { %v3114_v29 = vpop.permute.xlu0 %3113  ;;  %v3124_v30 = vpop.permute.xlu1 %3123  ;;  %v2074_v58 = vmul.f32 0.6931472, %v3158_v48 }
 0x428   : > { %v3116_v31 = vunpack.i.h.bf16 %v3114_v29  ;;  %v3115_v32 = vunpack.i.l.bf16 %v3114_v29  ;;  %v3126_v33 = vunpack.i.h.bf16 %v3124_v30  ;;  %v3125_v34 = vunpack.i.l.bf16 %v3124_v30  ;;  %v3160_v27 = vpop.eup %3159 }
 0x429   : > { %v2076_v6 = vmul.f32 0.6931472, %v3160_v27  ;;  %v2886_v29 = vpack.c.bf16 %v2262_v26, %v2261_v25  ;;  %v2274_v27 = vld [vmem:[%s3997_s19] sm:$0x1] }
 0x42a   : > { %v2043_v39 = vsel %vm2042_vm2, %v2040_v36, %v3115_v32  ;;  %v2044_v40 = vsel %vm2042_vm2, %v2041_v35, %v3116_v31  ;;  %v2263_v31 = vld [vmem:[%s3972_s8 + $0x10] sm:$0xff]  ;;  %v2264_v32 = vld [vmem:[%s3972_s8 + $0x18] sm:$0xff]  ;;  %v2266_v35 = vld [vmem:[%s3972_s8 + $0x28] sm:$0xff]  ;;  %vm2435_vm2 = vcmask 0  }
 0x42b   : > { %v2046_v45 = vsel %vm2045_vm3, %v2043_v39, %v3120_v38  ;;  %v2047_v59 = vsel %vm2045_vm3, %v2044_v40, %v3121_v37  ;;  %v3129_v41 = vpop.permute.xlu0 %3128  ;;  %v3134_v42 = vpop.permute.xlu1 %3133  ;;  %v2267_v37 = vld [vmem:[%s3972_s8 + $0x30] sm:$0xff]  ;;  %v2268_v38 = vld [vmem:[%s3972_s8 + $0x38] sm:$0xff]  ;;  %v2269_v40 = vld [vmem:[%s3972_s8 + $0x40] sm:$0xff] }
 0x42c   : > { %v2049_v43 = vsel %vm2048_vm4, %v2046_v45, %v3125_v34  ;;  %v2050_v44 = vsel %vm2048_vm4, %v2047_v59, %v3126_v33  ;;  %v3131_v46 = vunpack.i.h.bf16 %v3129_v41  ;;  %v3130_v53 = vunpack.i.l.bf16 %v3129_v41  ;;  %v2265_v34 = vld [vmem:[%s3972_s8 + $0x20] sm:$0xff]  ;;  %v2270_v45 = vld [vmem:[%s3972_s8 + $0x48] sm:$0xff]  ;;  %v2271_v41 = vld [vmem:[%s3972_s8 + $0x50] sm:$0xff] }
 0x42d   : > { %v3136_v54 = vunpack.i.h.bf16 %v3134_v42  ;;  %v3135_v56 = vunpack.i.l.bf16 %v3134_v42  ;;  %v2889_v33 = vpack.c.bf16 %v2264_v32, %v2263_v31  ;;  %v2892_v36 = vpack.c.bf16 %v2266_v35, %v2265_v34  ;;  %v2272_v42 = vld [vmem:[%s3972_s8 + $0x58] sm:$0xff] }
 0x42e   : > { %v2052_v51 = vsel %vm2051_vm6, %v2049_v43, %v3130_v53  ;;  %v2053_v57 = vsel %vm2051_vm6, %v2050_v44, %v3131_v46  ;;  %v2895_v39 = vpack.c.bf16 %v2268_v38, %v2267_v37  ;;  %v2898_v59 = vpack.c.bf16 %v2270_v45, %v2269_v40  ;;  %v2273_v44 = vld [vmem:[%s3972_s8 + $0x60] sm:$0xf] }
 0x42f   : > { %v3139_v14 = vpop.permute.xlu0 %3138  ;;  %v3144_v50 = vpop.permute.xlu1 %3143  ;;  %v2055_v13 = vsel %vm2054_vm7, %v2052_v51, %v3135_v56  ;;  %v2056_v62 = vsel %vm2054_vm7, %v2053_v57, %v3136_v54  ;;  %v2901_v43 = vpack.c.bf16 %v2272_v42, %v2271_v41  ;;  %v2258_v54 = vld [vmem:[%s3971_s7] sm:$0x1] }
 0x430   : > { %v3141_v60 = vunpack.i.h.bf16 %v3139_v14  ;;  %v3140_v61 = vunpack.i.l.bf16 %v3139_v14  ;;  %v3146_v63 = vunpack.i.h.bf16 %v3144_v50  ;;  %v3145_v52 = vunpack.i.l.bf16 %v3144_v50  ;;  %v2355_v14 = vld [vmem:[%s3974_s10 + $0x8] sm:$0x3] }
 0x432   : > { %v2058_v5 = vsel %vm2057_vm9, %v2055_v13, %v3140_v61  ;;  %v2059_v0 = vsel %vm2057_vm9, %v2056_v62, %v3141_v60 }
 0x433   : > { %v3149_v1 = vpop.permute.xlu0 %3148  ;;  %v3154_v2 = vpop.permute.xlu1 %3153  ;;  %v2061_v9 = vsel %vm2060_vm5, %v2058_v5, %v3145_v52  ;;  %v2062_v10 = vsel %vm2060_vm5, %v2059_v0, %v3146_v63  ;;  %v2356_v63 = vld [vmem:[#allocation4] sm:$0x1] }
 0x434   : > { %v3151_v7 = vunpack.i.h.bf16 %v3149_v1  ;;  %v3150_v49 = vunpack.i.l.bf16 %v3149_v1  ;;  %v3156_v4 = vunpack.i.h.bf16 %v3154_v2  ;;  %v3155_v3 = vunpack.i.l.bf16 %v3154_v2 }
 0x436   : > { %v2064_v15 = vsel %vm2063_vm12, %v2061_v9, %v3150_v49  ;;  %v2065_v55 = vsel %vm2063_vm12, %v2062_v10, %v3151_v7 }
 0x437   : > { %v2067_v16 = vsel %vm2066_vm8, %v2064_v15, %v3155_v3  ;;  %v2068_v12 = vsel %vm2066_vm8, %v2065_v55, %v3156_v4 }
 0x438   : > { %v2077_v17 = vmul.f32 %v2074_v58, %v2067_v16  ;;  %v2078_v18 = vmul.f32 %v2076_v6, %v2068_v12 }
 0x43a   : > { %v2080_v19 = vsel %vm2079_vm10, %v2077_v17, 0.0  ;;  %v2081_v20 = vsel %vm2079_vm10, %v2078_v18, 0.0 }
 0x43b   : > { %v2082_v21 = vadd.f32 %v2081_v20, %v2080_v19 }
 0x43d   : > { %v2083_v11 = vrot.slane %v2082_v21, 4 }
 0x43f   : > { %v2084_v22 = vadd.f32 %v2083_v11, %v2082_v21 }
 0x441   : > { %v2085_v23 = vrot.slane %v2084_v22, 2 }
 0x443   : > { %v2086_v24 = vadd.f32 %v2085_v23, %v2084_v22 }
 0x445   : > { %v2087_v28 = vrot.slane %v2086_v24, 1 }
 0x447   : > { %v2088_v30 = vadd.f32 %v2087_v28, %v2086_v24 }
 0x449   : > { %2817 = vmatmul.mubr.msk.f32.vlgmr.msra.gmra.mrb[0].mxu1 %vm2079_vm10, %v2088_v30 }
 0x44a   : > { %2887 = vmatpush3.bf16.msra.mxu1 %v2886_v29  ;;  %2845 = vmatprep.mubr.msk.f32.mxu1 %vm3229_vm15, %v3221_v47  ;;  %vm3234_vm15 = vmmov 1  }
 0x44b   : > { %2888 = vmatprep.subr.bf16.mxu1 %v3222_v8  ;;  %vm2905_vm0 = vmpackc.low %vm2361_vm14, %vm3234_vm15 }
 0x44e   : > { %2890 = vmatpush3.bf16.msra.mxu1 %v2889_v33 }
 0x44f   : > { %2891 = vmatprep.subr.bf16.mxu1 %v3222_v8 }
 0x452   : > { %2893 = vmatpush3.bf16.msra.mxu1 %v2892_v36 }
 0x453   : > { %2894 = vmatprep.subr.bf16.mxu1 %v3222_v8 }
 0x456   : > { %2896 = vmatpush3.bf16.msra.mxu1 %v2895_v39 }
 0x457   : > { %2897 = vmatprep.subr.bf16.mxu1 %v3222_v8 }
 0x45a   : > { %2899 = vmatpush3.bf16.msra.mxu1 %v2898_v59 }
 0x45b   : > { %2900 = vmatprep.subr.bf16.mxu1 %v3222_v8 }
 0x45e   : > { %2902 = vmatpush3.bf16.msra.mxu1 %v2901_v43 }
 0x45f   : > { %2843 = vmatprep.subr.mxu1 %v3221_v47  ;;  %v2354_v47 = vld [vmem:[%s3974_s10] sm:$0xff] }
 0x460   : > { %v2904_v50 = vpack.c.bf16 %v2355_v14, %v2354_v47 }
 0x462   : > { %2844 = vmatpush3.msk.msra.mxu1 %vm2279_vm11, %v2273_v44  ;;  %2906 = vmatpush3.bf16.msk.msra.mxu0 %vm2905_vm0, %v2904_v50 }
 0x489   : > { %v2177_v46 = vpop.f32.mrb[0].mxu0 }
 0x48a   : > { %v2805_v8 = vpop.f32.mrb[1].mxu0 }
 0x51c   : > { %v2254_v53 = vpop.f32.mrb[0].mxu1 }
 0x51d   : > { %v2255_v56 = vadd.f32 %v2254_v53, %v2177_v46  ;;  %v2818_v51 = vpop.f32.mrb[1].mxu1 }
 0x51f   : > { %v2259_v57 = vadd.f32 %v2258_v54, %v2255_v56 }
 0x521   : > { %v2260_v48 = vmax.f32 %v2259_v57, 0.0 }
 0x523   : > { %2846 = vmatmul.mubr.msk.f32.vlgmr.msra.gmra.mrb[2].mxu1 %vm2275_vm13, %v2260_v48 }
 0x5f6   : > { %v2349_v60 = vpop.f32.mrb[2].mxu1 }
 0x5f7   : > { %v2350_v61 = vadd.f32 %v2349_v60, %v2274_v27  ;;  %v2847_v13 = vpop.f32.mrb[3].mxu1 }
 0x5f9   : > { %v2353_v62 = vmax.f32 %v2350_v61, 0.0 }
 0x5fb   : > { %2853 = vmatmul.mubr.msk.f32.vlgmr.msra.gmra.mrb[2].mxu0 %vm2357_vm1, %v2353_v62 }
 0x6ce   : > { %v2431_v52 = vpop.f32.mrb[2].mxu0 }
 0x6cf   : > { %v2432_v5 = vadd.f32 %v2431_v52, %v2356_v63  ;;  %v2854_v0 = vpop.f32.mrb[3].mxu0 }
 0x6d1   : > { %2436 = vst.msk [vmem:[%s738_s17] sm:$0x1] %vm2435_vm2, %v2432_v5 }
 0x6d2 PF: > { %s24_s29 = sadd.s32 1, %s3215_s29   ;;  %s3998_s23 = sld [smem:[#allocation6_spill]] }
 0x6d3   : > { %p21_p0 = scmp.ge.s32.totalorder %s24_s29, 6   ;;  %s3999_s24 = sld [smem:[#allocation11_spill]] }
 0x6d4   : > { %s4000_s25 = sld [smem:[#allocation7_spill]]  ;;  %s4001_s26 = sld [smem:[#allocation8_spill]] }
 0x6d5   : > { %s4002_s27 = sld [smem:[#allocation9_spill]]  ;;  %s4003_s28 = sld [smem:[#allocation10_spill]] }
 0x6d6   :  { %23 = sbr.rel (!%p21_p0) target bundleno = 8 (0x8), region = 168 }

</bundles_post_ra>
